<compile_context>
chip_gen: v5e
topology: v5e:2x2
jax: 0.10.0
libtpu: 0.0.40
codegen_flags: <defaults>
</compile_context>

<pallas_src>
import jax
import jax.numpy as jnp
from jax.experimental import pallas as pl
from jax.experimental.pallas import tpu as pltpu


def _round_up(x, m):
    return (x + m - 1) // m * m


_VMEM = pl.BlockSpec(memory_space=pltpu.MemorySpace.VMEM)
_SMEM = pl.BlockSpec(memory_space=pltpu.MemorySpace.SMEM)


# ----------------------------------------------------------------------------
# Fused Pallas kernel: stacked LSTM layers + fc1 -> unfold -> fc2 head
# ----------------------------------------------------------------------------
def _fused_lstm_head_kernel(x_ref, w_ih0_ref, w_ihr_ref, w_hh_ref, b_ref,
                            w1_ref, b1_ref, m2_ref, b2_ref,
                            out_ref, gx, xbuf, c_scr, hb_scr):
    """
    x_ref    : (T*B_pad, PIN) bf16   time-major, feature-padded, flattened input
    w_ih0_ref: (PIN, 4H)      bf16   layer-0 input weights, gates packed i|f|g|o
    w_ihr_ref: (L-1 or 1, H, 4H) bf16 input weights for layers >= 1
    w_hh_ref : (L, H, 4H)     bf16   recurrent weights, gates packed
    b_ref    : (L, 1, 4H)     f32    b_ih + b_hh, gates packed (no padded lanes)
    w1_ref   : (1, H)         f32    fc1 weight row
    b1_ref   : (1,)           f32    fc1 bias (SMEM scalar)
    m2_ref   : (T, NWP)       f32    banded unfold+fc2 matrix (128-lane padded)
    b2_ref   : (1, NWP)       f32    tiled fc2 bias
    out_ref  : (B_pad, NWP)   f32    lane-dense output
    gx       : (T*B_pad, 4H)  f32    hoisted input-projection gates (2-D)
    xbuf     : (T*B_pad, H)   f32    inter-layer activations (2-D)
    c_scr    : (B_pad, H)     f32    cell state
    hb_scr   : (B_pad, H)     bf16   bf16 shadow of h for the recurrent matmul
    """
    T = m2_ref.shape[0]
    B, H = c_scr.shape
    L = w_hh_ref.shape[0]

    w1 = w1_ref[...]                       # (1, H)   f32
    b1 = b1_ref[0]                         # scalar   f32 (SMEM)

    for layer in range(L):                 # static, small
        is_last = layer == L - 1
        w_hh = w_hh_ref[layer]             # (H, 4H) bf16
        b = b_ref[layer]                   # (1, 4H) f32

        # --- input projection for the whole sequence: one MXU matmul -------
        if layer == 0:
            xin = x_ref[...]                               # (T*B, PIN) bf16
            w_in = w_ih0_ref[...]                          # (PIN, 4H)  bf16
        else:
            xin = xbuf[...].astype(w_hh.dtype)             # (T*B, H) -> bf16
            w_in = w_ihr_ref[layer - 1]                    # (H, 4H)    bf16
        gx[...] = jnp.dot(xin, w_in,
                          preferred_element_type=jnp.float32) + b

        c_scr[...] = jnp.zeros_like(c_scr)
        hb_scr[...] = jnp.zeros_like(hb_scr)
        if is_last:
            # out_ref accumulates the fused fc1 -> unfold -> fc2 head.
            out_ref[...] = jnp.broadcast_to(b2_ref[...], out_ref.shape)

        def step(t, carry):
            base = pl.multiple_of(t * B, 8)
            gates = gx[pl.ds(base, B)] + jnp.dot(
                hb_scr[...], w_hh, preferred_element_type=jnp.float32)
            i = jax.nn.sigmoid(gates[:, 0 * H:1 * H])
            f = jax.nn.sigmoid(gates[:, 1 * H:2 * H])
            g = jnp.tanh(gates[:, 2 * H:3 * H])
            o = jax.nn.sigmoid(gates[:, 3 * H:4 * H])
            c_new = f * c_scr[...] + i * g
            h_new = o * jnp.tanh(c_new)
            c_scr[...] = c_new
            hb_scr[...] = h_new.astype(hb_scr.dtype)       # bf16 shadow for t+1
            if not is_last:
                xbuf[pl.ds(base, B)] = h_new               # next layer's input
            else:
                # Fused head for this time step:
                #   y1[t] = fc1(sigmoid(h_t));  out += sigmoid(y1[t]) * M2[t]
                st = jax.nn.sigmoid(h_new)                             # (B, H)
                yt = jnp.sum(st * w1, axis=-1, keepdims=True) + b1     # (B, 1)
                syt = jax.nn.sigmoid(yt)                               # (B, 1)
                out_ref[...] += syt * m2_ref[pl.ds(t, 1), :]           # (B,NWP)
            return carry

        jax.lax.fori_loop(0, T, step, 0, unroll=True)


# ----------------------------------------------------------------------------
# One-time parameter preparation (transpose / pack / pad / cast)
# ----------------------------------------------------------------------------
def prepare_params(params, input_dim, hidden_dim, layer_dim, output_dim,
                   time_interval, seq_len, weight_dtype=jnp.bfloat16):
    H = hidden_dim
    G = 4 * H                        # packed gate width (== 128 when H == 32)
    T = seq_len
    ti = time_interval
    Dout = output_dim
    L = layer_dim
    PIN = _round_up(input_dim, 128)  # layer-0 feature padding (lane tile)
    Nw = T - ti + 1
    nwd = Nw * Dout
    NWP = _round_up(nwd, 128)

    # PyTorch gate order (i, f, g, o) is already contiguous along the 4H axis,
    # so packing is just a transpose: (4H, din).T -> (din, 4H).
    w_ih0_t = params["lstm"][0][0]
    w_ih0 = jnp.zeros((PIN, G), jnp.float32).at[:input_dim, :].set(w_ih0_t.T)
    w_ih0 = w_ih0.astype(weight_dtype)

    w_ihr, w_hh_all, b_all = [], [], []
    for layer, (w_ih, w_hh, b_ih, b_hh) in enumerate(params["lstm"]):
        if layer > 0:
            w_ihr.append(w_ih.T.astype(weight_dtype))            # (H, 4H)
        w_hh_all.append(w_hh.T.astype(weight_dtype))              # (H, 4H)
        b_all.append((b_ih + b_hh).reshape(1, G).astype(jnp.float32))
    if not w_ihr:                     # L == 1: unused placeholder
        w_ihr.append(jnp.zeros((H, G), weight_dtype))
    w_ihr = jnp.stack(w_ihr)          # (max(L-1,1), H, 4H) bf16
    w_hh_all = jnp.stack(w_hh_all)    # (L, H, 4H) bf16
    b_all = jnp.stack(b_all)          # (L, 1, 4H) f32

    w1 = params["fc1_w"].astype(jnp.float32)                      # (1, H)
    b1 = params["fc1_b"].reshape(1).astype(jnp.float32)           # (1,) SMEM

    # Banded matrix so that  sum_t sigmoid(y1[t, b]) * M2[t, w*Dout+d]
    #   = sum_k sigmoid(y1[w+k, b]) * fc2_w[d, k]        (the unfold + fc2)
    w2t = jnp.transpose(params["fc2_w"])                          # (ti, Dout)
    m2 = jnp.zeros((T, NWP), jnp.float32)
    b2 = jnp.zeros((1, NWP), jnp.float32)
    for w in range(Nw):
        m2 = m2.at[w:w + ti, w * Dout:(w + 1) * Dout].set(w2t)
        b2 = b2.at[0, w * Dout:(w + 1) * Dout].set(params["fc2_b"])

    return dict(w_ih0=w_ih0, w_ihr=w_ihr, w_hh=w_hh_all, b=b_all,
                w1=w1, b1=b1, m2=m2, b2=b2,
                PIN=PIN, NWP=NWP, nwd=nwd, H=H, G=G, L=L)


# ----------------------------------------------------------------------------
# Forward wrapper (single pallas_call, gridless)
# ----------------------------------------------------------------------------
def forward(prepped, x):
    B, T, Din = x.shape
    PIN, NWP, nwd = prepped["PIN"], prepped["NWP"], prepped["nwd"]
    H, G = prepped["H"], prepped["G"]
    B_pad = _round_up(max(B, 8), 8)

    # Time-major, batch/feature zero-padded, flattened to 2-D, bf16 for the MXU.
    x_tm = jnp.transpose(x, (1, 0, 2)).astype(jnp.float32)           # (T, B, Din)
    x_p = jnp.zeros((T, B_pad, PIN), jnp.float32).at[:, :B, :Din].set(x_tm)
    x2d = x_p.reshape(T * B_pad, PIN).astype(jnp.bfloat16)

    out = pl.pallas_call(
        _fused_lstm_head_kernel,
        out_shape=jax.ShapeDtypeStruct((B_pad, NWP), jnp.float32),
        in_specs=[_VMEM, _VMEM, _VMEM, _VMEM, _VMEM, _VMEM, _SMEM, _VMEM, _VMEM],
        out_specs=_VMEM,
        scratch_shapes=[
            pltpu.VMEM((T * B_pad, G), jnp.float32),      # gx (2-D)
            pltpu.VMEM((T * B_pad, H), jnp.float32),      # xbuf (inter-layer)
            pltpu.VMEM((B_pad, H), jnp.float32),          # c
            pltpu.VMEM((B_pad, H), jnp.bfloat16),         # bf16 shadow of h
        ],
    )(x2d, prepped["w_ih0"], prepped["w_ihr"], prepped["w_hh"], prepped["b"],
      prepped["w1"], prepped["b1"], prepped["m2"], prepped["b2"])

    return out[:B, :nwd].reshape(B, nwd, 1)


# ----------------------------------------------------------------------------
# Pure-JAX reference (f32 end-to-end, for correctness check)
# ----------------------------------------------------------------------------
def forward_ref(params, x, hidden_dim, time_interval, output_dim):
    B, T, _ = x.shape
    out = x.astype(jnp.float32)
    for (w_ih, w_hh, b_ih, b_hh) in params["lstm"]:
        h = jnp.zeros((B, hidden_dim), jnp.float32)
        c = jnp.zeros((B, hidden_dim), jnp.float32)
        hs = []
        for t in range(T):
            gates = out[:, t, :] @ w_ih.T + h @ w_hh.T + b_ih + b_hh
            i, f, g, o = jnp.split(gates, 4, axis=-1)
            i, f, o = jax.nn.sigmoid(i), jax.nn.sigmoid(f), jax.nn.sigmoid(o)
            g = jnp.tanh(g)
            c = f * c + i * g
            h = o * jnp.tanh(c)
            hs.append(h)
        out = jnp.stack(hs, axis=1)                                  # (B, T, H)
    y1 = jax.nn.sigmoid(out) @ params["fc1_w"].T + params["fc1_b"]   # (B, T, 1)
    nw = T - time_interval + 1
    windows = jnp.stack([y1[:, k:k + nw, 0] for k in range(time_interval)], axis=-1)
    y2 = jax.nn.sigmoid(windows) @ params["fc2_w"].T + params["fc2_b"]  # (B, Nw, Dout)
    return y2.reshape(B, -1, 1)


# ----------------------------------------------------------------------------
# Deterministic parameter init (PyTorch-style U(-1/sqrt(H), 1/sqrt(H)))
# ----------------------------------------------------------------------------
def init_params(key, input_dim, hidden_dim, layer_dim, output_dim, time_interval):
    k = 1.0 / float(jnp.sqrt(hidden_dim))
    keys = jax.random.split(key, 4 * layer_dim + 4)
    lstm = []
    for layer in range(layer_dim):
        din = input_dim if layer == 0 else hidden_dim
        w_ih = jax.random.uniform(keys[4 * layer + 0], (4 * hidden_dim, din),
                                  jnp.float32, -k, k)
        w_hh = jax.random.uniform(keys[4 * layer + 1], (4 * hidden_dim, hidden_dim),
                                  jnp.float32, -k, k)
        b_ih = jax.random.uniform(keys[4 * layer + 2], (4 * hidden_dim,),
                                  jnp.float32, -k, k)
        b_hh = jax.random.uniform(keys[4 * layer + 3], (4 * hidden_dim,),
                                  jnp.float32, -k, k)
        lstm.append((w_ih, w_hh, b_ih, b_hh))
    fc1_w = jax.random.uniform(keys[-4], (1, hidden_dim), jnp.float32, -k, k)
    fc1_b = jax.random.normal(keys[-3], (1,), jnp.float32) * 1e-6
    fc2_w = jax.random.uniform(keys[-2], (output_dim, time_interval), jnp.float32, -k, k)
    fc2_b = jax.random.normal(keys[-1], (output_dim,), jnp.float32) * 1e-6
    return {"lstm": lstm, "fc1_w": fc1_w, "fc1_b": fc1_b,
            "fc2_w": fc2_w, "fc2_b": fc2_b}


if __name__ == "__main__":
    # Small shapes consistent with the module's forward.
    input_dim, hidden_dim, layer_dim, output_dim = 4, 32, 2, 1
    drop_out, time_interval = 0.0, 4
    B, T = 2, 8

    key = jax.random.PRNGKey(0)
    k_param, k_x = jax.random.split(key)
    params = init_params(k_param, input_dim, hidden_dim, layer_dim,
                         output_dim, time_interval)
    x = jax.random.normal(k_x, (B, T, input_dim), jnp.float32)

    # One-time weight prep (transpose / gate-pack / pad / bf16 cast).
    prepped = prepare_params(params, input_dim, hidden_dim, layer_dim,
                             output_dim, time_interval, T,
                             weight_dtype=jnp.bfloat16)

    out = forward(prepped, x)
    out = jax.block_until_ready(out)

    ref = forward_ref(params, x, hidden_dim, time_interval, output_dim)
    ref = jax.block_until_ready(ref)

    expected_shape = (B, (T - time_interval + 1) * output_dim, 1)
    assert out.shape == expected_shape, (out.shape, expected_shape)
    # bf16 weights / bf16 h-shadow vs f32 reference -> slightly relaxed tolerance.
    err = float(jnp.max(jnp.abs(out - ref)))
    assert jnp.allclose(out, ref, rtol=2e-2, atol=2e-2), err
    print("KERNEL_OK")
</pallas_src>

<mosaic_0001>
module attributes {stable_mosaic.version = 11 : i64} {
  func.func @_fused_lstm_head_kernel(%arg0: memref<64x128xbf16, #tpu.memory_space<vmem>>, %arg1: memref<128x128xbf16, #tpu.memory_space<vmem>>, %arg2: memref<1x32x128xbf16, #tpu.memory_space<vmem>>, %arg3: memref<2x32x128xbf16, #tpu.memory_space<vmem>>, %arg4: memref<2x1x128xf32, #tpu.memory_space<vmem>>, %arg5: memref<1x32xf32, #tpu.memory_space<vmem>>, %arg6: memref<1xf32, #tpu.memory_space<smem>>, %arg7: memref<8x128xf32, #tpu.memory_space<vmem>>, %arg8: memref<1x128xf32, #tpu.memory_space<vmem>>, %arg9: memref<8x128xf32, #tpu.memory_space<vmem>>, %arg10: memref<64x128xf32, #tpu.memory_space<vmem>>, %arg11: memref<64x32xf32, #tpu.memory_space<vmem>>, %arg12: memref<8x32xf32, #tpu.memory_space<vmem>>, %arg13: memref<8x32xbf16, #tpu.memory_space<vmem>>) attributes {dimension_semantics = [], scalar_prefetch = 0 : i64, scratch_operands = 4 : i64, tpu.core_type = #tpu.core_type<tc>} {
    %c0 = arith.constant 0 : index
    %c0_0 = arith.constant 0 : index
    %0 = vector.load %arg5[%c0, %c0_0] : memref<1x32xf32, #tpu.memory_space<vmem>>, vector<1x32xf32>
    %c0_1 = arith.constant 0 : index
    %1 = memref.load %arg6[%c0_1] : memref<1xf32, #tpu.memory_space<smem>>
    %c0_2 = arith.constant 0 : index
    %c0_3 = arith.constant 0 : index
    %c0_4 = arith.constant 0 : index
    %2 = vector.load %arg3[%c0_2, %c0_3, %c0_4] : memref<2x32x128xbf16, #tpu.memory_space<vmem>>, vector<1x32x128xbf16>
    %3 = vector.shape_cast %2 : vector<1x32x128xbf16> to vector<32x128xbf16>
    %c0_5 = arith.constant 0 : index
    %c0_6 = arith.constant 0 : index
    %c0_7 = arith.constant 0 : index
    %4 = vector.load %arg4[%c0_5, %c0_6, %c0_7] : memref<2x1x128xf32, #tpu.memory_space<vmem>>, vector<1x1x128xf32>
    %5 = vector.shape_cast %4 : vector<1x1x128xf32> to vector<1x128xf32>
    %c0_8 = arith.constant 0 : index
    %c0_9 = arith.constant 0 : index
    %6 = vector.load %arg0[%c0_8, %c0_9] : memref<64x128xbf16, #tpu.memory_space<vmem>>, vector<64x128xbf16>
    %c0_10 = arith.constant 0 : index
    %c0_11 = arith.constant 0 : index
    %7 = vector.load %arg1[%c0_10, %c0_11] : memref<128x128xbf16, #tpu.memory_space<vmem>>, vector<128x128xbf16>
    %cst = arith.constant dense<0.000000e+00> : vector<64x128xf32>
    %8 = tpu.matmul %6, %7, %cst {dimension_numbers = #tpu.dot_dimension_numbers<[1], [0], [0], [1], [0, 0, 1, 1], [], []>} : vector<64x128xbf16>, vector<128x128xbf16>, vector<64x128xf32> -> vector<64x128xf32>
    %9 = vector.broadcast %5 : vector<1x128xf32> to vector<64x128xf32>
    %10 = arith.addf %8, %9 : vector<64x128xf32>
    %c0_12 = arith.constant 0 : index
    %c0_13 = arith.constant 0 : index
    %11 = vector.load %arg10[%c0_12, %c0_13] : memref<64x128xf32, #tpu.memory_space<vmem>>, vector<64x128xf32>
    tpu.vector_store %arg10[%c0_12, %c0_13], %10 {strides = array<i32>} : memref<64x128xf32, #tpu.memory_space<vmem>>, vector<64x128xf32>,
    %cst_14 = arith.constant 0.000000e+00 : f32
    %12 = vector.broadcast %cst_14 : f32 to vector<8x32xf32>
    %c0_15 = arith.constant 0 : index
    %c0_16 = arith.constant 0 : index
    %13 = vector.load %arg12[%c0_15, %c0_16] : memref<8x32xf32, #tpu.memory_space<vmem>>, vector<8x32xf32>
    tpu.vector_store %arg12[%c0_15, %c0_16], %12 {strides = array<i32>} : memref<8x32xf32, #tpu.memory_space<vmem>>, vector<8x32xf32>,
    %cst_17 = arith.constant 0.000000e+00 : bf16
    %14 = vector.broadcast %cst_17 : bf16 to vector<8x32xbf16>
    %c0_18 = arith.constant 0 : index
    %c0_19 = arith.constant 0 : index
    %15 = vector.load %arg13[%c0_18, %c0_19] : memref<8x32xbf16, #tpu.memory_space<vmem>>, vector<8x32xbf16>
    tpu.vector_store %arg13[%c0_18, %c0_19], %14 {strides = array<i32>} : memref<8x32xbf16, #tpu.memory_space<vmem>>, vector<8x32xbf16>,
    %c0_i32 = arith.constant 0 : i32
    %c8_i32 = arith.constant 8 : i32
    %16 = arith.muli %c0_i32, %c8_i32 : i32
    %17 = tpu.assume_multiple %16, 8 : i32
    %18 = arith.index_cast %17 : i32 to index
    %c0_20 = arith.constant 0 : index
    %19 = vector.load %arg10[%18, %c0_20] : memref<64x128xf32, #tpu.memory_space<vmem>>, vector<8x128xf32>
    %c0_21 = arith.constant 0 : index
    %c0_22 = arith.constant 0 : index
    %20 = vector.load %arg13[%c0_21, %c0_22] : memref<8x32xbf16, #tpu.memory_space<vmem>>, vector<8x32xbf16>
    %cst_23 = arith.constant dense<0.000000e+00> : vector<8x128xf32>
    %21 = tpu.matmul %20, %3, %cst_23 {dimension_numbers = #tpu.dot_dimension_numbers<[1], [0], [0], [1], [0, 0, 1, 1], [], []>} : vector<8x32xbf16>, vector<32x128xbf16>, vector<8x128xf32> -> vector<8x128xf32>
    %22 = arith.addf %19, %21 : vector<8x128xf32>
    %23 = vector.extract_strided_slice %22 {offsets = [0, 0], sizes = [8, 32], strides = [1, 1]} : vector<8x128xf32> to vector<8x32xf32>
    %24 = arith.negf %23 : vector<8x32xf32>
    %25 = math.exp %24 : vector<8x32xf32>
    %cst_24 = arith.constant 1.000000e+00 : f32
    %26 = vector.broadcast %cst_24 : f32 to vector<8x32xf32>
    %27 = arith.addf %26, %25 : vector<8x32xf32>
    %28 = arith.divf %26, %27 : vector<8x32xf32>
    %29 = vector.extract_strided_slice %22 {offsets = [0, 32], sizes = [8, 32], strides = [1, 1]} : vector<8x128xf32> to vector<8x32xf32>
    %30 = arith.negf %29 : vector<8x32xf32>
    %31 = math.exp %30 : vector<8x32xf32>
    %cst_25 = arith.constant 1.000000e+00 : f32
    %32 = vector.broadcast %cst_25 : f32 to vector<8x32xf32>
    %33 = arith.addf %32, %31 : vector<8x32xf32>
    %34 = arith.divf %32, %33 : vector<8x32xf32>
    %35 = vector.extract_strided_slice %22 {offsets = [0, 64], sizes = [8, 32], strides = [1, 1]} : vector<8x128xf32> to vector<8x32xf32>
    %36 = math.tanh %35 : vector<8x32xf32>
    %37 = vector.extract_strided_slice %22 {offsets = [0, 96], sizes = [8, 32], strides = [1, 1]} : vector<8x128xf32> to vector<8x32xf32>
    %38 = arith.negf %37 : vector<8x32xf32>
    %39 = math.exp %38 : vector<8x32xf32>
    %cst_26 = arith.constant 1.000000e+00 : f32
    %40 = vector.broadcast %cst_26 : f32 to vector<8x32xf32>
    %41 = arith.addf %40, %39 : vector<8x32xf32>
    %42 = arith.divf %40, %41 : vector<8x32xf32>
    %c0_27 = arith.constant 0 : index
    %c0_28 = arith.constant 0 : index
    %43 = vector.load %arg12[%c0_27, %c0_28] : memref<8x32xf32, #tpu.memory_space<vmem>>, vector<8x32xf32>
    %44 = arith.mulf %34, %43 : vector<8x32xf32>
    %45 = arith.mulf %28, %36 : vector<8x32xf32>
    %46 = arith.addf %44, %45 : vector<8x32xf32>
    %47 = math.tanh %46 : vector<8x32xf32>
    %48 = arith.mulf %42, %47 : vector<8x32xf32>
    %c0_29 = arith.constant 0 : index
    %c0_30 = arith.constant 0 : index
    %49 = vector.load %arg12[%c0_29, %c0_30] : memref<8x32xf32, #tpu.memory_space<vmem>>, vector<8x32xf32>
    tpu.vector_store %arg12[%c0_29, %c0_30], %46 {strides = array<i32>} : memref<8x32xf32, #tpu.memory_space<vmem>>, vector<8x32xf32>,
    %50 = arith.truncf %48 : vector<8x32xf32> to vector<8x32xbf16>
    %c0_31 = arith.constant 0 : index
    %c0_32 = arith.constant 0 : index
    %51 = vector.load %arg13[%c0_31, %c0_32] : memref<8x32xbf16, #tpu.memory_space<vmem>>, vector<8x32xbf16>
    tpu.vector_store %arg13[%c0_31, %c0_32], %50 {strides = array<i32>} : memref<8x32xbf16, #tpu.memory_space<vmem>>, vector<8x32xbf16>,
    %52 = arith.index_cast %17 : i32 to index
    %c0_33 = arith.constant 0 : index
    %53 = vector.load %arg11[%52, %c0_33] : memref<64x32xf32, #tpu.memory_space<vmem>>, vector<8x32xf32>
    tpu.vector_store %arg11[%52, %c0_33], %48 {strides = array<i32>} : memref<64x32xf32, #tpu.memory_space<vmem>>, vector<8x32xf32>,
    %c1_i32 = arith.constant 1 : i32
    %c8_i32_34 = arith.constant 8 : i32
    %54 = arith.muli %c1_i32, %c8_i32_34 : i32
    %55 = tpu.assume_multiple %54, 8 : i32
    %56 = arith.index_cast %55 : i32 to index
    %c0_35 = arith.constant 0 : index
    %57 = vector.load %arg10[%56, %c0_35] : memref<64x128xf32, #tpu.memory_space<vmem>>, vector<8x128xf32>
    %c0_36 = arith.constant 0 : index
    %c0_37 = arith.constant 0 : index
    %58 = vector.load %arg13[%c0_36, %c0_37] : memref<8x32xbf16, #tpu.memory_space<vmem>>, vector<8x32xbf16>
    %cst_38 = arith.constant dense<0.000000e+00> : vector<8x128xf32>
    %59 = tpu.matmul %58, %3, %cst_38 {dimension_numbers = #tpu.dot_dimension_numbers<[1], [0], [0], [1], [0, 0, 1, 1], [], []>} : vector<8x32xbf16>, vector<32x128xbf16>, vector<8x128xf32> -> vector<8x128xf32>
    %60 = arith.addf %57, %59 : vector<8x128xf32>
    %61 = vector.extract_strided_slice %60 {offsets = [0, 0], sizes = [8, 32], strides = [1, 1]} : vector<8x128xf32> to vector<8x32xf32>
    %62 = arith.negf %61 : vector<8x32xf32>
    %63 = math.exp %62 : vector<8x32xf32>
    %cst_39 = arith.constant 1.000000e+00 : f32
    %64 = vector.broadcast %cst_39 : f32 to vector<8x32xf32>
    %65 = arith.addf %64, %63 : vector<8x32xf32>
    %66 = arith.divf %64, %65 : vector<8x32xf32>
    %67 = vector.extract_strided_slice %60 {offsets = [0, 32], sizes = [8, 32], strides = [1, 1]} : vector<8x128xf32> to vector<8x32xf32>
    %68 = arith.negf %67 : vector<8x32xf32>
    %69 = math.exp %68 : vector<8x32xf32>
    %cst_40 = arith.constant 1.000000e+00 : f32
    %70 = vector.broadcast %cst_40 : f32 to vector<8x32xf32>
    %71 = arith.addf %70, %69 : vector<8x32xf32>
    %72 = arith.divf %70, %71 : vector<8x32xf32>
    %73 = vector.extract_strided_slice %60 {offsets = [0, 64], sizes = [8, 32], strides = [1, 1]} : vector<8x128xf32> to vector<8x32xf32>
    %74 = math.tanh %73 : vector<8x32xf32>
    %75 = vector.extract_strided_slice %60 {offsets = [0, 96], sizes = [8, 32], strides = [1, 1]} : vector<8x128xf32> to vector<8x32xf32>
    %76 = arith.negf %75 : vector<8x32xf32>
    %77 = math.exp %76 : vector<8x32xf32>
    %cst_41 = arith.constant 1.000000e+00 : f32
    %78 = vector.broadcast %cst_41 : f32 to vector<8x32xf32>
    %79 = arith.addf %78, %77 : vector<8x32xf32>
    %80 = arith.divf %78, %79 : vector<8x32xf32>
    %c0_42 = arith.constant 0 : index
    %c0_43 = arith.constant 0 : index
    %81 = vector.load %arg12[%c0_42, %c0_43] : memref<8x32xf32, #tpu.memory_space<vmem>>, vector<8x32xf32>
    %82 = arith.mulf %72, %81 : vector<8x32xf32>
    %83 = arith.mulf %66, %74 : vector<8x32xf32>
    %84 = arith.addf %82, %83 : vector<8x32xf32>
    %85 = math.tanh %84 : vector<8x32xf32>
    %86 = arith.mulf %80, %85 : vector<8x32xf32>
    %c0_44 = arith.constant 0 : index
    %c0_45 = arith.constant 0 : index
    %87 = vector.load %arg12[%c0_44, %c0_45] : memref<8x32xf32, #tpu.memory_space<vmem>>, vector<8x32xf32>
    tpu.vector_store %arg12[%c0_44, %c0_45], %84 {strides = array<i32>} : memref<8x32xf32, #tpu.memory_space<vmem>>, vector<8x32xf32>,
    %88 = arith.truncf %86 : vector<8x32xf32> to vector<8x32xbf16>
    %c0_46 = arith.constant 0 : index
    %c0_47 = arith.constant 0 : index
    %89 = vector.load %arg13[%c0_46, %c0_47] : memref<8x32xbf16, #tpu.memory_space<vmem>>, vector<8x32xbf16>
    tpu.vector_store %arg13[%c0_46, %c0_47], %88 {strides = array<i32>} : memref<8x32xbf16, #tpu.memory_space<vmem>>, vector<8x32xbf16>,
    %90 = arith.index_cast %55 : i32 to index
    %c0_48 = arith.constant 0 : index
    %91 = vector.load %arg11[%90, %c0_48] : memref<64x32xf32, #tpu.memory_space<vmem>>, vector<8x32xf32>
    tpu.vector_store %arg11[%90, %c0_48], %86 {strides = array<i32>} : memref<64x32xf32, #tpu.memory_space<vmem>>, vector<8x32xf32>,
    %c2_i32 = arith.constant 2 : i32
    %c8_i32_49 = arith.constant 8 : i32
    %92 = arith.muli %c2_i32, %c8_i32_49 : i32
    %93 = tpu.assume_multiple %92, 8 : i32
    %94 = arith.index_cast %93 : i32 to index
    %c0_50 = arith.constant 0 : index
    %95 = vector.load %arg10[%94, %c0_50] : memref<64x128xf32, #tpu.memory_space<vmem>>, vector<8x128xf32>
    %c0_51 = arith.constant 0 : index
    %c0_52 = arith.constant 0 : index
    %96 = vector.load %arg13[%c0_51, %c0_52] : memref<8x32xbf16, #tpu.memory_space<vmem>>, vector<8x32xbf16>
    %cst_53 = arith.constant dense<0.000000e+00> : vector<8x128xf32>
    %97 = tpu.matmul %96, %3, %cst_53 {dimension_numbers = #tpu.dot_dimension_numbers<[1], [0], [0], [1], [0, 0, 1, 1], [], []>} : vector<8x32xbf16>, vector<32x128xbf16>, vector<8x128xf32> -> vector<8x128xf32>
    %98 = arith.addf %95, %97 : vector<8x128xf32>
    %99 = vector.extract_strided_slice %98 {offsets = [0, 0], sizes = [8, 32], strides = [1, 1]} : vector<8x128xf32> to vector<8x32xf32>
    %100 = arith.negf %99 : vector<8x32xf32>
    %101 = math.exp %100 : vector<8x32xf32>
    %cst_54 = arith.constant 1.000000e+00 : f32
    %102 = vector.broadcast %cst_54 : f32 to vector<8x32xf32>
    %103 = arith.addf %102, %101 : vector<8x32xf32>
    %104 = arith.divf %102, %103 : vector<8x32xf32>
    %105 = vector.extract_strided_slice %98 {offsets = [0, 32], sizes = [8, 32], strides = [1, 1]} : vector<8x128xf32> to vector<8x32xf32>
    %106 = arith.negf %105 : vector<8x32xf32>
    %107 = math.exp %106 : vector<8x32xf32>
    %cst_55 = arith.constant 1.000000e+00 : f32
    %108 = vector.broadcast %cst_55 : f32 to vector<8x32xf32>
    %109 = arith.addf %108, %107 : vector<8x32xf32>
    %110 = arith.divf %108, %109 : vector<8x32xf32>
    %111 = vector.extract_strided_slice %98 {offsets = [0, 64], sizes = [8, 32], strides = [1, 1]} : vector<8x128xf32> to vector<8x32xf32>
    %112 = math.tanh %111 : vector<8x32xf32>
    %113 = vector.extract_strided_slice %98 {offsets = [0, 96], sizes = [8, 32], strides = [1, 1]} : vector<8x128xf32> to vector<8x32xf32>
    %114 = arith.negf %113 : vector<8x32xf32>
    %115 = math.exp %114 : vector<8x32xf32>
    %cst_56 = arith.constant 1.000000e+00 : f32
    %116 = vector.broadcast %cst_56 : f32 to vector<8x32xf32>
    %117 = arith.addf %116, %115 : vector<8x32xf32>
    %118 = arith.divf %116, %117 : vector<8x32xf32>
    %c0_57 = arith.constant 0 : index
    %c0_58 = arith.constant 0 : index
    %119 = vector.load %arg12[%c0_57, %c0_58] : memref<8x32xf32, #tpu.memory_space<vmem>>, vector<8x32xf32>
    %120 = arith.mulf %110, %119 : vector<8x32xf32>
    %121 = arith.mulf %104, %112 : vector<8x32xf32>
    %122 = arith.addf %120, %121 : vector<8x32xf32>
    %123 = math.tanh %122 : vector<8x32xf32>
    %124 = arith.mulf %118, %123 : vector<8x32xf32>
    %c0_59 = arith.constant 0 : index
    %c0_60 = arith.constant 0 : index
    %125 = vector.load %arg12[%c0_59, %c0_60] : memref<8x32xf32, #tpu.memory_space<vmem>>, vector<8x32xf32>
    tpu.vector_store %arg12[%c0_59, %c0_60], %122 {strides = array<i32>} : memref<8x32xf32, #tpu.memory_space<vmem>>, vector<8x32xf32>,
    %126 = arith.truncf %124 : vector<8x32xf32> to vector<8x32xbf16>
    %c0_61 = arith.constant 0 : index
    %c0_62 = arith.constant 0 : index
    %127 = vector.load %arg13[%c0_61, %c0_62] : memref<8x32xbf16, #tpu.memory_space<vmem>>, vector<8x32xbf16>
    tpu.vector_store %arg13[%c0_61, %c0_62], %126 {strides = array<i32>} : memref<8x32xbf16, #tpu.memory_space<vmem>>, vector<8x32xbf16>,
    %128 = arith.index_cast %93 : i32 to index
    %c0_63 = arith.constant 0 : index
    %129 = vector.load %arg11[%128, %c0_63] : memref<64x32xf32, #tpu.memory_space<vmem>>, vector<8x32xf32>
    tpu.vector_store %arg11[%128, %c0_63], %124 {strides = array<i32>} : memref<64x32xf32, #tpu.memory_space<vmem>>, vector<8x32xf32>,
    %c3_i32 = arith.constant 3 : i32
    %c8_i32_64 = arith.constant 8 : i32
    %130 = arith.muli %c3_i32, %c8_i32_64 : i32
    %131 = tpu.assume_multiple %130, 8 : i32
    %132 = arith.index_cast %131 : i32 to index
    %c0_65 = arith.constant 0 : index
    %133 = vector.load %arg10[%132, %c0_65] : memref<64x128xf32, #tpu.memory_space<vmem>>, vector<8x128xf32>
    %c0_66 = arith.constant 0 : index
    %c0_67 = arith.constant 0 : index
    %134 = vector.load %arg13[%c0_66, %c0_67] : memref<8x32xbf16, #tpu.memory_space<vmem>>, vector<8x32xbf16>
    %cst_68 = arith.constant dense<0.000000e+00> : vector<8x128xf32>
    %135 = tpu.matmul %134, %3, %cst_68 {dimension_numbers = #tpu.dot_dimension_numbers<[1], [0], [0], [1], [0, 0, 1, 1], [], []>} : vector<8x32xbf16>, vector<32x128xbf16>, vector<8x128xf32> -> vector<8x128xf32>
    %136 = arith.addf %133, %135 : vector<8x128xf32>
    %137 = vector.extract_strided_slice %136 {offsets = [0, 0], sizes = [8, 32], strides = [1, 1]} : vector<8x128xf32> to vector<8x32xf32>
    %138 = arith.negf %137 : vector<8x32xf32>
    %139 = math.exp %138 : vector<8x32xf32>
    %cst_69 = arith.constant 1.000000e+00 : f32
    %140 = vector.broadcast %cst_69 : f32 to vector<8x32xf32>
    %141 = arith.addf %140, %139 : vector<8x32xf32>
    %142 = arith.divf %140, %141 : vector<8x32xf32>
    %143 = vector.extract_strided_slice %136 {offsets = [0, 32], sizes = [8, 32], strides = [1, 1]} : vector<8x128xf32> to vector<8x32xf32>
    %144 = arith.negf %143 : vector<8x32xf32>
    %145 = math.exp %144 : vector<8x32xf32>
    %cst_70 = arith.constant 1.000000e+00 : f32
    %146 = vector.broadcast %cst_70 : f32 to vector<8x32xf32>
    %147 = arith.addf %146, %145 : vector<8x32xf32>
    %148 = arith.divf %146, %147 : vector<8x32xf32>
    %149 = vector.extract_strided_slice %136 {offsets = [0, 64], sizes = [8, 32], strides = [1, 1]} : vector<8x128xf32> to vector<8x32xf32>
    %150 = math.tanh %149 : vector<8x32xf32>
    %151 = vector.extract_strided_slice %136 {offsets = [0, 96], sizes = [8, 32], strides = [1, 1]} : vector<8x128xf32> to vector<8x32xf32>
    %152 = arith.negf %151 : vector<8x32xf32>
    %153 = math.exp %152 : vector<8x32xf32>
    %cst_71 = arith.constant 1.000000e+00 : f32
    %154 = vector.broadcast %cst_71 : f32 to vector<8x32xf32>
    %155 = arith.addf %154, %153 : vector<8x32xf32>
    %156 = arith.divf %154, %155 : vector<8x32xf32>
    %c0_72 = arith.constant 0 : index
    %c0_73 = arith.constant 0 : index
    %157 = vector.load %arg12[%c0_72, %c0_73] : memref<8x32xf32, #tpu.memory_space<vmem>>, vector<8x32xf32>
    %158 = arith.mulf %148, %157 : vector<8x32xf32>
    %159 = arith.mulf %142, %150 : vector<8x32xf32>
    %160 = arith.addf %158, %159 : vector<8x32xf32>
    %161 = math.tanh %160 : vector<8x32xf32>
    %162 = arith.mulf %156, %161 : vector<8x32xf32>
    %c0_74 = arith.constant 0 : index
    %c0_75 = arith.constant 0 : index
    %163 = vector.load %arg12[%c0_74, %c0_75] : memref<8x32xf32, #tpu.memory_space<vmem>>, vector<8x32xf32>
    tpu.vector_store %arg12[%c0_74, %c0_75], %160 {strides = array<i32>} : memref<8x32xf32, #tpu.memory_space<vmem>>, vector<8x32xf32>,
    %164 = arith.truncf %162 : vector<8x32xf32> to vector<8x32xbf16>
    %c0_76 = arith.constant 0 : index
    %c0_77 = arith.constant 0 : index
    %165 = vector.load %arg13[%c0_76, %c0_77] : memref<8x32xbf16, #tpu.memory_space<vmem>>, vector<8x32xbf16>
    tpu.vector_store %arg13[%c0_76, %c0_77], %164 {strides = array<i32>} : memref<8x32xbf16, #tpu.memory_space<vmem>>, vector<8x32xbf16>,
    %166 = arith.index_cast %131 : i32 to index
    %c0_78 = arith.constant 0 : index
    %167 = vector.load %arg11[%166, %c0_78] : memref<64x32xf32, #tpu.memory_space<vmem>>, vector<8x32xf32>
    tpu.vector_store %arg11[%166, %c0_78], %162 {strides = array<i32>} : memref<64x32xf32, #tpu.memory_space<vmem>>, vector<8x32xf32>,
    %c4_i32 = arith.constant 4 : i32
    %c8_i32_79 = arith.constant 8 : i32
    %168 = arith.muli %c4_i32, %c8_i32_79 : i32
    %169 = tpu.assume_multiple %168, 8 : i32
    %170 = arith.index_cast %169 : i32 to index
    %c0_80 = arith.constant 0 : index
    %171 = vector.load %arg10[%170, %c0_80] : memref<64x128xf32, #tpu.memory_space<vmem>>, vector<8x128xf32>
    %c0_81 = arith.constant 0 : index
    %c0_82 = arith.constant 0 : index
    %172 = vector.load %arg13[%c0_81, %c0_82] : memref<8x32xbf16, #tpu.memory_space<vmem>>, vector<8x32xbf16>
    %cst_83 = arith.constant dense<0.000000e+00> : vector<8x128xf32>
    %173 = tpu.matmul %172, %3, %cst_83 {dimension_numbers = #tpu.dot_dimension_numbers<[1], [0], [0], [1], [0, 0, 1, 1], [], []>} : vector<8x32xbf16>, vector<32x128xbf16>, vector<8x128xf32> -> vector<8x128xf32>
    %174 = arith.addf %171, %173 : vector<8x128xf32>
    %175 = vector.extract_strided_slice %174 {offsets = [0, 0], sizes = [8, 32], strides = [1, 1]} : vector<8x128xf32> to vector<8x32xf32>
    %176 = arith.negf %175 : vector<8x32xf32>
    %177 = math.exp %176 : vector<8x32xf32>
    %cst_84 = arith.constant 1.000000e+00 : f32
    %178 = vector.broadcast %cst_84 : f32 to vector<8x32xf32>
    %179 = arith.addf %178, %177 : vector<8x32xf32>
    %180 = arith.divf %178, %179 : vector<8x32xf32>
    %181 = vector.extract_strided_slice %174 {offsets = [0, 32], sizes = [8, 32], strides = [1, 1]} : vector<8x128xf32> to vector<8x32xf32>
    %182 = arith.negf %181 : vector<8x32xf32>
    %183 = math.exp %182 : vector<8x32xf32>
    %cst_85 = arith.constant 1.000000e+00 : f32
    %184 = vector.broadcast %cst_85 : f32 to vector<8x32xf32>
    %185 = arith.addf %184, %183 : vector<8x32xf32>
    %186 = arith.divf %184, %185 : vector<8x32xf32>
    %187 = vector.extract_strided_slice %174 {offsets = [0, 64], sizes = [8, 32], strides = [1, 1]} : vector<8x128xf32> to vector<8x32xf32>
    %188 = math.tanh %187 : vector<8x32xf32>
    %189 = vector.extract_strided_slice %174 {offsets = [0, 96], sizes = [8, 32], strides = [1, 1]} : vector<8x128xf32> to vector<8x32xf32>
    %190 = arith.negf %189 : vector<8x32xf32>
    %191 = math.exp %190 : vector<8x32xf32>
    %cst_86 = arith.constant 1.000000e+00 : f32
    %192 = vector.broadcast %cst_86 : f32 to vector<8x32xf32>
    %193 = arith.addf %192, %191 : vector<8x32xf32>
    %194 = arith.divf %192, %193 : vector<8x32xf32>
    %c0_87 = arith.constant 0 : index
    %c0_88 = arith.constant 0 : index
    %195 = vector.load %arg12[%c0_87, %c0_88] : memref<8x32xf32, #tpu.memory_space<vmem>>, vector<8x32xf32>
    %196 = arith.mulf %186, %195 : vector<8x32xf32>
    %197 = arith.mulf %180, %188 : vector<8x32xf32>
    %198 = arith.addf %196, %197 : vector<8x32xf32>
    %199 = math.tanh %198 : vector<8x32xf32>
    %200 = arith.mulf %194, %199 : vector<8x32xf32>
    %c0_89 = arith.constant 0 : index
    %c0_90 = arith.constant 0 : index
    %201 = vector.load %arg12[%c0_89, %c0_90] : memref<8x32xf32, #tpu.memory_space<vmem>>, vector<8x32xf32>
    tpu.vector_store %arg12[%c0_89, %c0_90], %198 {strides = array<i32>} : memref<8x32xf32, #tpu.memory_space<vmem>>, vector<8x32xf32>,
    %202 = arith.truncf %200 : vector<8x32xf32> to vector<8x32xbf16>
    %c0_91 = arith.constant 0 : index
    %c0_92 = arith.constant 0 : index
    %203 = vector.load %arg13[%c0_91, %c0_92] : memref<8x32xbf16, #tpu.memory_space<vmem>>, vector<8x32xbf16>
    tpu.vector_store %arg13[%c0_91, %c0_92], %202 {strides = array<i32>} : memref<8x32xbf16, #tpu.memory_space<vmem>>, vector<8x32xbf16>,
    %204 = arith.index_cast %169 : i32 to index
    %c0_93 = arith.constant 0 : index
    %205 = vector.load %arg11[%204, %c0_93] : memref<64x32xf32, #tpu.memory_space<vmem>>, vector<8x32xf32>
    tpu.vector_store %arg11[%204, %c0_93], %200 {strides = array<i32>} : memref<64x32xf32, #tpu.memory_space<vmem>>, vector<8x32xf32>,
    %c5_i32 = arith.constant 5 : i32
    %c8_i32_94 = arith.constant 8 : i32
    %206 = arith.muli %c5_i32, %c8_i32_94 : i32
    %207 = tpu.assume_multiple %206, 8 : i32
    %208 = arith.index_cast %207 : i32 to index
    %c0_95 = arith.constant 0 : index
    %209 = vector.load %arg10[%208, %c0_95] : memref<64x128xf32, #tpu.memory_space<vmem>>, vector<8x128xf32>
    %c0_96 = arith.constant 0 : index
    %c0_97 = arith.constant 0 : index
    %210 = vector.load %arg13[%c0_96, %c0_97] : memref<8x32xbf16, #tpu.memory_space<vmem>>, vector<8x32xbf16>
    %cst_98 = arith.constant dense<0.000000e+00> : vector<8x128xf32>
    %211 = tpu.matmul %210, %3, %cst_98 {dimension_numbers = #tpu.dot_dimension_numbers<[1], [0], [0], [1], [0, 0, 1, 1], [], []>} : vector<8x32xbf16>, vector<32x128xbf16>, vector<8x128xf32> -> vector<8x128xf32>
    %212 = arith.addf %209, %211 : vector<8x128xf32>
    %213 = vector.extract_strided_slice %212 {offsets = [0, 0], sizes = [8, 32], strides = [1, 1]} : vector<8x128xf32> to vector<8x32xf32>
    %214 = arith.negf %213 : vector<8x32xf32>
    %215 = math.exp %214 : vector<8x32xf32>
    %cst_99 = arith.constant 1.000000e+00 : f32
    %216 = vector.broadcast %cst_99 : f32 to vector<8x32xf32>
    %217 = arith.addf %216, %215 : vector<8x32xf32>
    %218 = arith.divf %216, %217 : vector<8x32xf32>
    %219 = vector.extract_strided_slice %212 {offsets = [0, 32], sizes = [8, 32], strides = [1, 1]} : vector<8x128xf32> to vector<8x32xf32>
    %220 = arith.negf %219 : vector<8x32xf32>
    %221 = math.exp %220 : vector<8x32xf32>
    %cst_100 = arith.constant 1.000000e+00 : f32
    %222 = vector.broadcast %cst_100 : f32 to vector<8x32xf32>
    %223 = arith.addf %222, %221 : vector<8x32xf32>
    %224 = arith.divf %222, %223 : vector<8x32xf32>
    %225 = vector.extract_strided_slice %212 {offsets = [0, 64], sizes = [8, 32], strides = [1, 1]} : vector<8x128xf32> to vector<8x32xf32>
    %226 = math.tanh %225 : vector<8x32xf32>
    %227 = vector.extract_strided_slice %212 {offsets = [0, 96], sizes = [8, 32], strides = [1, 1]} : vector<8x128xf32> to vector<8x32xf32>
    %228 = arith.negf %227 : vector<8x32xf32>
    %229 = math.exp %228 : vector<8x32xf32>
    %cst_101 = arith.constant 1.000000e+00 : f32
    %230 = vector.broadcast %cst_101 : f32 to vector<8x32xf32>
    %231 = arith.addf %230, %229 : vector<8x32xf32>
    %232 = arith.divf %230, %231 : vector<8x32xf32>
    %c0_102 = arith.constant 0 : index
    %c0_103 = arith.constant 0 : index
    %233 = vector.load %arg12[%c0_102, %c0_103] : memref<8x32xf32, #tpu.memory_space<vmem>>, vector<8x32xf32>
    %234 = arith.mulf %224, %233 : vector<8x32xf32>
    %235 = arith.mulf %218, %226 : vector<8x32xf32>
    %236 = arith.addf %234, %235 : vector<8x32xf32>
    %237 = math.tanh %236 : vector<8x32xf32>
    %238 = arith.mulf %232, %237 : vector<8x32xf32>
    %c0_104 = arith.constant 0 : index
    %c0_105 = arith.constant 0 : index
    %239 = vector.load %arg12[%c0_104, %c0_105] : memref<8x32xf32, #tpu.memory_space<vmem>>, vector<8x32xf32>
    tpu.vector_store %arg12[%c0_104, %c0_105], %236 {strides = array<i32>} : memref<8x32xf32, #tpu.memory_space<vmem>>, vector<8x32xf32>,
    %240 = arith.truncf %238 : vector<8x32xf32> to vector<8x32xbf16>
    %c0_106 = arith.constant 0 : index
    %c0_107 = arith.constant 0 : index
    %241 = vector.load %arg13[%c0_106, %c0_107] : memref<8x32xbf16, #tpu.memory_space<vmem>>, vector<8x32xbf16>
    tpu.vector_store %arg13[%c0_106, %c0_107], %240 {strides = array<i32>} : memref<8x32xbf16, #tpu.memory_space<vmem>>, vector<8x32xbf16>,
    %242 = arith.index_cast %207 : i32 to index
    %c0_108 = arith.constant 0 : index
    %243 = vector.load %arg11[%242, %c0_108] : memref<64x32xf32, #tpu.memory_space<vmem>>, vector<8x32xf32>
    tpu.vector_store %arg11[%242, %c0_108], %238 {strides = array<i32>} : memref<64x32xf32, #tpu.memory_space<vmem>>, vector<8x32xf32>,
    %c6_i32 = arith.constant 6 : i32
    %c8_i32_109 = arith.constant 8 : i32
    %244 = arith.muli %c6_i32, %c8_i32_109 : i32
    %245 = tpu.assume_multiple %244, 8 : i32
    %246 = arith.index_cast %245 : i32 to index
    %c0_110 = arith.constant 0 : index
    %247 = vector.load %arg10[%246, %c0_110] : memref<64x128xf32, #tpu.memory_space<vmem>>, vector<8x128xf32>
    %c0_111 = arith.constant 0 : index
    %c0_112 = arith.constant 0 : index
    %248 = vector.load %arg13[%c0_111, %c0_112] : memref<8x32xbf16, #tpu.memory_space<vmem>>, vector<8x32xbf16>
    %cst_113 = arith.constant dense<0.000000e+00> : vector<8x128xf32>
    %249 = tpu.matmul %248, %3, %cst_113 {dimension_numbers = #tpu.dot_dimension_numbers<[1], [0], [0], [1], [0, 0, 1, 1], [], []>} : vector<8x32xbf16>, vector<32x128xbf16>, vector<8x128xf32> -> vector<8x128xf32>
    %250 = arith.addf %247, %249 : vector<8x128xf32>
    %251 = vector.extract_strided_slice %250 {offsets = [0, 0], sizes = [8, 32], strides = [1, 1]} : vector<8x128xf32> to vector<8x32xf32>
    %252 = arith.negf %251 : vector<8x32xf32>
    %253 = math.exp %252 : vector<8x32xf32>
    %cst_114 = arith.constant 1.000000e+00 : f32
    %254 = vector.broadcast %cst_114 : f32 to vector<8x32xf32>
    %255 = arith.addf %254, %253 : vector<8x32xf32>
    %256 = arith.divf %254, %255 : vector<8x32xf32>
    %257 = vector.extract_strided_slice %250 {offsets = [0, 32], sizes = [8, 32], strides = [1, 1]} : vector<8x128xf32> to vector<8x32xf32>
    %258 = arith.negf %257 : vector<8x32xf32>
    %259 = math.exp %258 : vector<8x32xf32>
    %cst_115 = arith.constant 1.000000e+00 : f32
    %260 = vector.broadcast %cst_115 : f32 to vector<8x32xf32>
    %261 = arith.addf %260, %259 : vector<8x32xf32>
    %262 = arith.divf %260, %261 : vector<8x32xf32>
    %263 = vector.extract_strided_slice %250 {offsets = [0, 64], sizes = [8, 32], strides = [1, 1]} : vector<8x128xf32> to vector<8x32xf32>
    %264 = math.tanh %263 : vector<8x32xf32>
    %265 = vector.extract_strided_slice %250 {offsets = [0, 96], sizes = [8, 32], strides = [1, 1]} : vector<8x128xf32> to vector<8x32xf32>
    %266 = arith.negf %265 : vector<8x32xf32>
    %267 = math.exp %266 : vector<8x32xf32>
    %cst_116 = arith.constant 1.000000e+00 : f32
    %268 = vector.broadcast %cst_116 : f32 to vector<8x32xf32>
    %269 = arith.addf %268, %267 : vector<8x32xf32>
    %270 = arith.divf %268, %269 : vector<8x32xf32>
    %c0_117 = arith.constant 0 : index
    %c0_118 = arith.constant 0 : index
    %271 = vector.load %arg12[%c0_117, %c0_118] : memref<8x32xf32, #tpu.memory_space<vmem>>, vector<8x32xf32>
    %272 = arith.mulf %262, %271 : vector<8x32xf32>
    %273 = arith.mulf %256, %264 : vector<8x32xf32>
    %274 = arith.addf %272, %273 : vector<8x32xf32>
    %275 = math.tanh %274 : vector<8x32xf32>
    %276 = arith.mulf %270, %275 : vector<8x32xf32>
    %c0_119 = arith.constant 0 : index
    %c0_120 = arith.constant 0 : index
    %277 = vector.load %arg12[%c0_119, %c0_120] : memref<8x32xf32, #tpu.memory_space<vmem>>, vector<8x32xf32>
    tpu.vector_store %arg12[%c0_119, %c0_120], %274 {strides = array<i32>} : memref<8x32xf32, #tpu.memory_space<vmem>>, vector<8x32xf32>,
    %278 = arith.truncf %276 : vector<8x32xf32> to vector<8x32xbf16>
    %c0_121 = arith.constant 0 : index
    %c0_122 = arith.constant 0 : index
    %279 = vector.load %arg13[%c0_121, %c0_122] : memref<8x32xbf16, #tpu.memory_space<vmem>>, vector<8x32xbf16>
    tpu.vector_store %arg13[%c0_121, %c0_122], %278 {strides = array<i32>} : memref<8x32xbf16, #tpu.memory_space<vmem>>, vector<8x32xbf16>,
    %280 = arith.index_cast %245 : i32 to index
    %c0_123 = arith.constant 0 : index
    %281 = vector.load %arg11[%280, %c0_123] : memref<64x32xf32, #tpu.memory_space<vmem>>, vector<8x32xf32>
    tpu.vector_store %arg11[%280, %c0_123], %276 {strides = array<i32>} : memref<64x32xf32, #tpu.memory_space<vmem>>, vector<8x32xf32>,
    %c7_i32 = arith.constant 7 : i32
    %c8_i32_124 = arith.constant 8 : i32
    %282 = arith.muli %c7_i32, %c8_i32_124 : i32
    %283 = tpu.assume_multiple %282, 8 : i32
    %284 = arith.index_cast %283 : i32 to index
    %c0_125 = arith.constant 0 : index
    %285 = vector.load %arg10[%284, %c0_125] : memref<64x128xf32, #tpu.memory_space<vmem>>, vector<8x128xf32>
    %c0_126 = arith.constant 0 : index
    %c0_127 = arith.constant 0 : index
    %286 = vector.load %arg13[%c0_126, %c0_127] : memref<8x32xbf16, #tpu.memory_space<vmem>>, vector<8x32xbf16>
    %cst_128 = arith.constant dense<0.000000e+00> : vector<8x128xf32>
    %287 = tpu.matmul %286, %3, %cst_128 {dimension_numbers = #tpu.dot_dimension_numbers<[1], [0], [0], [1], [0, 0, 1, 1], [], []>} : vector<8x32xbf16>, vector<32x128xbf16>, vector<8x128xf32> -> vector<8x128xf32>
    %288 = arith.addf %285, %287 : vector<8x128xf32>
    %289 = vector.extract_strided_slice %288 {offsets = [0, 0], sizes = [8, 32], strides = [1, 1]} : vector<8x128xf32> to vector<8x32xf32>
    %290 = arith.negf %289 : vector<8x32xf32>
    %291 = math.exp %290 : vector<8x32xf32>
    %cst_129 = arith.constant 1.000000e+00 : f32
    %292 = vector.broadcast %cst_129 : f32 to vector<8x32xf32>
    %293 = arith.addf %292, %291 : vector<8x32xf32>
    %294 = arith.divf %292, %293 : vector<8x32xf32>
    %295 = vector.extract_strided_slice %288 {offsets = [0, 32], sizes = [8, 32], strides = [1, 1]} : vector<8x128xf32> to vector<8x32xf32>
    %296 = arith.negf %295 : vector<8x32xf32>
    %297 = math.exp %296 : vector<8x32xf32>
    %cst_130 = arith.constant 1.000000e+00 : f32
    %298 = vector.broadcast %cst_130 : f32 to vector<8x32xf32>
    %299 = arith.addf %298, %297 : vector<8x32xf32>
    %300 = arith.divf %298, %299 : vector<8x32xf32>
    %301 = vector.extract_strided_slice %288 {offsets = [0, 64], sizes = [8, 32], strides = [1, 1]} : vector<8x128xf32> to vector<8x32xf32>
    %302 = math.tanh %301 : vector<8x32xf32>
    %303 = vector.extract_strided_slice %288 {offsets = [0, 96], sizes = [8, 32], strides = [1, 1]} : vector<8x128xf32> to vector<8x32xf32>
    %304 = arith.negf %303 : vector<8x32xf32>
    %305 = math.exp %304 : vector<8x32xf32>
    %cst_131 = arith.constant 1.000000e+00 : f32
    %306 = vector.broadcast %cst_131 : f32 to vector<8x32xf32>
    %307 = arith.addf %306, %305 : vector<8x32xf32>
    %308 = arith.divf %306, %307 : vector<8x32xf32>
    %c0_132 = arith.constant 0 : index
    %c0_133 = arith.constant 0 : index
    %309 = vector.load %arg12[%c0_132, %c0_133] : memref<8x32xf32, #tpu.memory_space<vmem>>, vector<8x32xf32>
    %310 = arith.mulf %300, %309 : vector<8x32xf32>
    %311 = arith.mulf %294, %302 : vector<8x32xf32>
    %312 = arith.addf %310, %311 : vector<8x32xf32>
    %313 = math.tanh %312 : vector<8x32xf32>
    %314 = arith.mulf %308, %313 : vector<8x32xf32>
    %c0_134 = arith.constant 0 : index
    %c0_135 = arith.constant 0 : index
    %315 = vector.load %arg12[%c0_134, %c0_135] : memref<8x32xf32, #tpu.memory_space<vmem>>, vector<8x32xf32>
    tpu.vector_store %arg12[%c0_134, %c0_135], %312 {strides = array<i32>} : memref<8x32xf32, #tpu.memory_space<vmem>>, vector<8x32xf32>,
    %316 = arith.truncf %314 : vector<8x32xf32> to vector<8x32xbf16>
    %c0_136 = arith.constant 0 : index
    %c0_137 = arith.constant 0 : index
    %317 = vector.load %arg13[%c0_136, %c0_137] : memref<8x32xbf16, #tpu.memory_space<vmem>>, vector<8x32xbf16>
    tpu.vector_store %arg13[%c0_136, %c0_137], %316 {strides = array<i32>} : memref<8x32xbf16, #tpu.memory_space<vmem>>, vector<8x32xbf16>,
    %318 = arith.index_cast %283 : i32 to index
    %c0_138 = arith.constant 0 : index
    %319 = vector.load %arg11[%318, %c0_138] : memref<64x32xf32, #tpu.memory_space<vmem>>, vector<8x32xf32>
    tpu.vector_store %arg11[%318, %c0_138], %314 {strides = array<i32>} : memref<64x32xf32, #tpu.memory_space<vmem>>, vector<8x32xf32>,
    %c8_i32_139 = arith.constant 8 : i32
    %c1 = arith.constant 1 : index
    %c0_140 = arith.constant 0 : index
    %c0_141 = arith.constant 0 : index
    %320 = vector.load %arg3[%c1, %c0_140, %c0_141] : memref<2x32x128xbf16, #tpu.memory_space<vmem>>, vector<1x32x128xbf16>
    %321 = vector.shape_cast %320 : vector<1x32x128xbf16> to vector<32x128xbf16>
    %c1_142 = arith.constant 1 : index
    %c0_143 = arith.constant 0 : index
    %c0_144 = arith.constant 0 : index
    %322 = vector.load %arg4[%c1_142, %c0_143, %c0_144] : memref<2x1x128xf32, #tpu.memory_space<vmem>>, vector<1x1x128xf32>
    %323 = vector.shape_cast %322 : vector<1x1x128xf32> to vector<1x128xf32>
    %c0_145 = arith.constant 0 : index
    %c0_146 = arith.constant 0 : index
    %324 = vector.load %arg11[%c0_145, %c0_146] : memref<64x32xf32, #tpu.memory_space<vmem>>, vector<64x32xf32>
    %325 = arith.truncf %324 : vector<64x32xf32> to vector<64x32xbf16>
    %c0_147 = arith.constant 0 : index
    %c0_148 = arith.constant 0 : index
    %c0_149 = arith.constant 0 : index
    %326 = vector.load %arg2[%c0_147, %c0_148, %c0_149] : memref<1x32x128xbf16, #tpu.memory_space<vmem>>, vector<1x32x128xbf16>
    %327 = vector.shape_cast %326 : vector<1x32x128xbf16> to vector<32x128xbf16>
    %cst_150 = arith.constant dense<0.000000e+00> : vector<64x128xf32>
    %328 = tpu.matmul %325, %327, %cst_150 {dimension_numbers = #tpu.dot_dimension_numbers<[1], [0], [0], [1], [0, 0, 1, 1], [], []>} : vector<64x32xbf16>, vector<32x128xbf16>, vector<64x128xf32> -> vector<64x128xf32>
    %329 = vector.broadcast %323 : vector<1x128xf32> to vector<64x128xf32>
    %330 = arith.addf %328, %329 : vector<64x128xf32>
    %c0_151 = arith.constant 0 : index
    %c0_152 = arith.constant 0 : index
    %331 = vector.load %arg10[%c0_151, %c0_152] : memref<64x128xf32, #tpu.memory_space<vmem>>, vector<64x128xf32>
    tpu.vector_store %arg10[%c0_151, %c0_152], %330 {strides = array<i32>} : memref<64x128xf32, #tpu.memory_space<vmem>>, vector<64x128xf32>,
    %cst_153 = arith.constant 0.000000e+00 : f32
    %332 = vector.broadcast %cst_153 : f32 to vector<8x32xf32>
    %c0_154 = arith.constant 0 : index
    %c0_155 = arith.constant 0 : index
    %333 = vector.load %arg12[%c0_154, %c0_155] : memref<8x32xf32, #tpu.memory_space<vmem>>, vector<8x32xf32>
    tpu.vector_store %arg12[%c0_154, %c0_155], %332 {strides = array<i32>} : memref<8x32xf32, #tpu.memory_space<vmem>>, vector<8x32xf32>,
    %cst_156 = arith.constant 0.000000e+00 : bf16
    %334 = vector.broadcast %cst_156 : bf16 to vector<8x32xbf16>
    %c0_157 = arith.constant 0 : index
    %c0_158 = arith.constant 0 : index
    %335 = vector.load %arg13[%c0_157, %c0_158] : memref<8x32xbf16, #tpu.memory_space<vmem>>, vector<8x32xbf16>
    tpu.vector_store %arg13[%c0_157, %c0_158], %334 {strides = array<i32>} : memref<8x32xbf16, #tpu.memory_space<vmem>>, vector<8x32xbf16>,
    %c0_159 = arith.constant 0 : index
    %c0_160 = arith.constant 0 : index
    %336 = vector.load %arg8[%c0_159, %c0_160] : memref<1x128xf32, #tpu.memory_space<vmem>>, vector<1x128xf32>
    %337 = vector.shape_cast %336 : vector<1x128xf32> to vector<1x128xf32>
    %338 = vector.broadcast %337 : vector<1x128xf32> to vector<8x128xf32>
    %c0_161 = arith.constant 0 : index
    %c0_162 = arith.constant 0 : index
    %339 = vector.load %arg9[%c0_161, %c0_162] : memref<8x128xf32, #tpu.memory_space<vmem>>, vector<8x128xf32>
    tpu.vector_store %arg9[%c0_161, %c0_162], %338 {strides = array<i32>} : memref<8x128xf32, #tpu.memory_space<vmem>>, vector<8x128xf32>,
    %c0_i32_163 = arith.constant 0 : i32
    %c8_i32_164 = arith.constant 8 : i32
    %340 = arith.muli %c0_i32_163, %c8_i32_164 : i32
    %341 = tpu.assume_multiple %340, 8 : i32
    %342 = arith.index_cast %341 : i32 to index
    %c0_165 = arith.constant 0 : index
    %343 = vector.load %arg10[%342, %c0_165] : memref<64x128xf32, #tpu.memory_space<vmem>>, vector<8x128xf32>
    %c0_166 = arith.constant 0 : index
    %c0_167 = arith.constant 0 : index
    %344 = vector.load %arg13[%c0_166, %c0_167] : memref<8x32xbf16, #tpu.memory_space<vmem>>, vector<8x32xbf16>
    %cst_168 = arith.constant dense<0.000000e+00> : vector<8x128xf32>
    %345 = tpu.matmul %344, %321, %cst_168 {dimension_numbers = #tpu.dot_dimension_numbers<[1], [0], [0], [1], [0, 0, 1, 1], [], []>} : vector<8x32xbf16>, vector<32x128xbf16>, vector<8x128xf32> -> vector<8x128xf32>
    %346 = arith.addf %343, %345 : vector<8x128xf32>
    %347 = vector.extract_strided_slice %346 {offsets = [0, 0], sizes = [8, 32], strides = [1, 1]} : vector<8x128xf32> to vector<8x32xf32>
    %348 = arith.negf %347 : vector<8x32xf32>
    %349 = math.exp %348 : vector<8x32xf32>
    %cst_169 = arith.constant 1.000000e+00 : f32
    %350 = vector.broadcast %cst_169 : f32 to vector<8x32xf32>
    %351 = arith.addf %350, %349 : vector<8x32xf32>
    %352 = arith.divf %350, %351 : vector<8x32xf32>
    %353 = vector.extract_strided_slice %346 {offsets = [0, 32], sizes = [8, 32], strides = [1, 1]} : vector<8x128xf32> to vector<8x32xf32>
    %354 = arith.negf %353 : vector<8x32xf32>
    %355 = math.exp %354 : vector<8x32xf32>
    %cst_170 = arith.constant 1.000000e+00 : f32
    %356 = vector.broadcast %cst_170 : f32 to vector<8x32xf32>
    %357 = arith.addf %356, %355 : vector<8x32xf32>
    %358 = arith.divf %356, %357 : vector<8x32xf32>
    %359 = vector.extract_strided_slice %346 {offsets = [0, 64], sizes = [8, 32], strides = [1, 1]} : vector<8x128xf32> to vector<8x32xf32>
    %360 = math.tanh %359 : vector<8x32xf32>
    %361 = vector.extract_strided_slice %346 {offsets = [0, 96], sizes = [8, 32], strides = [1, 1]} : vector<8x128xf32> to vector<8x32xf32>
    %362 = arith.negf %361 : vector<8x32xf32>
    %363 = math.exp %362 : vector<8x32xf32>
    %cst_171 = arith.constant 1.000000e+00 : f32
    %364 = vector.broadcast %cst_171 : f32 to vector<8x32xf32>
    %365 = arith.addf %364, %363 : vector<8x32xf32>
    %366 = arith.divf %364, %365 : vector<8x32xf32>
    %c0_172 = arith.constant 0 : index
    %c0_173 = arith.constant 0 : index
    %367 = vector.load %arg12[%c0_172, %c0_173] : memref<8x32xf32, #tpu.memory_space<vmem>>, vector<8x32xf32>
    %368 = arith.mulf %358, %367 : vector<8x32xf32>
    %369 = arith.mulf %352, %360 : vector<8x32xf32>
    %370 = arith.addf %368, %369 : vector<8x32xf32>
    %371 = math.tanh %370 : vector<8x32xf32>
    %372 = arith.mulf %366, %371 : vector<8x32xf32>
    %c0_174 = arith.constant 0 : index
    %c0_175 = arith.constant 0 : index
    %373 = vector.load %arg12[%c0_174, %c0_175] : memref<8x32xf32, #tpu.memory_space<vmem>>, vector<8x32xf32>
    tpu.vector_store %arg12[%c0_174, %c0_175], %370 {strides = array<i32>} : memref<8x32xf32, #tpu.memory_space<vmem>>, vector<8x32xf32>,
    %374 = arith.truncf %372 : vector<8x32xf32> to vector<8x32xbf16>
    %c0_176 = arith.constant 0 : index
    %c0_177 = arith.constant 0 : index
    %375 = vector.load %arg13[%c0_176, %c0_177] : memref<8x32xbf16, #tpu.memory_space<vmem>>, vector<8x32xbf16>
    tpu.vector_store %arg13[%c0_176, %c0_177], %374 {strides = array<i32>} : memref<8x32xbf16, #tpu.memory_space<vmem>>, vector<8x32xbf16>,
    %376 = arith.negf %372 : vector<8x32xf32>
    %377 = math.exp %376 : vector<8x32xf32>
    %cst_178 = arith.constant 1.000000e+00 : f32
    %378 = vector.broadcast %cst_178 : f32 to vector<8x32xf32>
    %379 = arith.addf %378, %377 : vector<8x32xf32>
    %380 = arith.divf %378, %379 : vector<8x32xf32>
    %381 = vector.broadcast %0 : vector<1x32xf32> to vector<8x32xf32>
    %382 = arith.mulf %380, %381 : vector<8x32xf32>
    %cst_179 = arith.constant dense<0.000000e+00> : vector<8xf32>
    %383 = vector.multi_reduction <add>, %382, %cst_179 [1] : vector<8x32xf32> to vector<8xf32>
    %384 = vector.shape_cast %383 : vector<8xf32> to vector<8x1xf32>
    %385 = vector.broadcast %1 : f32 to vector<8x1xf32>
    %386 = arith.addf %384, %385 : vector<8x1xf32>
    %387 = arith.negf %386 : vector<8x1xf32>
    %388 = math.exp %387 : vector<8x1xf32>
    %cst_180 = arith.constant 1.000000e+00 : f32
    %389 = vector.broadcast %cst_180 : f32 to vector<8x1xf32>
    %390 = arith.addf %389, %388 : vector<8x1xf32>
    %391 = arith.divf %389, %390 : vector<8x1xf32>
    %c0_181 = arith.constant 0 : index
    %c0_182 = arith.constant 0 : index
    %392 = vector.load %arg9[%c0_181, %c0_182] : memref<8x128xf32, #tpu.memory_space<vmem>>, vector<8x128xf32>
    %393 = arith.index_cast %c0_i32_163 : i32 to index
    %c0_183 = arith.constant 0 : index
    %394 = vector.load %arg7[%393, %c0_183] : memref<8x128xf32, #tpu.memory_space<vmem>>, vector<1x128xf32>
    %395 = vector.broadcast %391 : vector<8x1xf32> to vector<8x128xf32>
    %396 = vector.broadcast %394 : vector<1x128xf32> to vector<8x128xf32>
    %397 = arith.mulf %395, %396 : vector<8x128xf32>
    %398 = arith.addf %392, %397 : vector<8x128xf32>
    %c0_184 = arith.constant 0 : index
    %c0_185 = arith.constant 0 : index
    %399 = vector.load %arg9[%c0_184, %c0_185] : memref<8x128xf32, #tpu.memory_space<vmem>>, vector<8x128xf32>
    tpu.vector_store %arg9[%c0_184, %c0_185], %398 {strides = array<i32>} : memref<8x128xf32, #tpu.memory_space<vmem>>, vector<8x128xf32>,
    %c1_i32_186 = arith.constant 1 : i32
    %c8_i32_187 = arith.constant 8 : i32
    %400 = arith.muli %c1_i32_186, %c8_i32_187 : i32
    %401 = tpu.assume_multiple %400, 8 : i32
    %402 = arith.index_cast %401 : i32 to index
    %c0_188 = arith.constant 0 : index
    %403 = vector.load %arg10[%402, %c0_188] : memref<64x128xf32, #tpu.memory_space<vmem>>, vector<8x128xf32>
    %c0_189 = arith.constant 0 : index
    %c0_190 = arith.constant 0 : index
    %404 = vector.load %arg13[%c0_189, %c0_190] : memref<8x32xbf16, #tpu.memory_space<vmem>>, vector<8x32xbf16>
    %cst_191 = arith.constant dense<0.000000e+00> : vector<8x128xf32>
    %405 = tpu.matmul %404, %321, %cst_191 {dimension_numbers = #tpu.dot_dimension_numbers<[1], [0], [0], [1], [0, 0, 1, 1], [], []>} : vector<8x32xbf16>, vector<32x128xbf16>, vector<8x128xf32> -> vector<8x128xf32>
    %406 = arith.addf %403, %405 : vector<8x128xf32>
    %407 = vector.extract_strided_slice %406 {offsets = [0, 0], sizes = [8, 32], strides = [1, 1]} : vector<8x128xf32> to vector<8x32xf32>
    %408 = arith.negf %407 : vector<8x32xf32>
    %409 = math.exp %408 : vector<8x32xf32>
    %cst_192 = arith.constant 1.000000e+00 : f32
    %410 = vector.broadcast %cst_192 : f32 to vector<8x32xf32>
    %411 = arith.addf %410, %409 : vector<8x32xf32>
    %412 = arith.divf %410, %411 : vector<8x32xf32>
    %413 = vector.extract_strided_slice %406 {offsets = [0, 32], sizes = [8, 32], strides = [1, 1]} : vector<8x128xf32> to vector<8x32xf32>
    %414 = arith.negf %413 : vector<8x32xf32>
    %415 = math.exp %414 : vector<8x32xf32>
    %cst_193 = arith.constant 1.000000e+00 : f32
    %416 = vector.broadcast %cst_193 : f32 to vector<8x32xf32>
    %417 = arith.addf %416, %415 : vector<8x32xf32>
    %418 = arith.divf %416, %417 : vector<8x32xf32>
    %419 = vector.extract_strided_slice %406 {offsets = [0, 64], sizes = [8, 32], strides = [1, 1]} : vector<8x128xf32> to vector<8x32xf32>
    %420 = math.tanh %419 : vector<8x32xf32>
    %421 = vector.extract_strided_slice %406 {offsets = [0, 96], sizes = [8, 32], strides = [1, 1]} : vector<8x128xf32> to vector<8x32xf32>
    %422 = arith.negf %421 : vector<8x32xf32>
    %423 = math.exp %422 : vector<8x32xf32>
    %cst_194 = arith.constant 1.000000e+00 : f32
    %424 = vector.broadcast %cst_194 : f32 to vector<8x32xf32>
    %425 = arith.addf %424, %423 : vector<8x32xf32>
    %426 = arith.divf %424, %425 : vector<8x32xf32>
    %c0_195 = arith.constant 0 : index
    %c0_196 = arith.constant 0 : index
    %427 = vector.load %arg12[%c0_195, %c0_196] : memref<8x32xf32, #tpu.memory_space<vmem>>, vector<8x32xf32>
    %428 = arith.mulf %418, %427 : vector<8x32xf32>
    %429 = arith.mulf %412, %420 : vector<8x32xf32>
    %430 = arith.addf %428, %429 : vector<8x32xf32>
    %431 = math.tanh %430 : vector<8x32xf32>
    %432 = arith.mulf %426, %431 : vector<8x32xf32>
    %c0_197 = arith.constant 0 : index
    %c0_198 = arith.constant 0 : index
    %433 = vector.load %arg12[%c0_197, %c0_198] : memref<8x32xf32, #tpu.memory_space<vmem>>, vector<8x32xf32>
    tpu.vector_store %arg12[%c0_197, %c0_198], %430 {strides = array<i32>} : memref<8x32xf32, #tpu.memory_space<vmem>>, vector<8x32xf32>,
    %434 = arith.truncf %432 : vector<8x32xf32> to vector<8x32xbf16>
    %c0_199 = arith.constant 0 : index
    %c0_200 = arith.constant 0 : index
    %435 = vector.load %arg13[%c0_199, %c0_200] : memref<8x32xbf16, #tpu.memory_space<vmem>>, vector<8x32xbf16>
    tpu.vector_store %arg13[%c0_199, %c0_200], %434 {strides = array<i32>} : memref<8x32xbf16, #tpu.memory_space<vmem>>, vector<8x32xbf16>,
    %436 = arith.negf %432 : vector<8x32xf32>
    %437 = math.exp %436 : vector<8x32xf32>
    %cst_201 = arith.constant 1.000000e+00 : f32
    %438 = vector.broadcast %cst_201 : f32 to vector<8x32xf32>
    %439 = arith.addf %438, %437 : vector<8x32xf32>
    %440 = arith.divf %438, %439 : vector<8x32xf32>
    %441 = vector.broadcast %0 : vector<1x32xf32> to vector<8x32xf32>
    %442 = arith.mulf %440, %441 : vector<8x32xf32>
    %cst_202 = arith.constant dense<0.000000e+00> : vector<8xf32>
    %443 = vector.multi_reduction <add>, %442, %cst_202 [1] : vector<8x32xf32> to vector<8xf32>
    %444 = vector.shape_cast %443 : vector<8xf32> to vector<8x1xf32>
    %445 = vector.broadcast %1 : f32 to vector<8x1xf32>
    %446 = arith.addf %444, %445 : vector<8x1xf32>
    %447 = arith.negf %446 : vector<8x1xf32>
    %448 = math.exp %447 : vector<8x1xf32>
    %cst_203 = arith.constant 1.000000e+00 : f32
    %449 = vector.broadcast %cst_203 : f32 to vector<8x1xf32>
    %450 = arith.addf %449, %448 : vector<8x1xf32>
    %451 = arith.divf %449, %450 : vector<8x1xf32>
    %c0_204 = arith.constant 0 : index
    %c0_205 = arith.constant 0 : index
    %452 = vector.load %arg9[%c0_204, %c0_205] : memref<8x128xf32, #tpu.memory_space<vmem>>, vector<8x128xf32>
    %453 = arith.index_cast %c1_i32_186 : i32 to index
    %c0_206 = arith.constant 0 : index
    %454 = vector.load %arg7[%453, %c0_206] : memref<8x128xf32, #tpu.memory_space<vmem>>, vector<1x128xf32>
    %455 = vector.broadcast %451 : vector<8x1xf32> to vector<8x128xf32>
    %456 = vector.broadcast %454 : vector<1x128xf32> to vector<8x128xf32>
    %457 = arith.mulf %455, %456 : vector<8x128xf32>
    %458 = arith.addf %452, %457 : vector<8x128xf32>
    %c0_207 = arith.constant 0 : index
    %c0_208 = arith.constant 0 : index
    %459 = vector.load %arg9[%c0_207, %c0_208] : memref<8x128xf32, #tpu.memory_space<vmem>>, vector<8x128xf32>
    tpu.vector_store %arg9[%c0_207, %c0_208], %458 {strides = array<i32>} : memref<8x128xf32, #tpu.memory_space<vmem>>, vector<8x128xf32>,
    %c2_i32_209 = arith.constant 2 : i32
    %c8_i32_210 = arith.constant 8 : i32
    %460 = arith.muli %c2_i32_209, %c8_i32_210 : i32
    %461 = tpu.assume_multiple %460, 8 : i32
    %462 = arith.index_cast %461 : i32 to index
    %c0_211 = arith.constant 0 : index
    %463 = vector.load %arg10[%462, %c0_211] : memref<64x128xf32, #tpu.memory_space<vmem>>, vector<8x128xf32>
    %c0_212 = arith.constant 0 : index
    %c0_213 = arith.constant 0 : index
    %464 = vector.load %arg13[%c0_212, %c0_213] : memref<8x32xbf16, #tpu.memory_space<vmem>>, vector<8x32xbf16>
    %cst_214 = arith.constant dense<0.000000e+00> : vector<8x128xf32>
    %465 = tpu.matmul %464, %321, %cst_214 {dimension_numbers = #tpu.dot_dimension_numbers<[1], [0], [0], [1], [0, 0, 1, 1], [], []>} : vector<8x32xbf16>, vector<32x128xbf16>, vector<8x128xf32> -> vector<8x128xf32>
    %466 = arith.addf %463, %465 : vector<8x128xf32>
    %467 = vector.extract_strided_slice %466 {offsets = [0, 0], sizes = [8, 32], strides = [1, 1]} : vector<8x128xf32> to vector<8x32xf32>
    %468 = arith.negf %467 : vector<8x32xf32>
    %469 = math.exp %468 : vector<8x32xf32>
    %cst_215 = arith.constant 1.000000e+00 : f32
    %470 = vector.broadcast %cst_215 : f32 to vector<8x32xf32>
    %471 = arith.addf %470, %469 : vector<8x32xf32>
    %472 = arith.divf %470, %471 : vector<8x32xf32>
    %473 = vector.extract_strided_slice %466 {offsets = [0, 32], sizes = [8, 32], strides = [1, 1]} : vector<8x128xf32> to vector<8x32xf32>
    %474 = arith.negf %473 : vector<8x32xf32>
    %475 = math.exp %474 : vector<8x32xf32>
    %cst_216 = arith.constant 1.000000e+00 : f32
    %476 = vector.broadcast %cst_216 : f32 to vector<8x32xf32>
    %477 = arith.addf %476, %475 : vector<8x32xf32>
    %478 = arith.divf %476, %477 : vector<8x32xf32>
    %479 = vector.extract_strided_slice %466 {offsets = [0, 64], sizes = [8, 32], strides = [1, 1]} : vector<8x128xf32> to vector<8x32xf32>
    %480 = math.tanh %479 : vector<8x32xf32>
    %481 = vector.extract_strided_slice %466 {offsets = [0, 96], sizes = [8, 32], strides = [1, 1]} : vector<8x128xf32> to vector<8x32xf32>
    %482 = arith.negf %481 : vector<8x32xf32>
    %483 = math.exp %482 : vector<8x32xf32>
    %cst_217 = arith.constant 1.000000e+00 : f32
    %484 = vector.broadcast %cst_217 : f32 to vector<8x32xf32>
    %485 = arith.addf %484, %483 : vector<8x32xf32>
    %486 = arith.divf %484, %485 : vector<8x32xf32>
    %c0_218 = arith.constant 0 : index
    %c0_219 = arith.constant 0 : index
    %487 = vector.load %arg12[%c0_218, %c0_219] : memref<8x32xf32, #tpu.memory_space<vmem>>, vector<8x32xf32>
    %488 = arith.mulf %478, %487 : vector<8x32xf32>
    %489 = arith.mulf %472, %480 : vector<8x32xf32>
    %490 = arith.addf %488, %489 : vector<8x32xf32>
    %491 = math.tanh %490 : vector<8x32xf32>
    %492 = arith.mulf %486, %491 : vector<8x32xf32>
    %c0_220 = arith.constant 0 : index
    %c0_221 = arith.constant 0 : index
    %493 = vector.load %arg12[%c0_220, %c0_221] : memref<8x32xf32, #tpu.memory_space<vmem>>, vector<8x32xf32>
    tpu.vector_store %arg12[%c0_220, %c0_221], %490 {strides = array<i32>} : memref<8x32xf32, #tpu.memory_space<vmem>>, vector<8x32xf32>,
    %494 = arith.truncf %492 : vector<8x32xf32> to vector<8x32xbf16>
    %c0_222 = arith.constant 0 : index
    %c0_223 = arith.constant 0 : index
    %495 = vector.load %arg13[%c0_222, %c0_223] : memref<8x32xbf16, #tpu.memory_space<vmem>>, vector<8x32xbf16>
    tpu.vector_store %arg13[%c0_222, %c0_223], %494 {strides = array<i32>} : memref<8x32xbf16, #tpu.memory_space<vmem>>, vector<8x32xbf16>,
    %496 = arith.negf %492 : vector<8x32xf32>
    %497 = math.exp %496 : vector<8x32xf32>
    %cst_224 = arith.constant 1.000000e+00 : f32
    %498 = vector.broadcast %cst_224 : f32 to vector<8x32xf32>
    %499 = arith.addf %498, %497 : vector<8x32xf32>
    %500 = arith.divf %498, %499 : vector<8x32xf32>
    %501 = vector.broadcast %0 : vector<1x32xf32> to vector<8x32xf32>
    %502 = arith.mulf %500, %501 : vector<8x32xf32>
    %cst_225 = arith.constant dense<0.000000e+00> : vector<8xf32>
    %503 = vector.multi_reduction <add>, %502, %cst_225 [1] : vector<8x32xf32> to vector<8xf32>
    %504 = vector.shape_cast %503 : vector<8xf32> to vector<8x1xf32>
    %505 = vector.broadcast %1 : f32 to vector<8x1xf32>
    %506 = arith.addf %504, %505 : vector<8x1xf32>
    %507 = arith.negf %506 : vector<8x1xf32>
    %508 = math.exp %507 : vector<8x1xf32>
    %cst_226 = arith.constant 1.000000e+00 : f32
    %509 = vector.broadcast %cst_226 : f32 to vector<8x1xf32>
    %510 = arith.addf %509, %508 : vector<8x1xf32>
    %511 = arith.divf %509, %510 : vector<8x1xf32>
    %c0_227 = arith.constant 0 : index
    %c0_228 = arith.constant 0 : index
    %512 = vector.load %arg9[%c0_227, %c0_228] : memref<8x128xf32, #tpu.memory_space<vmem>>, vector<8x128xf32>
    %513 = arith.index_cast %c2_i32_209 : i32 to index
    %c0_229 = arith.constant 0 : index
    %514 = vector.load %arg7[%513, %c0_229] : memref<8x128xf32, #tpu.memory_space<vmem>>, vector<1x128xf32>
    %515 = vector.broadcast %511 : vector<8x1xf32> to vector<8x128xf32>
    %516 = vector.broadcast %514 : vector<1x128xf32> to vector<8x128xf32>
    %517 = arith.mulf %515, %516 : vector<8x128xf32>
    %518 = arith.addf %512, %517 : vector<8x128xf32>
    %c0_230 = arith.constant 0 : index
    %c0_231 = arith.constant 0 : index
    %519 = vector.load %arg9[%c0_230, %c0_231] : memref<8x128xf32, #tpu.memory_space<vmem>>, vector<8x128xf32>
    tpu.vector_store %arg9[%c0_230, %c0_231], %518 {strides = array<i32>} : memref<8x128xf32, #tpu.memory_space<vmem>>, vector<8x128xf32>,
    %c3_i32_232 = arith.constant 3 : i32
    %c8_i32_233 = arith.constant 8 : i32
    %520 = arith.muli %c3_i32_232, %c8_i32_233 : i32
    %521 = tpu.assume_multiple %520, 8 : i32
    %522 = arith.index_cast %521 : i32 to index
    %c0_234 = arith.constant 0 : index
    %523 = vector.load %arg10[%522, %c0_234] : memref<64x128xf32, #tpu.memory_space<vmem>>, vector<8x128xf32>
    %c0_235 = arith.constant 0 : index
    %c0_236 = arith.constant 0 : index
    %524 = vector.load %arg13[%c0_235, %c0_236] : memref<8x32xbf16, #tpu.memory_space<vmem>>, vector<8x32xbf16>
    %cst_237 = arith.constant dense<0.000000e+00> : vector<8x128xf32>
    %525 = tpu.matmul %524, %321, %cst_237 {dimension_numbers = #tpu.dot_dimension_numbers<[1], [0], [0], [1], [0, 0, 1, 1], [], []>} : vector<8x32xbf16>, vector<32x128xbf16>, vector<8x128xf32> -> vector<8x128xf32>
    %526 = arith.addf %523, %525 : vector<8x128xf32>
    %527 = vector.extract_strided_slice %526 {offsets = [0, 0], sizes = [8, 32], strides = [1, 1]} : vector<8x128xf32> to vector<8x32xf32>
    %528 = arith.negf %527 : vector<8x32xf32>
    %529 = math.exp %528 : vector<8x32xf32>
    %cst_238 = arith.constant 1.000000e+00 : f32
    %530 = vector.broadcast %cst_238 : f32 to vector<8x32xf32>
    %531 = arith.addf %530, %529 : vector<8x32xf32>
    %532 = arith.divf %530, %531 : vector<8x32xf32>
    %533 = vector.extract_strided_slice %526 {offsets = [0, 32], sizes = [8, 32], strides = [1, 1]} : vector<8x128xf32> to vector<8x32xf32>
    %534 = arith.negf %533 : vector<8x32xf32>
    %535 = math.exp %534 : vector<8x32xf32>
    %cst_239 = arith.constant 1.000000e+00 : f32
    %536 = vector.broadcast %cst_239 : f32 to vector<8x32xf32>
    %537 = arith.addf %536, %535 : vector<8x32xf32>
    %538 = arith.divf %536, %537 : vector<8x32xf32>
    %539 = vector.extract_strided_slice %526 {offsets = [0, 64], sizes = [8, 32], strides = [1, 1]} : vector<8x128xf32> to vector<8x32xf32>
    %540 = math.tanh %539 : vector<8x32xf32>
    %541 = vector.extract_strided_slice %526 {offsets = [0, 96], sizes = [8, 32], strides = [1, 1]} : vector<8x128xf32> to vector<8x32xf32>
    %542 = arith.negf %541 : vector<8x32xf32>
    %543 = math.exp %542 : vector<8x32xf32>
    %cst_240 = arith.constant 1.000000e+00 : f32
    %544 = vector.broadcast %cst_240 : f32 to vector<8x32xf32>
    %545 = arith.addf %544, %543 : vector<8x32xf32>
    %546 = arith.divf %544, %545 : vector<8x32xf32>
    %c0_241 = arith.constant 0 : index
    %c0_242 = arith.constant 0 : index
    %547 = vector.load %arg12[%c0_241, %c0_242] : memref<8x32xf32, #tpu.memory_space<vmem>>, vector<8x32xf32>
    %548 = arith.mulf %538, %547 : vector<8x32xf32>
    %549 = arith.mulf %532, %540 : vector<8x32xf32>
    %550 = arith.addf %548, %549 : vector<8x32xf32>
    %551 = math.tanh %550 : vector<8x32xf32>
    %552 = arith.mulf %546, %551 : vector<8x32xf32>
    %c0_243 = arith.constant 0 : index
    %c0_244 = arith.constant 0 : index
    %553 = vector.load %arg12[%c0_243, %c0_244] : memref<8x32xf32, #tpu.memory_space<vmem>>, vector<8x32xf32>
    tpu.vector_store %arg12[%c0_243, %c0_244], %550 {strides = array<i32>} : memref<8x32xf32, #tpu.memory_space<vmem>>, vector<8x32xf32>,
    %554 = arith.truncf %552 : vector<8x32xf32> to vector<8x32xbf16>
    %c0_245 = arith.constant 0 : index
    %c0_246 = arith.constant 0 : index
    %555 = vector.load %arg13[%c0_245, %c0_246] : memref<8x32xbf16, #tpu.memory_space<vmem>>, vector<8x32xbf16>
    tpu.vector_store %arg13[%c0_245, %c0_246], %554 {strides = array<i32>} : memref<8x32xbf16, #tpu.memory_space<vmem>>, vector<8x32xbf16>,
    %556 = arith.negf %552 : vector<8x32xf32>
    %557 = math.exp %556 : vector<8x32xf32>
    %cst_247 = arith.constant 1.000000e+00 : f32
    %558 = vector.broadcast %cst_247 : f32 to vector<8x32xf32>
    %559 = arith.addf %558, %557 : vector<8x32xf32>
    %560 = arith.divf %558, %559 : vector<8x32xf32>
    %561 = vector.broadcast %0 : vector<1x32xf32> to vector<8x32xf32>
    %562 = arith.mulf %560, %561 : vector<8x32xf32>
    %cst_248 = arith.constant dense<0.000000e+00> : vector<8xf32>
    %563 = vector.multi_reduction <add>, %562, %cst_248 [1] : vector<8x32xf32> to vector<8xf32>
    %564 = vector.shape_cast %563 : vector<8xf32> to vector<8x1xf32>
    %565 = vector.broadcast %1 : f32 to vector<8x1xf32>
    %566 = arith.addf %564, %565 : vector<8x1xf32>
    %567 = arith.negf %566 : vector<8x1xf32>
    %568 = math.exp %567 : vector<8x1xf32>
    %cst_249 = arith.constant 1.000000e+00 : f32
    %569 = vector.broadcast %cst_249 : f32 to vector<8x1xf32>
    %570 = arith.addf %569, %568 : vector<8x1xf32>
    %571 = arith.divf %569, %570 : vector<8x1xf32>
    %c0_250 = arith.constant 0 : index
    %c0_251 = arith.constant 0 : index
    %572 = vector.load %arg9[%c0_250, %c0_251] : memref<8x128xf32, #tpu.memory_space<vmem>>, vector<8x128xf32>
    %573 = arith.index_cast %c3_i32_232 : i32 to index
    %c0_252 = arith.constant 0 : index
    %574 = vector.load %arg7[%573, %c0_252] : memref<8x128xf32, #tpu.memory_space<vmem>>, vector<1x128xf32>
    %575 = vector.broadcast %571 : vector<8x1xf32> to vector<8x128xf32>
    %576 = vector.broadcast %574 : vector<1x128xf32> to vector<8x128xf32>
    %577 = arith.mulf %575, %576 : vector<8x128xf32>
    %578 = arith.addf %572, %577 : vector<8x128xf32>
    %c0_253 = arith.constant 0 : index
    %c0_254 = arith.constant 0 : index
    %579 = vector.load %arg9[%c0_253, %c0_254] : memref<8x128xf32, #tpu.memory_space<vmem>>, vector<8x128xf32>
    tpu.vector_store %arg9[%c0_253, %c0_254], %578 {strides = array<i32>} : memref<8x128xf32, #tpu.memory_space<vmem>>, vector<8x128xf32>,
    %c4_i32_255 = arith.constant 4 : i32
    %c8_i32_256 = arith.constant 8 : i32
    %580 = arith.muli %c4_i32_255, %c8_i32_256 : i32
    %581 = tpu.assume_multiple %580, 8 : i32
    %582 = arith.index_cast %581 : i32 to index
    %c0_257 = arith.constant 0 : index
    %583 = vector.load %arg10[%582, %c0_257] : memref<64x128xf32, #tpu.memory_space<vmem>>, vector<8x128xf32>
    %c0_258 = arith.constant 0 : index
    %c0_259 = arith.constant 0 : index
    %584 = vector.load %arg13[%c0_258, %c0_259] : memref<8x32xbf16, #tpu.memory_space<vmem>>, vector<8x32xbf16>
    %cst_260 = arith.constant dense<0.000000e+00> : vector<8x128xf32>
    %585 = tpu.matmul %584, %321, %cst_260 {dimension_numbers = #tpu.dot_dimension_numbers<[1], [0], [0], [1], [0, 0, 1, 1], [], []>} : vector<8x32xbf16>, vector<32x128xbf16>, vector<8x128xf32> -> vector<8x128xf32>
    %586 = arith.addf %583, %585 : vector<8x128xf32>
    %587 = vector.extract_strided_slice %586 {offsets = [0, 0], sizes = [8, 32], strides = [1, 1]} : vector<8x128xf32> to vector<8x32xf32>
    %588 = arith.negf %587 : vector<8x32xf32>
    %589 = math.exp %588 : vector<8x32xf32>
    %cst_261 = arith.constant 1.000000e+00 : f32
    %590 = vector.broadcast %cst_261 : f32 to vector<8x32xf32>
    %591 = arith.addf %590, %589 : vector<8x32xf32>
    %592 = arith.divf %590, %591 : vector<8x32xf32>
    %593 = vector.extract_strided_slice %586 {offsets = [0, 32], sizes = [8, 32], strides = [1, 1]} : vector<8x128xf32> to vector<8x32xf32>
    %594 = arith.negf %593 : vector<8x32xf32>
    %595 = math.exp %594 : vector<8x32xf32>
    %cst_262 = arith.constant 1.000000e+00 : f32
    %596 = vector.broadcast %cst_262 : f32 to vector<8x32xf32>
    %597 = arith.addf %596, %595 : vector<8x32xf32>
    %598 = arith.divf %596, %597 : vector<8x32xf32>
    %599 = vector.extract_strided_slice %586 {offsets = [0, 64], sizes = [8, 32], strides = [1, 1]} : vector<8x128xf32> to vector<8x32xf32>
    %600 = math.tanh %599 : vector<8x32xf32>
    %601 = vector.extract_strided_slice %586 {offsets = [0, 96], sizes = [8, 32], strides = [1, 1]} : vector<8x128xf32> to vector<8x32xf32>
    %602 = arith.negf %601 : vector<8x32xf32>
    %603 = math.exp %602 : vector<8x32xf32>
    %cst_263 = arith.constant 1.000000e+00 : f32
    %604 = vector.broadcast %cst_263 : f32 to vector<8x32xf32>
    %605 = arith.addf %604, %603 : vector<8x32xf32>
    %606 = arith.divf %604, %605 : vector<8x32xf32>
    %c0_264 = arith.constant 0 : index
    %c0_265 = arith.constant 0 : index
    %607 = vector.load %arg12[%c0_264, %c0_265] : memref<8x32xf32, #tpu.memory_space<vmem>>, vector<8x32xf32>
    %608 = arith.mulf %598, %607 : vector<8x32xf32>
    %609 = arith.mulf %592, %600 : vector<8x32xf32>
    %610 = arith.addf %608, %609 : vector<8x32xf32>
    %611 = math.tanh %610 : vector<8x32xf32>
    %612 = arith.mulf %606, %611 : vector<8x32xf32>
    %c0_266 = arith.constant 0 : index
    %c0_267 = arith.constant 0 : index
    %613 = vector.load %arg12[%c0_266, %c0_267] : memref<8x32xf32, #tpu.memory_space<vmem>>, vector<8x32xf32>
    tpu.vector_store %arg12[%c0_266, %c0_267], %610 {strides = array<i32>} : memref<8x32xf32, #tpu.memory_space<vmem>>, vector<8x32xf32>,
    %614 = arith.truncf %612 : vector<8x32xf32> to vector<8x32xbf16>
    %c0_268 = arith.constant 0 : index
    %c0_269 = arith.constant 0 : index
    %615 = vector.load %arg13[%c0_268, %c0_269] : memref<8x32xbf16, #tpu.memory_space<vmem>>, vector<8x32xbf16>
    tpu.vector_store %arg13[%c0_268, %c0_269], %614 {strides = array<i32>} : memref<8x32xbf16, #tpu.memory_space<vmem>>, vector<8x32xbf16>,
    %616 = arith.negf %612 : vector<8x32xf32>
    %617 = math.exp %616 : vector<8x32xf32>
    %cst_270 = arith.constant 1.000000e+00 : f32
    %618 = vector.broadcast %cst_270 : f32 to vector<8x32xf32>
    %619 = arith.addf %618, %617 : vector<8x32xf32>
    %620 = arith.divf %618, %619 : vector<8x32xf32>
    %621 = vector.broadcast %0 : vector<1x32xf32> to vector<8x32xf32>
    %622 = arith.mulf %620, %621 : vector<8x32xf32>
    %cst_271 = arith.constant dense<0.000000e+00> : vector<8xf32>
    %623 = vector.multi_reduction <add>, %622, %cst_271 [1] : vector<8x32xf32> to vector<8xf32>
    %624 = vector.shape_cast %623 : vector<8xf32> to vector<8x1xf32>
    %625 = vector.broadcast %1 : f32 to vector<8x1xf32>
    %626 = arith.addf %624, %625 : vector<8x1xf32>
    %627 = arith.negf %626 : vector<8x1xf32>
    %628 = math.exp %627 : vector<8x1xf32>
    %cst_272 = arith.constant 1.000000e+00 : f32
    %629 = vector.broadcast %cst_272 : f32 to vector<8x1xf32>
    %630 = arith.addf %629, %628 : vector<8x1xf32>
    %631 = arith.divf %629, %630 : vector<8x1xf32>
    %c0_273 = arith.constant 0 : index
    %c0_274 = arith.constant 0 : index
    %632 = vector.load %arg9[%c0_273, %c0_274] : memref<8x128xf32, #tpu.memory_space<vmem>>, vector<8x128xf32>
    %633 = arith.index_cast %c4_i32_255 : i32 to index
    %c0_275 = arith.constant 0 : index
    %634 = vector.load %arg7[%633, %c0_275] : memref<8x128xf32, #tpu.memory_space<vmem>>, vector<1x128xf32>
    %635 = vector.broadcast %631 : vector<8x1xf32> to vector<8x128xf32>
    %636 = vector.broadcast %634 : vector<1x128xf32> to vector<8x128xf32>
    %637 = arith.mulf %635, %636 : vector<8x128xf32>
    %638 = arith.addf %632, %637 : vector<8x128xf32>
    %c0_276 = arith.constant 0 : index
    %c0_277 = arith.constant 0 : index
    %639 = vector.load %arg9[%c0_276, %c0_277] : memref<8x128xf32, #tpu.memory_space<vmem>>, vector<8x128xf32>
    tpu.vector_store %arg9[%c0_276, %c0_277], %638 {strides = array<i32>} : memref<8x128xf32, #tpu.memory_space<vmem>>, vector<8x128xf32>,
    %c5_i32_278 = arith.constant 5 : i32
    %c8_i32_279 = arith.constant 8 : i32
    %640 = arith.muli %c5_i32_278, %c8_i32_279 : i32
    %641 = tpu.assume_multiple %640, 8 : i32
    %642 = arith.index_cast %641 : i32 to index
    %c0_280 = arith.constant 0 : index
    %643 = vector.load %arg10[%642, %c0_280] : memref<64x128xf32, #tpu.memory_space<vmem>>, vector<8x128xf32>
    %c0_281 = arith.constant 0 : index
    %c0_282 = arith.constant 0 : index
    %644 = vector.load %arg13[%c0_281, %c0_282] : memref<8x32xbf16, #tpu.memory_space<vmem>>, vector<8x32xbf16>
    %cst_283 = arith.constant dense<0.000000e+00> : vector<8x128xf32>
    %645 = tpu.matmul %644, %321, %cst_283 {dimension_numbers = #tpu.dot_dimension_numbers<[1], [0], [0], [1], [0, 0, 1, 1], [], []>} : vector<8x32xbf16>, vector<32x128xbf16>, vector<8x128xf32> -> vector<8x128xf32>
    %646 = arith.addf %643, %645 : vector<8x128xf32>
    %647 = vector.extract_strided_slice %646 {offsets = [0, 0], sizes = [8, 32], strides = [1, 1]} : vector<8x128xf32> to vector<8x32xf32>
    %648 = arith.negf %647 : vector<8x32xf32>
    %649 = math.exp %648 : vector<8x32xf32>
    %cst_284 = arith.constant 1.000000e+00 : f32
    %650 = vector.broadcast %cst_284 : f32 to vector<8x32xf32>
    %651 = arith.addf %650, %649 : vector<8x32xf32>
    %652 = arith.divf %650, %651 : vector<8x32xf32>
    %653 = vector.extract_strided_slice %646 {offsets = [0, 32], sizes = [8, 32], strides = [1, 1]} : vector<8x128xf32> to vector<8x32xf32>
    %654 = arith.negf %653 : vector<8x32xf32>
    %655 = math.exp %654 : vector<8x32xf32>
    %cst_285 = arith.constant 1.000000e+00 : f32
    %656 = vector.broadcast %cst_285 : f32 to vector<8x32xf32>
    %657 = arith.addf %656, %655 : vector<8x32xf32>
    %658 = arith.divf %656, %657 : vector<8x32xf32>
    %659 = vector.extract_strided_slice %646 {offsets = [0, 64], sizes = [8, 32], strides = [1, 1]} : vector<8x128xf32> to vector<8x32xf32>
    %660 = math.tanh %659 : vector<8x32xf32>
    %661 = vector.extract_strided_slice %646 {offsets = [0, 96], sizes = [8, 32], strides = [1, 1]} : vector<8x128xf32> to vector<8x32xf32>
    %662 = arith.negf %661 : vector<8x32xf32>
    %663 = math.exp %662 : vector<8x32xf32>
    %cst_286 = arith.constant 1.000000e+00 : f32
    %664 = vector.broadcast %cst_286 : f32 to vector<8x32xf32>
    %665 = arith.addf %664, %663 : vector<8x32xf32>
    %666 = arith.divf %664, %665 : vector<8x32xf32>
    %c0_287 = arith.constant 0 : index
    %c0_288 = arith.constant 0 : index
    %667 = vector.load %arg12[%c0_287, %c0_288] : memref<8x32xf32, #tpu.memory_space<vmem>>, vector<8x32xf32>
    %668 = arith.mulf %658, %667 : vector<8x32xf32>
    %669 = arith.mulf %652, %660 : vector<8x32xf32>
    %670 = arith.addf %668, %669 : vector<8x32xf32>
    %671 = math.tanh %670 : vector<8x32xf32>
    %672 = arith.mulf %666, %671 : vector<8x32xf32>
    %c0_289 = arith.constant 0 : index
    %c0_290 = arith.constant 0 : index
    %673 = vector.load %arg12[%c0_289, %c0_290] : memref<8x32xf32, #tpu.memory_space<vmem>>, vector<8x32xf32>
    tpu.vector_store %arg12[%c0_289, %c0_290], %670 {strides = array<i32>} : memref<8x32xf32, #tpu.memory_space<vmem>>, vector<8x32xf32>,
    %674 = arith.truncf %672 : vector<8x32xf32> to vector<8x32xbf16>
    %c0_291 = arith.constant 0 : index
    %c0_292 = arith.constant 0 : index
    %675 = vector.load %arg13[%c0_291, %c0_292] : memref<8x32xbf16, #tpu.memory_space<vmem>>, vector<8x32xbf16>
    tpu.vector_store %arg13[%c0_291, %c0_292], %674 {strides = array<i32>} : memref<8x32xbf16, #tpu.memory_space<vmem>>, vector<8x32xbf16>,
    %676 = arith.negf %672 : vector<8x32xf32>
    %677 = math.exp %676 : vector<8x32xf32>
    %cst_293 = arith.constant 1.000000e+00 : f32
    %678 = vector.broadcast %cst_293 : f32 to vector<8x32xf32>
    %679 = arith.addf %678, %677 : vector<8x32xf32>
    %680 = arith.divf %678, %679 : vector<8x32xf32>
    %681 = vector.broadcast %0 : vector<1x32xf32> to vector<8x32xf32>
    %682 = arith.mulf %680, %681 : vector<8x32xf32>
    %cst_294 = arith.constant dense<0.000000e+00> : vector<8xf32>
    %683 = vector.multi_reduction <add>, %682, %cst_294 [1] : vector<8x32xf32> to vector<8xf32>
    %684 = vector.shape_cast %683 : vector<8xf32> to vector<8x1xf32>
    %685 = vector.broadcast %1 : f32 to vector<8x1xf32>
    %686 = arith.addf %684, %685 : vector<8x1xf32>
    %687 = arith.negf %686 : vector<8x1xf32>
    %688 = math.exp %687 : vector<8x1xf32>
    %cst_295 = arith.constant 1.000000e+00 : f32
    %689 = vector.broadcast %cst_295 : f32 to vector<8x1xf32>
    %690 = arith.addf %689, %688 : vector<8x1xf32>
    %691 = arith.divf %689, %690 : vector<8x1xf32>
    %c0_296 = arith.constant 0 : index
    %c0_297 = arith.constant 0 : index
    %692 = vector.load %arg9[%c0_296, %c0_297] : memref<8x128xf32, #tpu.memory_space<vmem>>, vector<8x128xf32>
    %693 = arith.index_cast %c5_i32_278 : i32 to index
    %c0_298 = arith.constant 0 : index
    %694 = vector.load %arg7[%693, %c0_298] : memref<8x128xf32, #tpu.memory_space<vmem>>, vector<1x128xf32>
    %695 = vector.broadcast %691 : vector<8x1xf32> to vector<8x128xf32>
    %696 = vector.broadcast %694 : vector<1x128xf32> to vector<8x128xf32>
    %697 = arith.mulf %695, %696 : vector<8x128xf32>
    %698 = arith.addf %692, %697 : vector<8x128xf32>
    %c0_299 = arith.constant 0 : index
    %c0_300 = arith.constant 0 : index
    %699 = vector.load %arg9[%c0_299, %c0_300] : memref<8x128xf32, #tpu.memory_space<vmem>>, vector<8x128xf32>
    tpu.vector_store %arg9[%c0_299, %c0_300], %698 {strides = array<i32>} : memref<8x128xf32, #tpu.memory_space<vmem>>, vector<8x128xf32>,
    %c6_i32_301 = arith.constant 6 : i32
    %c8_i32_302 = arith.constant 8 : i32
    %700 = arith.muli %c6_i32_301, %c8_i32_302 : i32
    %701 = tpu.assume_multiple %700, 8 : i32
    %702 = arith.index_cast %701 : i32 to index
    %c0_303 = arith.constant 0 : index
    %703 = vector.load %arg10[%702, %c0_303] : memref<64x128xf32, #tpu.memory_space<vmem>>, vector<8x128xf32>
    %c0_304 = arith.constant 0 : index
    %c0_305 = arith.constant 0 : index
    %704 = vector.load %arg13[%c0_304, %c0_305] : memref<8x32xbf16, #tpu.memory_space<vmem>>, vector<8x32xbf16>
    %cst_306 = arith.constant dense<0.000000e+00> : vector<8x128xf32>
    %705 = tpu.matmul %704, %321, %cst_306 {dimension_numbers = #tpu.dot_dimension_numbers<[1], [0], [0], [1], [0, 0, 1, 1], [], []>} : vector<8x32xbf16>, vector<32x128xbf16>, vector<8x128xf32> -> vector<8x128xf32>
    %706 = arith.addf %703, %705 : vector<8x128xf32>
    %707 = vector.extract_strided_slice %706 {offsets = [0, 0], sizes = [8, 32], strides = [1, 1]} : vector<8x128xf32> to vector<8x32xf32>
    %708 = arith.negf %707 : vector<8x32xf32>
    %709 = math.exp %708 : vector<8x32xf32>
    %cst_307 = arith.constant 1.000000e+00 : f32
    %710 = vector.broadcast %cst_307 : f32 to vector<8x32xf32>
    %711 = arith.addf %710, %709 : vector<8x32xf32>
    %712 = arith.divf %710, %711 : vector<8x32xf32>
    %713 = vector.extract_strided_slice %706 {offsets = [0, 32], sizes = [8, 32], strides = [1, 1]} : vector<8x128xf32> to vector<8x32xf32>
    %714 = arith.negf %713 : vector<8x32xf32>
    %715 = math.exp %714 : vector<8x32xf32>
    %cst_308 = arith.constant 1.000000e+00 : f32
    %716 = vector.broadcast %cst_308 : f32 to vector<8x32xf32>
    %717 = arith.addf %716, %715 : vector<8x32xf32>
    %718 = arith.divf %716, %717 : vector<8x32xf32>
    %719 = vector.extract_strided_slice %706 {offsets = [0, 64], sizes = [8, 32], strides = [1, 1]} : vector<8x128xf32> to vector<8x32xf32>
    %720 = math.tanh %719 : vector<8x32xf32>
    %721 = vector.extract_strided_slice %706 {offsets = [0, 96], sizes = [8, 32], strides = [1, 1]} : vector<8x128xf32> to vector<8x32xf32>
    %722 = arith.negf %721 : vector<8x32xf32>
    %723 = math.exp %722 : vector<8x32xf32>
    %cst_309 = arith.constant 1.000000e+00 : f32
    %724 = vector.broadcast %cst_309 : f32 to vector<8x32xf32>
    %725 = arith.addf %724, %723 : vector<8x32xf32>
    %726 = arith.divf %724, %725 : vector<8x32xf32>
    %c0_310 = arith.constant 0 : index
    %c0_311 = arith.constant 0 : index
    %727 = vector.load %arg12[%c0_310, %c0_311] : memref<8x32xf32, #tpu.memory_space<vmem>>, vector<8x32xf32>
    %728 = arith.mulf %718, %727 : vector<8x32xf32>
    %729 = arith.mulf %712, %720 : vector<8x32xf32>
    %730 = arith.addf %728, %729 : vector<8x32xf32>
    %731 = math.tanh %730 : vector<8x32xf32>
    %732 = arith.mulf %726, %731 : vector<8x32xf32>
    %c0_312 = arith.constant 0 : index
    %c0_313 = arith.constant 0 : index
    %733 = vector.load %arg12[%c0_312, %c0_313] : memref<8x32xf32, #tpu.memory_space<vmem>>, vector<8x32xf32>
    tpu.vector_store %arg12[%c0_312, %c0_313], %730 {strides = array<i32>} : memref<8x32xf32, #tpu.memory_space<vmem>>, vector<8x32xf32>,
    %734 = arith.truncf %732 : vector<8x32xf32> to vector<8x32xbf16>
    %c0_314 = arith.constant 0 : index
    %c0_315 = arith.constant 0 : index
    %735 = vector.load %arg13[%c0_314, %c0_315] : memref<8x32xbf16, #tpu.memory_space<vmem>>, vector<8x32xbf16>
    tpu.vector_store %arg13[%c0_314, %c0_315], %734 {strides = array<i32>} : memref<8x32xbf16, #tpu.memory_space<vmem>>, vector<8x32xbf16>,
    %736 = arith.negf %732 : vector<8x32xf32>
    %737 = math.exp %736 : vector<8x32xf32>
    %cst_316 = arith.constant 1.000000e+00 : f32
    %738 = vector.broadcast %cst_316 : f32 to vector<8x32xf32>
    %739 = arith.addf %738, %737 : vector<8x32xf32>
    %740 = arith.divf %738, %739 : vector<8x32xf32>
    %741 = vector.broadcast %0 : vector<1x32xf32> to vector<8x32xf32>
    %742 = arith.mulf %740, %741 : vector<8x32xf32>
    %cst_317 = arith.constant dense<0.000000e+00> : vector<8xf32>
    %743 = vector.multi_reduction <add>, %742, %cst_317 [1] : vector<8x32xf32> to vector<8xf32>
    %744 = vector.shape_cast %743 : vector<8xf32> to vector<8x1xf32>
    %745 = vector.broadcast %1 : f32 to vector<8x1xf32>
    %746 = arith.addf %744, %745 : vector<8x1xf32>
    %747 = arith.negf %746 : vector<8x1xf32>
    %748 = math.exp %747 : vector<8x1xf32>
    %cst_318 = arith.constant 1.000000e+00 : f32
    %749 = vector.broadcast %cst_318 : f32 to vector<8x1xf32>
    %750 = arith.addf %749, %748 : vector<8x1xf32>
    %751 = arith.divf %749, %750 : vector<8x1xf32>
    %c0_319 = arith.constant 0 : index
    %c0_320 = arith.constant 0 : index
    %752 = vector.load %arg9[%c0_319, %c0_320] : memref<8x128xf32, #tpu.memory_space<vmem>>, vector<8x128xf32>
    %753 = arith.index_cast %c6_i32_301 : i32 to index
    %c0_321 = arith.constant 0 : index
    %754 = vector.load %arg7[%753, %c0_321] : memref<8x128xf32, #tpu.memory_space<vmem>>, vector<1x128xf32>
    %755 = vector.broadcast %751 : vector<8x1xf32> to vector<8x128xf32>
    %756 = vector.broadcast %754 : vector<1x128xf32> to vector<8x128xf32>
    %757 = arith.mulf %755, %756 : vector<8x128xf32>
    %758 = arith.addf %752, %757 : vector<8x128xf32>
    %c0_322 = arith.constant 0 : index
    %c0_323 = arith.constant 0 : index
    %759 = vector.load %arg9[%c0_322, %c0_323] : memref<8x128xf32, #tpu.memory_space<vmem>>, vector<8x128xf32>
    tpu.vector_store %arg9[%c0_322, %c0_323], %758 {strides = array<i32>} : memref<8x128xf32, #tpu.memory_space<vmem>>, vector<8x128xf32>,
    %c7_i32_324 = arith.constant 7 : i32
    %c8_i32_325 = arith.constant 8 : i32
    %760 = arith.muli %c7_i32_324, %c8_i32_325 : i32
    %761 = tpu.assume_multiple %760, 8 : i32
    %762 = arith.index_cast %761 : i32 to index
    %c0_326 = arith.constant 0 : index
    %763 = vector.load %arg10[%762, %c0_326] : memref<64x128xf32, #tpu.memory_space<vmem>>, vector<8x128xf32>
    %c0_327 = arith.constant 0 : index
    %c0_328 = arith.constant 0 : index
    %764 = vector.load %arg13[%c0_327, %c0_328] : memref<8x32xbf16, #tpu.memory_space<vmem>>, vector<8x32xbf16>
    %cst_329 = arith.constant dense<0.000000e+00> : vector<8x128xf32>
    %765 = tpu.matmul %764, %321, %cst_329 {dimension_numbers = #tpu.dot_dimension_numbers<[1], [0], [0], [1], [0, 0, 1, 1], [], []>} : vector<8x32xbf16>, vector<32x128xbf16>, vector<8x128xf32> -> vector<8x128xf32>
    %766 = arith.addf %763, %765 : vector<8x128xf32>
    %767 = vector.extract_strided_slice %766 {offsets = [0, 0], sizes = [8, 32], strides = [1, 1]} : vector<8x128xf32> to vector<8x32xf32>
    %768 = arith.negf %767 : vector<8x32xf32>
    %769 = math.exp %768 : vector<8x32xf32>
    %cst_330 = arith.constant 1.000000e+00 : f32
    %770 = vector.broadcast %cst_330 : f32 to vector<8x32xf32>
    %771 = arith.addf %770, %769 : vector<8x32xf32>
    %772 = arith.divf %770, %771 : vector<8x32xf32>
    %773 = vector.extract_strided_slice %766 {offsets = [0, 32], sizes = [8, 32], strides = [1, 1]} : vector<8x128xf32> to vector<8x32xf32>
    %774 = arith.negf %773 : vector<8x32xf32>
    %775 = math.exp %774 : vector<8x32xf32>
    %cst_331 = arith.constant 1.000000e+00 : f32
    %776 = vector.broadcast %cst_331 : f32 to vector<8x32xf32>
    %777 = arith.addf %776, %775 : vector<8x32xf32>
    %778 = arith.divf %776, %777 : vector<8x32xf32>
    %779 = vector.extract_strided_slice %766 {offsets = [0, 64], sizes = [8, 32], strides = [1, 1]} : vector<8x128xf32> to vector<8x32xf32>
    %780 = math.tanh %779 : vector<8x32xf32>
    %781 = vector.extract_strided_slice %766 {offsets = [0, 96], sizes = [8, 32], strides = [1, 1]} : vector<8x128xf32> to vector<8x32xf32>
    %782 = arith.negf %781 : vector<8x32xf32>
    %783 = math.exp %782 : vector<8x32xf32>
    %cst_332 = arith.constant 1.000000e+00 : f32
    %784 = vector.broadcast %cst_332 : f32 to vector<8x32xf32>
    %785 = arith.addf %784, %783 : vector<8x32xf32>
    %786 = arith.divf %784, %785 : vector<8x32xf32>
    %c0_333 = arith.constant 0 : index
    %c0_334 = arith.constant 0 : index
    %787 = vector.load %arg12[%c0_333, %c0_334] : memref<8x32xf32, #tpu.memory_space<vmem>>, vector<8x32xf32>
    %788 = arith.mulf %778, %787 : vector<8x32xf32>
    %789 = arith.mulf %772, %780 : vector<8x32xf32>
    %790 = arith.addf %788, %789 : vector<8x32xf32>
    %791 = math.tanh %790 : vector<8x32xf32>
    %792 = arith.mulf %786, %791 : vector<8x32xf32>
    %c0_335 = arith.constant 0 : index
    %c0_336 = arith.constant 0 : index
    %793 = vector.load %arg12[%c0_335, %c0_336] : memref<8x32xf32, #tpu.memory_space<vmem>>, vector<8x32xf32>
    tpu.vector_store %arg12[%c0_335, %c0_336], %790 {strides = array<i32>} : memref<8x32xf32, #tpu.memory_space<vmem>>, vector<8x32xf32>,
    %794 = arith.truncf %792 : vector<8x32xf32> to vector<8x32xbf16>
    %c0_337 = arith.constant 0 : index
    %c0_338 = arith.constant 0 : index
    %795 = vector.load %arg13[%c0_337, %c0_338] : memref<8x32xbf16, #tpu.memory_space<vmem>>, vector<8x32xbf16>
    tpu.vector_store %arg13[%c0_337, %c0_338], %794 {strides = array<i32>} : memref<8x32xbf16, #tpu.memory_space<vmem>>, vector<8x32xbf16>,
    %796 = arith.negf %792 : vector<8x32xf32>
    %797 = math.exp %796 : vector<8x32xf32>
    %cst_339 = arith.constant 1.000000e+00 : f32
    %798 = vector.broadcast %cst_339 : f32 to vector<8x32xf32>
    %799 = arith.addf %798, %797 : vector<8x32xf32>
    %800 = arith.divf %798, %799 : vector<8x32xf32>
    %801 = vector.broadcast %0 : vector<1x32xf32> to vector<8x32xf32>
    %802 = arith.mulf %800, %801 : vector<8x32xf32>
    %cst_340 = arith.constant dense<0.000000e+00> : vector<8xf32>
    %803 = vector.multi_reduction <add>, %802, %cst_340 [1] : vector<8x32xf32> to vector<8xf32>
    %804 = vector.shape_cast %803 : vector<8xf32> to vector<8x1xf32>
    %805 = vector.broadcast %1 : f32 to vector<8x1xf32>
    %806 = arith.addf %804, %805 : vector<8x1xf32>
    %807 = arith.negf %806 : vector<8x1xf32>
    %808 = math.exp %807 : vector<8x1xf32>
    %cst_341 = arith.constant 1.000000e+00 : f32
    %809 = vector.broadcast %cst_341 : f32 to vector<8x1xf32>
    %810 = arith.addf %809, %808 : vector<8x1xf32>
    %811 = arith.divf %809, %810 : vector<8x1xf32>
    %c0_342 = arith.constant 0 : index
    %c0_343 = arith.constant 0 : index
    %812 = vector.load %arg9[%c0_342, %c0_343] : memref<8x128xf32, #tpu.memory_space<vmem>>, vector<8x128xf32>
    %813 = arith.index_cast %c7_i32_324 : i32 to index
    %c0_344 = arith.constant 0 : index
    %814 = vector.load %arg7[%813, %c0_344] : memref<8x128xf32, #tpu.memory_space<vmem>>, vector<1x128xf32>
    %815 = vector.broadcast %811 : vector<8x1xf32> to vector<8x128xf32>
    %816 = vector.broadcast %814 : vector<1x128xf32> to vector<8x128xf32>
    %817 = arith.mulf %815, %816 : vector<8x128xf32>
    %818 = arith.addf %812, %817 : vector<8x128xf32>
    %c0_345 = arith.constant 0 : index
    %c0_346 = arith.constant 0 : index
    %819 = vector.load %arg9[%c0_345, %c0_346] : memref<8x128xf32, #tpu.memory_space<vmem>>, vector<8x128xf32>
    tpu.vector_store %arg9[%c0_345, %c0_346], %818 {strides = array<i32>} : memref<8x128xf32, #tpu.memory_space<vmem>>, vector<8x128xf32>,
    %c8_i32_347 = arith.constant 8 : i32
    return
  }
}

</mosaic_0001>

<bundles_post_ra>
// kernel: tpu_custom_call.1
= control target key start
LH: loop header
LB: loop body
LE: loop exit
PB: predicated region body
PF: predicated region fallthrough
CT: control target
= control target key end

     0   :  { %15 = vsyncpa [#allocation8], 0  ;;  %s3044_s0 = inlined_call_operand.hbm [shape: bf16[64,128], index: 0, kind: input, shape index: {}]   ;;  %s3045_s1 = inlined_call_operand.hbm [shape: bf16[128,128], index: 1, kind: input, shape index: {}]   ;;  %s3046_s2 = inlined_call_operand.hbm [shape: bf16[1,32,128], index: 2, kind: input, shape index: {}]   ;;  %s3047_s3 = inlined_call_operand.hbm [shape: bf16[2,32,128], index: 3, kind: input, shape index: {}]   ;;  %s3048_s4 = inlined_call_operand.vmem [shape: f32[2,1,128], index: 4, kind: input, shape index: {}]   ;;  %s3049_s5 = inlined_call_operand.vmem [shape: f32[1,32], index: 5, kind: input, shape index: {}]   ;;  %s3050_s6 = inlined_call_operand.<no memory space> [shape: f32[1], index: 6, kind: input, shape index: {}]   ;;  %s3051_s7 = inlined_call_operand.hbm [shape: f32[8,128], index: 7, kind: input, shape index: {}]   ;;  %s3052_s8 = inlined_call_operand.vmem [shape: f32[1,128], index: 8, kind: input, shape index: {}]   ;;  %s3053_s9 = inlined_call_operand.hbm [shape: f32[8,128], index: 9, kind: output, shape index: {}]  }
   0x1   :  { %16 = vsyncpa [#allocation11], 0 }
   0x2   :  { %17 = vsyncpa [#allocation14], 0 }
   0x3   :  { %18 = vsyncpa [#allocation9], 0  ;;  %s36_s11 = sshll.u32 %s3045_s1, 4  ;;  %s2542_s12 = smov [#allocation10]   ;;  %s37_s11 = int_to_ptr.hbm [resolvable:$true] %s36_s11 }
   0x4   :  { %s38_s13 = sshll.u32 %s2542_s12, 4  ;;  %s62_s16 = sshll.u32 %s3047_s3, 4  ;;  %s39_s13 = int_to_ptr.vmem [resolvable:$true] %s38_s13  ;;  %s63_s16 = int_to_ptr.hbm [resolvable:$true] %s62_s16 }
   0x5   :  { %s2543_s17 = smov 64   ;;  %s2544_s18 = smov 4  }
   0x6   :  { %44 = dma.hbm_to_vmem [thread:$0]  %s37_s11, 1024, %s39_s13, [#allocation11], %s2543_s17, %s2543_s17, %s2544_s18  }
   0x7   :  { %s2545_s19 = smov [#allocation13]   ;;  %s23_s1 = sshll.u32 %s3044_s0, 4  ;;  %s24_s1 = int_to_ptr.hbm [resolvable:$true] %s23_s1 }
   0x8   :  { %s64_s20 = sshll.u32 %s2545_s19, 4  ;;  %s49_s3 = sshll.u32 %s3046_s2, 4  ;;  %s65_s20 = int_to_ptr.vmem [resolvable:$true] %s64_s20  ;;  %s50_s3 = int_to_ptr.hbm [resolvable:$true] %s49_s3 }
   0x9   :  { %70 = dma.hbm_to_vmem [thread:$0]  %s63_s16, 512, %s65_s20, [#allocation14], %s2543_s17, %s2543_s17, %s2544_s18  }
   0xa   :  { %s2546_s25 = smov [#allocation7]   ;;  %s2547_s27 = smov [#allocation12]  }
   0xb   :  { %s25_s26 = sshll.u32 %s2546_s25, 4  ;;  %s51_s28 = sshll.u32 %s2547_s27, 4  ;;  %s26_s26 = int_to_ptr.vmem [resolvable:$true] %s25_s26  ;;  %s52_s28 = int_to_ptr.vmem [resolvable:$true] %s51_s28 }
   0xc   :  { %31 = dma.hbm_to_vmem [thread:$0]  %s24_s1, 512, %s26_s26, [#allocation8], %s2543_s17, %s2543_s17, %s2544_s18  }
   0xd   :  { %s82_s30 = sshll.u32 %s3051_s7, 4  ;;  %s2548_s10 = smov [#allocation15]   ;;  %s83_s30 = int_to_ptr.hbm [resolvable:$true] %s82_s30 }
   0xe   :  { %57 = dma.hbm_to_vmem [thread:$0]  %s50_s3, 256, %s52_s28, [#allocation11], %s2543_s17, %s2543_s17, %s2544_s18  }
   0xf   :  { %s84_s2 = sshll.u32 %s2548_s10, 4  ;;  %s85_s2 = int_to_ptr.vmem [resolvable:$true] %s84_s2 }
  0x10   :  { %87 = dma.hbm_to_vmem [thread:$0]  %s83_s30, 128, %s85_s2, [#allocation14]  }
  0x11   :  { %2534 = dma.done.wait [#allocation8], 512  }
  0x12   :  { %2535 = vsyncadd [#allocation8], 4294966784 }
  0x13   :  { %2536 = dma.done.wait [#allocation11], 1280  }
  0x14   :  { %2537 = vsyncadd [#allocation11], 4294966016 }
  0x15   :  { %2538 = dma.done.wait [#allocation14], 640  }
  0x16   :  { %2539 = vsyncadd [#allocation14], 4294966656  ;;  %vm256_vm0 = vcmask 257024   ;;  %v2549_v0 = vmov 0   ;;  %v2169_v1 = vld [vmem:[#allocation10 + $0x38] sm:$0xff]  ;;  %v2168_v3 = vld [vmem:[#allocation10 + $0x30] sm:$0xff] }
  0x17   :  { %257 = vst.msk [vmem:[#allocation5] sm:$0xf] %vm256_vm0, %v2549_v0  ;;  %v2629_v2 = vld [vmem:[#allocation13 + $0x8] sm:$0xff]  ;;  %217 = vmatpush.bf16.msra.mxu0 %v2169_v1  ;;  %v2632_v4 = vld [vmem:[#allocation13] sm:$0xff]  ;;  %vm254_vm1 = vcmask 261120   ;;  %v2167_v5 = vld [vmem:[#allocation10 + $0x28] sm:$0xff] }
  0x18   :  { %281 = vmatpush.bf16.msra.mxu1 %v2629_v2  ;;  %359 = vmatpush.bf16.msra.mxu2 %v2629_v2  ;;  %v2166_v7 = vld [vmem:[#allocation10 + $0x20] sm:$0xff]  ;;  %v2165_v8 = vld [vmem:[#allocation10 + $0x18] sm:$0xff]  ;;  %v2164_v9 = vld [vmem:[#allocation10 + $0x10] sm:$0xff]  ;;  %v2550_v14 = vmov 0.0   ;;  %s2551_s12 = smov 32   ;;  %s2552_s13 = smov 96  }
  0x19   :  { %438 = vmatpush.bf16.msra.mxu3 %v2629_v2  ;;  %v2163_v10 = vld [vmem:[#allocation10 + $0x8] sm:$0xff]  ;;  %v2162_v11 = vld [vmem:[#allocation10] sm:$0xff]  ;;  %255 = vst.msk [vmem:[#allocation4] sm:$0xff] %vm254_vm1, %v2550_v14  ;;  %v2653_v16 = vld [vmem:[%s3048_s4] ss:$0 sm:$0xff]  ;;  %s2019_s22 = sshll.u32 %s3053_s9, 4  ;;  %s2020_s22 = int_to_ptr.hbm [resolvable:$true] %s2019_s22 }
  0x1a   :  { %v2158_v12 = vld [vmem:[#allocation7] sm:$0xff] }
  0x1b   :  { %218 = vmatpush.bf16.msra.mxu0 %v2168_v3 }
  0x1c   :  { %282 = vmatpush.bf16.msra.mxu1 %v2632_v4  ;;  %360 = vmatpush.bf16.msra.mxu2 %v2632_v4 }
  0x1d   :  { %439 = vmatpush.bf16.msra.mxu3 %v2632_v4 }
  0x1e   :  { %v259_v6 = vld [vmem:[#allocation5] sm:$0xf] }
  0x1f   :  { %219 = vmatpush.bf16.msra.mxu0 %v2167_v5  ;;  %2087 = vmatmul.msk.bf16.vlgmr.msra.gmra.mxu1 %vm254_vm1, %v259_v6 }
  0x20   :  { %517 = vmatpush.bf16.msrb.mxu1 %v2629_v2  ;;  %596 = vmatpush.bf16.msrb.mxu2 %v2629_v2  ;;  %v309_v21 = vld [vmem:[#allocation4] sm:$0xff] }
  0x21   :  { %675 = vmatpush.bf16.msrb.mxu3 %v2629_v2 }
  0x23   :  { %220 = vmatpush.bf16.msra.mxu0 %v2166_v7 }
  0x24   :  { %518 = vmatpush.bf16.msrb.mxu1 %v2632_v4  ;;  %597 = vmatpush.bf16.msrb.mxu2 %v2632_v4 }
  0x25   :  { %676 = vmatpush.bf16.msrb.mxu3 %v2632_v4 }
  0x27   :  { %221 = vmatpush.bf16.msra.mxu0 %v2165_v8 }
  0x28   :  { %754 = vmatpush.bf16.msra.mxu1 %v2629_v2 }
  0x2b   :  { %222 = vmatpush.bf16.msra.mxu0 %v2164_v9 }
  0x2c   :  { %755 = vmatpush.bf16.msra.mxu1 %v2632_v4 }
  0x2f   :  { %223 = vmatpush.bf16.msra.mxu0 %v2163_v10 }
  0x33   :  { %224 = vmatpush.bf16.msra.mxu0 %v2162_v11 }
  0x36   :  { %225 = vmatmul.bf16.vlgmr.msra.gmra.mxu0 %v2158_v12 }
  0x9c   :  { %v284_v13 = vpop.f32.mrf.mxu1 }
  0xa4   :  { %v286_v15 = vpop.f32.mrf.mxu1 }
  0xb3   :  { %v226_v17 = vpop.f32.mrf.mxu0 }
  0xb4   :  { %v227_v18 = vadd.f32 %v2653_v16, %v226_v17 }
  0xb6   :  { %v288_v19 = vadd.f32 %v284_v13, %v227_v18 }
  0xb8   :  { %2198 = vtanh.f32 %v288_v19  ;;  %v2088_v22 = vmul.f32 -1.442695, %v288_v19  ;;  %v2159_v19 = vld [vmem:[#allocation7 + $0x8] sm:$0xff] }
  0xb9   :  { %230 = vmatmul.bf16.gmra.mxu0 %v2159_v19 }
  0xba   :  { %2200 = vpow2.f32 %v2088_v22 }
  0xbb   :  { %v228_v49 = vpop.f32.mrf.mxu0 }
  0xbc   :  { %v229_v50 = vadd.f32 %v2653_v16, %v228_v49 }
  0xbe   :  { %v2199_v20 = vpop.eup %2198 }
  0xbf   :  { %316 = vrot.lane.b32.xlu0 %v2199_v20, %s2543_s17 }
  0xc0   :  { %v2201_v23 = vpop.eup %2200 }
  0xc1   :  { %v292_v24 = vadd.f32 1.0, %v2201_v23 }
  0xc3   :  { %2202 = vrcp.f32 %v292_v24  ;;  %v304_v30 = vand.u32 2147483648, %v292_v24  ;;  %vm298_vm3 = vweird.f32 %v292_v24  ;;  %v302_v31 = vand.u32 2147483647, %v292_v24 }
  0xc5   :  { %v305_v33 = vor.u32 1.1754944e-38, %v304_v30  ;;  %vm303_vm5 = vcmp.eq.f32.partialorder %v302_v31, 8.507059e+37 }
  0xc7   :  { %311 = vrot.lane.b32.xlu0 %v309_v21, %s2551_s12 }
  0xc9   :  { %v2203_v25 = vpop.eup %2202 }
  0xca   :  { %v294_v26 = vmul.f32 %v2203_v25, %v292_v24  ;;  %vm299_vm2 = vweird.f32 %v2203_v25 }
  0xcb   :  { %vm300_vm4 = vmor %vm298_vm3, %vm299_vm2 }
  0xcc   :  { %v295_v27 = vsub.f32 1.0, %v294_v26 }
  0xce   :  { %v296_v28 = vmul.f32 %v2203_v25, %v295_v27 }
  0xd0   :  { %v297_v29 = vadd.f32 %v2203_v25, %v296_v28 }
  0xd2   :  { %v301_v32 = vsel %vm300_vm4, %v2203_v25, %v297_v29 }
  0xd3   :  { %v306_v35 = vsel %vm303_vm5, %v305_v33, %v301_v32 }
 0x131   :  { %v317_v34 = vpop.permute.xlu0 %316 }
 0x132   :  { %v319_v36 = vmul.f32 %v317_v34, %v306_v35 }
 0x134   :  { %321 = vrot.lane.b32.xlu1 %v319_v36, %s2551_s12 }
 0x136   :  { %v231_v22 = vpop.f32.mrf.mxu0 }
 0x137   :  { %v232_v23 = vadd.f32 %v2653_v16, %v231_v22 }
 0x139   :  { %v312_v37 = vpop.permute.xlu0 %311 }
 0x13a   :  { %v314_v38 = vmul.f32 %v312_v37, %v306_v35 }
 0x1a6   :  { %v322_v39 = vpop.permute.xlu1 %321 }
 0x1a7   :  { %v324_v40 = vadd.f32 %v322_v39, %v314_v38 }
 0x1a9   :  { %2204 = vtanh.f32 %v324_v40 }
 0x1af   :  { %v2205_v41 = vpop.eup %2204 }
 0x1b0   :  { %327 = vrot.lane.b32.xlu1 %v2205_v41, %s2543_s17 }
 0x222   :  { %v328_v42 = vpop.permute.xlu1 %327 }
 0x223   :  { %v2660_v43 = vmul.f32 %v328_v42, %v306_v35 }
 0x225   :  { %v336_v44 = vpack.c.bf16 %v2660_v43, %v2660_v43 }
 0x227   :  { %338 = vrot.lane.b32.xlu2 %v336_v44, %s2551_s12 }
 0x22f   :  { %332 = vrot.lane.b32.xlu2 %v324_v40, %s2552_s13 }
 0x281   :  { %v339_v45 = vpop.permute.xlu2 %338 }
 0x282   :  { %341 = vst.msk [vmem:[#allocation5] sm:$0xf] %vm256_vm0, %v339_v45 }
 0x289   :  { %v349_v46 = vld [vmem:[#allocation5] sm:$0xf]  ;;  %v333_v47 = vpop.permute.xlu2 %332 }
 0x28a   :  { %335 = vst.msk [vmem:[#allocation4] sm:$0xff] %vm254_vm1, %v333_v47  ;;  %2089 = vmatmul.msk.bf16.vlgmr.msra.gmra.mxu2 %vm254_vm1, %v349_v46 }
 0x28b   :  { %833 = vmatpush.bf16.msra.mxu2 %v2629_v2 }
 0x28f   :  { %834 = vmatpush.bf16.msra.mxu2 %v2632_v4 }
 0x291   :  { %v387_v48 = vld [vmem:[#allocation4] sm:$0xff] }
 0x292   :  { %389 = vrot.lane.b32.xlu1 %v387_v48, %s2551_s12 }
 0x304   :  { %v390_v7 = vpop.permute.xlu1 %389 }
 0x30d   :  { %v362_v51 = vpop.f32.mrf.mxu2 }
 0x30e   :  { %v366_v52 = vadd.f32 %v362_v51, %v229_v50 }
 0x310   :  { %2206 = vtanh.f32 %v366_v52  ;;  %v2090_v55 = vmul.f32 -1.442695, %v366_v52 }
 0x312   :  { %2208 = vpow2.f32 %v2090_v55 }
 0x315   :  { %v364_v53 = vpop.f32.mrf.mxu2 }
 0x316   :  { %v2207_v54 = vpop.eup %2206 }
 0x317   :  { %394 = vrot.lane.b32.xlu0 %v2207_v54, %s2543_s17 }
 0x318   :  { %v2209_v56 = vpop.eup %2208 }
 0x319   :  { %v370_v57 = vadd.f32 1.0, %v2209_v56  ;;  %v233_v56 = vpop.f32.mrf.mxu0 }
 0x31b   :  { %2210 = vrcp.f32 %v370_v57  ;;  %v382_v63 = vand.u32 2147483648, %v370_v57  ;;  %vm376_vm7 = vweird.f32 %v370_v57  ;;  %v380_v1 = vand.u32 2147483647, %v370_v57 }
 0x31d   :  { %v383_v3 = vor.u32 1.1754944e-38, %v382_v63  ;;  %vm381_vm9 = vcmp.eq.f32.partialorder %v380_v1, 8.507059e+37 }
 0x321   :  { %v2211_v58 = vpop.eup %2210 }
 0x322   :  { %v372_v59 = vmul.f32 %v2211_v58, %v370_v57  ;;  %vm377_vm6 = vweird.f32 %v2211_v58  ;;  %v234_v57 = vadd.f32 %v2653_v16, %v233_v56 }
 0x323   :  { %vm378_vm8 = vmor %vm376_vm7, %vm377_vm6 }
 0x324   :  { %v373_v60 = vsub.f32 1.0, %v372_v59 }
 0x326   :  { %v374_v61 = vmul.f32 %v2211_v58, %v373_v60 }
 0x328   :  { %v375_v62 = vadd.f32 %v2211_v58, %v374_v61 }
 0x32a   :  { %v379_v2 = vsel %vm378_vm8, %v2211_v58, %v375_v62 }
 0x32b   :  { %v384_v5 = vsel %vm381_vm9, %v383_v3, %v379_v2 }
 0x32c   :  { %v392_v8 = vmul.f32 %v390_v7, %v384_v5 }
 0x389   :  { %v395_v4 = vpop.permute.xlu0 %394 }
 0x38a   :  { %v397_v6 = vmul.f32 %v395_v4, %v384_v5 }
 0x38c   :  { %399 = vrot.lane.b32.xlu2 %v397_v6, %s2551_s12 }
 0x3e6   :  { %v400_v9 = vpop.permute.xlu2 %399 }
 0x3e7   :  { %v402_v10 = vadd.f32 %v400_v9, %v392_v8 }
 0x3e9   :  { %2212 = vtanh.f32 %v402_v10  ;;  %410 = vrot.lane.b32.xlu2 %v402_v10, %s2552_s13 }
 0x3ef   :  { %v2213_v11 = vpop.eup %2212 }
 0x3f0   :  { %405 = vrot.lane.b32.xlu0 %v2213_v11, %s2543_s17 }
 0x443   :  { %v411_v12 = vpop.permute.xlu2 %410 }
 0x444   :  { %413 = vst.msk [vmem:[#allocation4] sm:$0xff] %vm254_vm1, %v411_v12 }
 0x44b   :  { %v466_v18 = vld [vmem:[#allocation4] sm:$0xff] }
 0x462   :  { %v406_v13 = vpop.permute.xlu0 %405 }
 0x463   :  { %v2678_v15 = vmul.f32 %v406_v13, %v384_v5 }
 0x465   :  { %v414_v17 = vpack.c.bf16 %v2678_v15, %v2678_v15 }
 0x467   :  { %416 = vrot.lane.b32.xlu1 %v414_v17, %s2551_s12 }
 0x46f   :  { %468 = vrot.lane.b32.xlu1 %v466_v18, %s2551_s12 }
 0x4d9   :  { %v417_v20 = vpop.permute.xlu1 %416 }
 0x4da   :  { %419 = vst.msk [vmem:[#allocation5] sm:$0xf] %vm256_vm0, %v417_v20 }
 0x4e1   :  { %v428_v21 = vld [vmem:[#allocation5] sm:$0xf]  ;;  %v469_v44 = vpop.permute.xlu1 %468 }
 0x4e2   :  { %2091 = vmatmul.msk.bf16.vlgmr.msra.gmra.mxu3 %vm254_vm1, %v428_v21 }
 0x565   :  { %v441_v24 = vpop.f32.mrf.mxu3 }
 0x566   :  { %v445_v25 = vadd.f32 %v441_v24, %v232_v23 }
 0x568   :  { %2214 = vtanh.f32 %v445_v25  ;;  %v2092_v28 = vmul.f32 -1.442695, %v445_v25 }
 0x56a   :  { %2216 = vpow2.f32 %v2092_v28 }
 0x56d   :  { %v443_v26 = vpop.f32.mrf.mxu3 }
 0x56e   :  { %v2215_v27 = vpop.eup %2214 }
 0x56f   :  { %473 = vrot.lane.b32.xlu0 %v2215_v27, %s2543_s17  ;;  %v2160_v27 = vld [vmem:[#allocation7 + $0x10] sm:$0xff] }
 0x570   :  { %v2217_v29 = vpop.eup %2216  ;;  %235 = vmatmul.bf16.gmra.mxu0 %v2160_v27 }
 0x571   :  { %v449_v30 = vadd.f32 1.0, %v2217_v29 }
 0x573   :  { %2218 = vrcp.f32 %v449_v30  ;;  %v461_v36 = vand.u32 2147483648, %v449_v30  ;;  %vm455_vm11 = vweird.f32 %v449_v30  ;;  %v459_v37 = vand.u32 2147483647, %v449_v30 }
 0x575   :  { %v462_v39 = vor.u32 1.1754944e-38, %v461_v36  ;;  %vm460_vm13 = vcmp.eq.f32.partialorder %v459_v37, 8.507059e+37 }
 0x579   :  { %v2219_v31 = vpop.eup %2218 }
 0x57a   :  { %v451_v32 = vmul.f32 %v2219_v31, %v449_v30  ;;  %vm456_vm10 = vweird.f32 %v2219_v31 }
 0x57b   :  { %vm457_vm12 = vmor %vm455_vm11, %vm456_vm10 }
 0x57c   :  { %v452_v33 = vsub.f32 1.0, %v451_v32 }
 0x57e   :  { %v453_v34 = vmul.f32 %v2219_v31, %v452_v33 }
 0x580   :  { %v454_v35 = vadd.f32 %v2219_v31, %v453_v34 }
 0x582   :  { %v458_v38 = vsel %vm457_vm12, %v2219_v31, %v454_v35 }
 0x583   :  { %v463_v41 = vsel %vm460_vm13, %v462_v39, %v458_v38 }
 0x584   :  { %v471_v45 = vmul.f32 %v469_v44, %v463_v41 }
 0x5e1   :  { %v474_v40 = vpop.permute.xlu0 %473 }
 0x5e2   :  { %v476_v42 = vmul.f32 %v474_v40, %v463_v41 }
 0x5e4   :  { %478 = vrot.lane.b32.xlu2 %v476_v42, %s2551_s12 }
 0x5ed   :  { %v236_v30 = vpop.f32.mrf.mxu0 }
 0x5ee   :  { %v237_v31 = vadd.f32 %v2653_v16, %v236_v30 }
 0x63e   :  { %v479_v46 = vpop.permute.xlu2 %478 }
 0x63f   :  { %v481_v47 = vadd.f32 %v479_v46, %v471_v45 }
 0x641   :  { %2220 = vtanh.f32 %v481_v47  ;;  %489 = vrot.lane.b32.xlu2 %v481_v47, %s2552_s13 }
 0x647   :  { %v2221_v48 = vpop.eup %2220 }
 0x648   :  { %484 = vrot.lane.b32.xlu0 %v2221_v48, %s2543_s17 }
 0x69b   :  { %v490_v49 = vpop.permute.xlu2 %489 }
 0x69c   :  { %492 = vst.msk [vmem:[#allocation4] sm:$0xff] %vm254_vm1, %v490_v49 }
 0x6a3   :  { %v545_v53 = vld [vmem:[#allocation4] sm:$0xff] }
 0x6ba   :  { %v485_v50 = vpop.permute.xlu0 %484 }
 0x6bb   :  { %v2692_v51 = vmul.f32 %v485_v50, %v463_v41 }
 0x6bd   :  { %v493_v52 = vpack.c.bf16 %v2692_v51, %v2692_v51 }
 0x6bf   :  { %495 = vrot.lane.b32.xlu1 %v493_v52, %s2551_s12 }
 0x6c7   :  { %547 = vrot.lane.b32.xlu1 %v545_v53, %s2551_s12 }
 0x731   :  { %v496_v54 = vpop.permute.xlu1 %495 }
 0x732   :  { %498 = vst.msk [vmem:[#allocation5] sm:$0xf] %vm256_vm0, %v496_v54 }
 0x739   :  { %v507_v55 = vld [vmem:[#allocation5] sm:$0xf]  ;;  %v548_v17 = vpop.permute.xlu1 %547 }
 0x73a   :  { %2093 = vmatmul.msk.bf16.vlgmr.msrb.gmra.mxu1 %vm254_vm1, %v507_v55 }
 0x7b7   :  { %v520_v58 = vpop.f32.mrf.mxu1 }
 0x7b8   :  { %v524_v59 = vadd.f32 %v520_v58, %v234_v57 }
 0x7ba   :  { %2222 = vtanh.f32 %v524_v59  ;;  %v2094_v62 = vmul.f32 -1.442695, %v524_v59 }
 0x7bc   :  { %2224 = vpow2.f32 %v2094_v62 }
 0x7bf   :  { %v522_v60 = vpop.f32.mrf.mxu1 }
 0x7c0   :  { %v2223_v61 = vpop.eup %2222 }
 0x7c1   :  { %552 = vrot.lane.b32.xlu0 %v2223_v61, %s2543_s17 }
 0x7c2   :  { %v2225_v63 = vpop.eup %2224 }
 0x7c3   :  { %v528_v1 = vadd.f32 1.0, %v2225_v63 }
 0x7c5   :  { %2226 = vrcp.f32 %v528_v1  ;;  %v540_v7 = vand.u32 2147483648, %v528_v1  ;;  %vm534_vm15 = vweird.f32 %v528_v1  ;;  %v538_v8 = vand.u32 2147483647, %v528_v1 }
 0x7c7   :  { %v541_v10 = vor.u32 1.1754944e-38, %v540_v7  ;;  %vm539_vm3 = vcmp.eq.f32.partialorder %v538_v8, 8.507059e+37 }
 0x7cb   :  { %v2227_v2 = vpop.eup %2226 }
 0x7cc   :  { %v530_v3 = vmul.f32 %v2227_v2, %v528_v1  ;;  %vm535_vm14 = vweird.f32 %v2227_v2 }
 0x7cd   :  { %vm536_vm2 = vmor %vm534_vm15, %vm535_vm14 }
 0x7ce   :  { %v531_v4 = vsub.f32 1.0, %v530_v3 }
 0x7d0   :  { %v532_v5 = vmul.f32 %v2227_v2, %v531_v4 }
 0x7d2   :  { %v533_v6 = vadd.f32 %v2227_v2, %v532_v5 }
 0x7d4   :  { %v537_v9 = vsel %vm536_vm2, %v2227_v2, %v533_v6  ;;  %v238_v2 = vpop.f32.mrf.mxu0 }
 0x7d5   :  { %v542_v12 = vsel %vm539_vm3, %v541_v10, %v537_v9  ;;  %v239_v3 = vadd.f32 %v2653_v16, %v238_v2 }
 0x7d6   :  { %v550_v18 = vmul.f32 %v548_v17, %v542_v12 }
 0x833   :  { %v553_v11 = vpop.permute.xlu0 %552 }
 0x834   :  { %v555_v13 = vmul.f32 %v553_v11, %v542_v12 }
 0x836   :  { %557 = vrot.lane.b32.xlu2 %v555_v13, %s2551_s12 }
 0x890   :  { %v558_v19 = vpop.permute.xlu2 %557 }
 0x891   :  { %v560_v20 = vadd.f32 %v558_v19, %v550_v18 }
 0x893   :  { %2228 = vtanh.f32 %v560_v20  ;;  %568 = vrot.lane.b32.xlu2 %v560_v20, %s2552_s13 }
 0x899   :  { %v2229_v21 = vpop.eup %2228 }
 0x89a   :  { %563 = vrot.lane.b32.xlu0 %v2229_v21, %s2543_s17 }
 0x8ed   :  { %v569_v22 = vpop.permute.xlu2 %568 }
 0x8ee   :  { %571 = vst.msk [vmem:[#allocation4] sm:$0xff] %vm254_vm1, %v569_v22 }
 0x8f5   :  { %v624_v26 = vld [vmem:[#allocation4] sm:$0xff] }
 0x90c   :  { %v564_v23 = vpop.permute.xlu0 %563 }
 0x90d   :  { %v2706_v24 = vmul.f32 %v564_v23, %v542_v12 }
 0x90f   :  { %v572_v25 = vpack.c.bf16 %v2706_v24, %v2706_v24 }
 0x911   :  { %574 = vrot.lane.b32.xlu1 %v572_v25, %s2551_s12 }
 0x919   :  { %626 = vrot.lane.b32.xlu1 %v624_v26, %s2551_s12 }
 0x983   :  { %v575_v28 = vpop.permute.xlu1 %574 }
 0x984   :  { %577 = vst.msk [vmem:[#allocation5] sm:$0xf] %vm256_vm0, %v575_v28 }
 0x98b   :  { %v586_v29 = vld [vmem:[#allocation5] sm:$0xf]  ;;  %v627_v53 = vpop.permute.xlu1 %626 }
 0x98c   :  { %2095 = vmatmul.msk.bf16.vlgmr.msrb.gmra.mxu2 %vm254_vm1, %v586_v29 }
 0xa0f   :  { %v599_v32 = vpop.f32.mrf.mxu2 }
 0xa10   :  { %v603_v33 = vadd.f32 %v599_v32, %v237_v31 }
 0xa12   :  { %2230 = vtanh.f32 %v603_v33  ;;  %v2096_v36 = vmul.f32 -1.442695, %v603_v33  ;;  %v2161_v33 = vld [vmem:[#allocation7 + $0x18] sm:$0xff] }
 0xa13   :  { %240 = vmatmul.bf16.gmra.mxu0 %v2161_v33 }
 0xa14   :  { %2232 = vpow2.f32 %v2096_v36 }
 0xa17   :  { %v601_v34 = vpop.f32.mrf.mxu2 }
 0xa18   :  { %v2231_v35 = vpop.eup %2230 }
 0xa19   :  { %631 = vrot.lane.b32.xlu0 %v2231_v35, %s2543_s17 }
 0xa1a   :  { %v2233_v37 = vpop.eup %2232 }
 0xa1b   :  { %v607_v38 = vadd.f32 1.0, %v2233_v37 }
 0xa1d   :  { %2234 = vrcp.f32 %v607_v38  ;;  %v619_v45 = vand.u32 2147483648, %v607_v38  ;;  %vm613_vm5 = vweird.f32 %v607_v38  ;;  %v617_v46 = vand.u32 2147483647, %v607_v38 }
 0xa1f   :  { %v620_v48 = vor.u32 1.1754944e-38, %v619_v45  ;;  %vm618_vm7 = vcmp.eq.f32.partialorder %v617_v46, 8.507059e+37 }
 0xa23   :  { %v2235_v39 = vpop.eup %2234 }
 0xa24   :  { %v609_v40 = vmul.f32 %v2235_v39, %v607_v38  ;;  %vm614_vm4 = vweird.f32 %v2235_v39 }
 0xa25   :  { %vm615_vm6 = vmor %vm613_vm5, %vm614_vm4 }
 0xa26   :  { %v610_v41 = vsub.f32 1.0, %v609_v40 }
 0xa28   :  { %v611_v42 = vmul.f32 %v2235_v39, %v610_v41 }
 0xa2a   :  { %v612_v44 = vadd.f32 %v2235_v39, %v611_v42 }
 0xa2c   :  { %v616_v47 = vsel %vm615_vm6, %v2235_v39, %v612_v44 }
 0xa2d   :  { %v621_v50 = vsel %vm618_vm7, %v620_v48, %v616_v47 }
 0xa2e   :  { %v629_v54 = vmul.f32 %v627_v53, %v621_v50 }
 0xa8b   :  { %v632_v49 = vpop.permute.xlu0 %631 }
 0xa8c   :  { %v634_v52 = vmul.f32 %v632_v49, %v621_v50 }
 0xa8e   :  { %636 = vrot.lane.b32.xlu2 %v634_v52, %s2551_s12 }
 0xa90   :  { %v241_v40 = vpop.f32.mrf.mxu0 }
 0xa91   :  { %v242_v41 = vadd.f32 %v2653_v16, %v241_v40  ;;  %v2172_v40 = vld [vmem:[#allocation12] sm:$0xff] }
 0xae8   :  { %v637_v55 = vpop.permute.xlu2 %636 }
 0xae9   :  { %v639_v56 = vadd.f32 %v637_v55, %v629_v54 }
 0xaeb   :  { %2236 = vtanh.f32 %v639_v56  ;;  %647 = vrot.lane.b32.xlu2 %v639_v56, %s2552_s13 }
 0xaf1   :  { %v2237_v57 = vpop.eup %2236 }
 0xaf2   :  { %642 = vrot.lane.b32.xlu0 %v2237_v57, %s2543_s17 }
 0xb45   :  { %v648_v58 = vpop.permute.xlu2 %647 }
 0xb46   :  { %650 = vst.msk [vmem:[#allocation4] sm:$0xff] %vm254_vm1, %v648_v58 }
 0xb4d   :  { %v703_v62 = vld [vmem:[#allocation4] sm:$0xff] }
 0xb64   :  { %v643_v59 = vpop.permute.xlu0 %642 }
 0xb65   :  { %v2720_v60 = vmul.f32 %v643_v59, %v621_v50 }
 0xb67   :  { %v651_v61 = vpack.c.bf16 %v2720_v60, %v2720_v60 }
 0xb69   :  { %653 = vrot.lane.b32.xlu1 %v651_v61, %s2551_s12 }
 0xb71   :  { %705 = vrot.lane.b32.xlu1 %v703_v62, %s2551_s12 }
 0xbdb   :  { %v654_v63 = vpop.permute.xlu1 %653 }
 0xbdc   :  { %656 = vst.msk [vmem:[#allocation5] sm:$0xf] %vm256_vm0, %v654_v63 }
 0xbe3   :  { %v665_v1 = vld [vmem:[#allocation5] sm:$0xf]  ;;  %v706_v27 = vpop.permute.xlu1 %705 }
 0xbe4   :  { %2097 = vmatmul.msk.bf16.vlgmr.msrb.gmra.mxu3 %vm254_vm1, %v665_v1 }
 0xc67   :  { %v678_v4 = vpop.f32.mrf.mxu3 }
 0xc68   :  { %v682_v5 = vadd.f32 %v678_v4, %v239_v3 }
 0xc6a   :  { %2238 = vtanh.f32 %v682_v5  ;;  %v2098_v8 = vmul.f32 -1.442695, %v682_v5 }
 0xc6c   :  { %2240 = vpow2.f32 %v2098_v8 }
 0xc6f   :  { %v680_v6 = vpop.f32.mrf.mxu3 }
 0xc70   :  { %v2239_v7 = vpop.eup %2238 }
 0xc71   :  { %710 = vrot.lane.b32.xlu0 %v2239_v7, %s2543_s17 }
 0xc72   :  { %v2241_v9 = vpop.eup %2240 }
 0xc73   :  { %v686_v10 = vadd.f32 1.0, %v2241_v9 }
 0xc75   :  { %2242 = vrcp.f32 %v686_v10  ;;  %v698_v19 = vand.u32 2147483648, %v686_v10  ;;  %vm692_vm9 = vweird.f32 %v686_v10  ;;  %v696_v20 = vand.u32 2147483647, %v686_v10 }
 0xc77   :  { %v699_v22 = vor.u32 1.1754944e-38, %v698_v19  ;;  %vm697_vm11 = vcmp.eq.f32.partialorder %v696_v20, 8.507059e+37 }
 0xc7b   :  { %v2243_v11 = vpop.eup %2242 }
 0xc7c   :  { %v688_v12 = vmul.f32 %v2243_v11, %v686_v10  ;;  %vm693_vm8 = vweird.f32 %v2243_v11 }
 0xc7d   :  { %vm694_vm10 = vmor %vm692_vm9, %vm693_vm8 }
 0xc7e   :  { %v689_v13 = vsub.f32 1.0, %v688_v12 }
 0xc80   :  { %v690_v17 = vmul.f32 %v2243_v11, %v689_v13 }
 0xc82   :  { %v691_v18 = vadd.f32 %v2243_v11, %v690_v17 }
 0xc84   :  { %v695_v21 = vsel %vm694_vm10, %v2243_v11, %v691_v18  ;;  %v243_v18 = vpop.f32.mrf.mxu0 }
 0xc85   :  { %v700_v25 = vsel %vm697_vm11, %v699_v22, %v695_v21  ;;  %v244_v19 = vadd.f32 %v2653_v16, %v243_v18 }
 0xc86   :  { %v708_v28 = vmul.f32 %v706_v27, %v700_v25 }
 0xce3   :  { %v711_v23 = vpop.permute.xlu0 %710 }
 0xce4   :  { %v713_v26 = vmul.f32 %v711_v23, %v700_v25 }
 0xce6   :  { %715 = vrot.lane.b32.xlu2 %v713_v26, %s2551_s12 }
 0xd40   :  { %v716_v29 = vpop.permute.xlu2 %715 }
 0xd41   :  { %v718_v30 = vadd.f32 %v716_v29, %v708_v28 }
 0xd43   :  { %2244 = vtanh.f32 %v718_v30  ;;  %726 = vrot.lane.b32.xlu2 %v718_v30, %s2552_s13 }
 0xd49   :  { %v2245_v31 = vpop.eup %2244 }
 0xd4a   :  { %721 = vrot.lane.b32.xlu0 %v2245_v31, %s2543_s17 }
 0xd9d   :  { %v727_v32 = vpop.permute.xlu2 %726 }
 0xd9e   :  { %729 = vst.msk [vmem:[#allocation4] sm:$0xff] %vm254_vm1, %v727_v32 }
 0xda5   :  { %v782_v37 = vld [vmem:[#allocation4] sm:$0xff] }
 0xdbc   :  { %v722_v34 = vpop.permute.xlu0 %721 }
 0xdbd   :  { %v2734_v35 = vmul.f32 %v722_v34, %v700_v25 }
 0xdbf   :  { %v730_v36 = vpack.c.bf16 %v2734_v35, %v2734_v35 }
 0xdc1   :  { %732 = vrot.lane.b32.xlu1 %v730_v36, %s2551_s12 }
 0xdc9   :  { %784 = vrot.lane.b32.xlu1 %v782_v37, %s2551_s12 }
 0xe33   :  { %v733_v38 = vpop.permute.xlu1 %732 }
 0xe34   :  { %735 = vst.msk [vmem:[#allocation5] sm:$0xf] %vm256_vm0, %v733_v38 }
 0xe3b   :  { %v744_v39 = vld [vmem:[#allocation5] sm:$0xf]  ;;  %v785_v1 = vpop.permute.xlu1 %784 }
 0xe3c   :  { %2099 = vmatmul.msk.bf16.vlgmr.msra.gmra.mxu1 %vm254_vm1, %v744_v39  ;;  %v2173_v39 = vld [vmem:[#allocation12 + $0x8] sm:$0xff] }
 0xe3d   :  { %956 = vmatpush.bf16.msra.mxu3 %v2173_v39 }
 0xe41   :  { %957 = vmatpush.bf16.msra.mxu3 %v2172_v40 }
 0xeb9   :  { %v757_v42 = vpop.f32.mrf.mxu1 }
 0xeba   :  { %v761_v44 = vadd.f32 %v757_v42, %v242_v41 }
 0xebc   :  { %2246 = vtanh.f32 %v761_v44  ;;  %v2100_v47 = vmul.f32 -1.442695, %v761_v44 }
 0xebe   :  { %2248 = vpow2.f32 %v2100_v47 }
 0xec1   :  { %v759_v45 = vpop.f32.mrf.mxu1 }
 0xec2   :  { %v2247_v46 = vpop.eup %2246 }
 0xec3   :  { %789 = vrot.lane.b32.xlu0 %v2247_v46, %s2543_s17 }
 0xec4   :  { %v2249_v48 = vpop.eup %2248 }
 0xec5   :  { %v765_v49 = vadd.f32 1.0, %v2249_v48 }
 0xec7   :  { %2250 = vrcp.f32 %v765_v49  ;;  %v777_v56 = vand.u32 2147483648, %v765_v49  ;;  %vm771_vm13 = vweird.f32 %v765_v49  ;;  %v775_v57 = vand.u32 2147483647, %v765_v49 }
 0xec9   :  { %v778_v59 = vor.u32 1.1754944e-38, %v777_v56  ;;  %vm776_vm15 = vcmp.eq.f32.partialorder %v775_v57, 8.507059e+37 }
 0xecd   :  { %v2251_v50 = vpop.eup %2250 }
 0xece   :  { %v767_v52 = vmul.f32 %v2251_v50, %v765_v49  ;;  %vm772_vm12 = vweird.f32 %v2251_v50 }
 0xecf   :  { %vm773_vm14 = vmor %vm771_vm13, %vm772_vm12 }
 0xed0   :  { %v768_v53 = vsub.f32 1.0, %v767_v52 }
 0xed2   :  { %v769_v54 = vmul.f32 %v2251_v50, %v768_v53 }
 0xed4   :  { %v770_v55 = vadd.f32 %v2251_v50, %v769_v54  ;;  %v2775_v54 = vld [vmem:[#allocation13 + $0x18] sm:$0xff] }
 0xed5   :  { %1017 = vmatpush.bf16.msrb.mxu1 %v2775_v54  ;;  %1148 = vmatpush.bf16.msrb.mxu2 %v2775_v54 }
 0xed6   :  { %v774_v58 = vsel %vm773_vm14, %v2251_v50, %v770_v55  ;;  %1773 = vmatpush.bf16.msrb.mxu0 %v2775_v54  ;;  %v2781_v55 = vld [vmem:[#allocation13 + $0x10] sm:$0xff] }
 0xed7   :  { %v779_v62 = vsel %vm776_vm15, %v778_v59, %v774_v58  ;;  %v2800_v58 = vld [vmem:[%s3048_s4 + $0x1] ss:$0 sm:$0xff] }
 0xed8   :  { %v787_v2 = vmul.f32 %v785_v1, %v779_v62 }
 0xed9   :  { %1018 = vmatpush.bf16.msrb.mxu1 %v2781_v55  ;;  %1149 = vmatpush.bf16.msrb.mxu2 %v2781_v55 }
 0xeda   :  { %1774 = vmatpush.bf16.msrb.mxu0 %v2781_v55 }
 0xedd   :  { %1273 = vmatpush.bf16.msra.mxu1 %v2775_v54 }
 0xee1   :  { %1274 = vmatpush.bf16.msra.mxu1 %v2781_v55 }
 0xf35   :  { %v790_v61 = vpop.permute.xlu0 %789 }
 0xf36   :  { %v792_v63 = vmul.f32 %v790_v61, %v779_v62 }
 0xf38   :  { %794 = vrot.lane.b32.xlu2 %v792_v63, %s2551_s12 }
 0xf92   :  { %v795_v3 = vpop.permute.xlu2 %794 }
 0xf93   :  { %v797_v4 = vadd.f32 %v795_v3, %v787_v2 }
 0xf95   :  { %2252 = vtanh.f32 %v797_v4  ;;  %805 = vrot.lane.b32.xlu2 %v797_v4, %s2552_s13 }
 0xf9b   :  { %v2253_v5 = vpop.eup %2252 }
 0xf9c   :  { %800 = vrot.lane.b32.xlu0 %v2253_v5, %s2543_s17 }
 0xfef   :  { %v806_v6 = vpop.permute.xlu2 %805 }
 0xff0   :  { %808 = vst.msk [vmem:[#allocation4] sm:$0xff] %vm254_vm1, %v806_v6 }
 0xff7   :  { %v861_v10 = vld [vmem:[#allocation4] sm:$0xff] }
0x100e   :  { %v801_v7 = vpop.permute.xlu0 %800 }
0x100f   :  { %v2748_v8 = vmul.f32 %v801_v7, %v779_v62 }
0x1011   :  { %v809_v9 = vpack.c.bf16 %v2748_v8, %v2748_v8 }
0x1013   :  { %811 = vrot.lane.b32.xlu1 %v809_v9, %s2551_s12 }
0x101b   :  { %863 = vrot.lane.b32.xlu1 %v861_v10, %s2551_s12 }
0x1023   :  { %343 = vrot.lane.b32.xlu1 %v2660_v43, %s2551_s12 }
0x1085   :  { %v812_v11 = vpop.permute.xlu1 %811 }
0x1086   :  { %814 = vst.msk [vmem:[#allocation5] sm:$0xf] %vm256_vm0, %v812_v11 }
0x108d   :  { %v864_v12 = vpop.permute.xlu1 %863  ;;  %v823_v13 = vld [vmem:[#allocation5] sm:$0xf] }
0x108e   :  { %2101 = vmatmul.msk.bf16.vlgmr.msra.gmra.mxu2 %vm254_vm1, %v823_v13 }
0x108f   :  { %1398 = vmatpush.bf16.msra.mxu2 %v2775_v54 }
0x1093   :  { %1399 = vmatpush.bf16.msra.mxu2 %v2781_v55 }
0x1095   :  { %v344_v17 = vpop.permute.xlu1 %343 }
0x1096   :  { %346 = vst.msk [vmem:[#allocation3] sm:$0xff] %vm254_vm1, %v344_v17 }
0x109d   :  { %v907_v47 = vld [vmem:[#allocation3] sm:$0xff] }
0x1111   :  { %v836_v20 = vpop.f32.mrf.mxu2 }
0x1112   :  { %v840_v21 = vadd.f32 %v836_v20, %v244_v19 }
0x1114   :  { %2254 = vtanh.f32 %v840_v21  ;;  %v2102_v43 = vmul.f32 -1.442695, %v840_v21 }
0x1116   :  { %2256 = vpow2.f32 %v2102_v43 }
0x1119   :  { %v838_v22 = vpop.f32.mrf.mxu2 }
0x111a   :  { %v2255_v23 = vpop.eup %2254 }
0x111b   :  { %868 = vrot.lane.b32.xlu0 %v2255_v23, %s2543_s17 }
0x111c   :  { %v2257_v25 = vpop.eup %2256 }
0x111d   :  { %v844_v26 = vadd.f32 1.0, %v2257_v25 }
0x111f   :  { %2258 = vrcp.f32 %v844_v26  ;;  %v856_v32 = vand.u32 2147483648, %v844_v26  ;;  %vm850_vm3 = vweird.f32 %v844_v26  ;;  %v854_v16 = vand.u32 2147483647, %v844_v26 }
0x1121   :  { %v857_v34 = vor.u32 1.1754944e-38, %v856_v32  ;;  %vm855_vm5 = vcmp.eq.f32.partialorder %v854_v16, 8.507059e+37 }
0x1125   :  { %v2259_v27 = vpop.eup %2258 }
0x1126   :  { %v846_v28 = vmul.f32 %v2259_v27, %v844_v26  ;;  %vm851_vm2 = vweird.f32 %v2259_v27 }
0x1127   :  { %vm852_vm4 = vmor %vm850_vm3, %vm851_vm2 }
0x1128   :  { %v847_v29 = vsub.f32 1.0, %v846_v28 }
0x112a   :  { %v848_v30 = vmul.f32 %v2259_v27, %v847_v29 }
0x112c   :  { %v849_v31 = vadd.f32 %v2259_v27, %v848_v30 }
0x112e   :  { %v853_v33 = vsel %vm852_vm4, %v2259_v27, %v849_v31 }
0x112f   :  { %v858_v37 = vsel %vm855_vm5, %v857_v34, %v853_v33 }
0x1130   :  { %v866_v41 = vmul.f32 %v864_v12, %v858_v37 }
0x118d   :  { %v869_v36 = vpop.permute.xlu0 %868 }
0x118e   :  { %v871_v38 = vmul.f32 %v869_v36, %v858_v37 }
0x1190   :  { %873 = vrot.lane.b32.xlu2 %v871_v38, %s2551_s12 }
0x1198   :  { %421 = vrot.lane.b32.xlu2 %v2678_v15, %s2551_s12 }
0x11ea   :  { %v874_v42 = vpop.permute.xlu2 %873 }
0x11eb   :  { %v876_v44 = vadd.f32 %v874_v42, %v866_v41 }
0x11ed   :  { %2260 = vtanh.f32 %v876_v44  ;;  %884 = vrot.lane.b32.xlu1 %v876_v44, %s2552_s13 }
0x11f2   :  { %v422_v45 = vpop.permute.xlu2 %421 }
0x11f3   :  { %v2261_v46 = vpop.eup %2260  ;;  %425 = vst.msk [vmem:[#allocation3 + $0x8] sm:$0xff] %vm254_vm1, %v422_v45 }
0x11f4   :  { %879 = vrot.lane.b32.xlu0 %v2261_v46, %s2543_s17 }
0x11fa   :  { %v908_v48 = vld [vmem:[#allocation3 + $0x8] sm:$0xff] }
0x11fb   :  { %v915_v49 = vpack.c.bf16 %v908_v48, %v907_v47 }
0x11fd   :  { %2112 = vmatmul.msk.bf16.vlgmr.msra.gmra.mxu3 %vm254_vm1, %v915_v49 }
0x125f   :  { %v885_v15 = vpop.permute.xlu1 %884 }
0x1260   :  { %887 = vst.msk [vmem:[#allocation4] sm:$0xff] %vm254_vm1, %v885_v15 }
0x1261   :  { %987 = vst.msk [vmem:[#allocation4] sm:$0xff] %vm254_vm1, %v2550_v14 }
0x1266   :  { %v880_v50 = vpop.permute.xlu0 %879 }
0x1267   :  { %v2771_v52 = vmul.f32 %v880_v50, %v858_v37 }
0x1268   :  { %v1045_v14 = vld [vmem:[#allocation4] sm:$0xff] }
0x1269   :  { %v888_v53 = vpack.c.bf16 %v2771_v52, %v2771_v52 }
0x126b   :  { %890 = vrot.lane.b32.xlu0 %v888_v53, %s2551_s12 }
0x1273   :  { %1047 = vrot.lane.b32.xlu0 %v1045_v14, %s2551_s12 }
0x1280   :  { %v959_v59 = vpop.f32.mrf.mxu3 }
0x1281   :  { %v960_v61 = vadd.f32 %v2800_v58, %v959_v59 }
0x1288   :  { %v961_v34 = vpop.f32.mrf.mxu3 }
0x1289   :  { %v962_v36 = vadd.f32 %v2800_v58, %v961_v34 }
0x12dd   :  { %v891_v56 = vpop.permute.xlu0 %890 }
0x12de   :  { %893 = vst.msk [vmem:[#allocation5] sm:$0xf] %vm256_vm0, %v891_v56 }
0x12df   :  { %988 = vst.msk [vmem:[#allocation5] sm:$0xf] %vm256_vm0, %v2549_v0 }
0x12e5   :  { %v1048_v21 = vpop.permute.xlu0 %1047 }
0x12e6   :  { %v995_v57 = vld [vmem:[#allocation5] sm:$0xf] }
0x12e7   :  { %2124 = vmatmul.msk.bf16.vlgmr.msrb.gmra.mxu1 %vm254_vm1, %v995_v57 }
0x12e8   :  { %1523 = vmatpush.bf16.msrb.mxu1 %v2775_v54 }
0x12ec   :  { %1524 = vmatpush.bf16.msrb.mxu1 %v2781_v55 }
0x1364   :  { %v1020_v62 = vpop.f32.mrf.mxu1 }
0x1365   :  { %v1024_v63 = vadd.f32 %v1020_v62, %v960_v61 }
0x1367   :  { %2262 = vtanh.f32 %v1024_v63  ;;  %v2125_v2 = vmul.f32 -1.442695, %v1024_v63 }
0x1369   :  { %2264 = vpow2.f32 %v2125_v2 }
0x136c   :  { %v1022_v1 = vpop.f32.mrf.mxu1 }
0x136d   :  { %v2263_v0 = vpop.eup %2262 }
0x136e   :  { %1052 = vrot.lane.b32.xlu2 %v2263_v0, %s2543_s17 }
0x136f   :  { %v2265_v3 = vpop.eup %2264 }
0x1370   :  { %v1028_v4 = vadd.f32 1.0, %v2265_v3 }
0x1372   :  { %2266 = vrcp.f32 %v1028_v4  ;;  %v1040_v11 = vand.u32 2147483648, %v1028_v4  ;;  %vm1034_vm7 = vweird.f32 %v1028_v4  ;;  %v1038_v12 = vand.u32 2147483647, %v1028_v4 }
0x1374   :  { %v1041_v17 = vor.u32 1.1754944e-38, %v1040_v11  ;;  %vm1039_vm9 = vcmp.eq.f32.partialorder %v1038_v12, 8.507059e+37 }
0x1378   :  { %v2267_v5 = vpop.eup %2266 }
0x1379   :  { %v1030_v6 = vmul.f32 %v2267_v5, %v1028_v4  ;;  %vm1035_vm6 = vweird.f32 %v2267_v5 }
0x137a   :  { %vm1036_vm8 = vmor %vm1034_vm7, %vm1035_vm6 }
0x137b   :  { %v1031_v7 = vsub.f32 1.0, %v1030_v6 }
0x137d   :  { %v1032_v9 = vmul.f32 %v2267_v5, %v1031_v7 }
0x137f   :  { %v1033_v10 = vadd.f32 %v2267_v5, %v1032_v9 }
0x1381   :  { %v1037_v13 = vsel %vm1036_vm8, %v2267_v5, %v1033_v10 }
0x1382   :  { %v1042_v18 = vsel %vm1039_vm9, %v1041_v17, %v1037_v13 }
0x1383   :  { %v1050_v22 = vmul.f32 %v1048_v21, %v1042_v18 }
0x13c8   :  { %v1053_v19 = vpop.permute.xlu2 %1052 }
0x13c9   :  { %v1055_v20 = vmul.f32 %v1053_v19, %v1042_v18 }
0x13cb   :  { %1057 = vrot.lane.b32.xlu1 %v1055_v20, %s2551_s12 }
0x143d   :  { %v1058_v23 = vpop.permute.xlu1 %1057 }
0x143e   :  { %v1060_v43 = vadd.f32 %v1058_v23, %v1050_v22 }
0x1440   :  { %2268 = vtanh.f32 %v1060_v43  ;;  %1068 = vrot.lane.b32.xlu1 %v1060_v43, %s2552_s13 }
0x1446   :  { %v2269_v25 = vpop.eup %2268 }
0x1447   :  { %1063 = vrot.lane.b32.xlu2 %v2269_v25, %s2543_s17 }
0x14a1   :  { %v1064_v26 = vpop.permute.xlu2 %1063 }
0x14a2   :  { %v2807_v27 = vmul.f32 %v1064_v26, %v1042_v18 }
0x14a4   :  { %v1072_v28 = vpack.c.bf16 %v2807_v27, %v2807_v27 }
0x14a6   :  { %1074 = vrot.lane.b32.xlu0 %v1072_v28, %s2551_s12 }
0x14b2   :  { %v1069_v29 = vpop.permute.xlu1 %1068 }
0x14b3   :  { %1071 = vst.msk [vmem:[#allocation4] sm:$0xff] %vm254_vm1, %v1069_v29 }
0x14ba   :  { %v1176_v30 = vld [vmem:[#allocation4] sm:$0xff] }
0x14bb   :  { %1178 = vrot.lane.b32.xlu0 %v1176_v30, %s2551_s12 }
0x14c3   :  { %500 = vrot.lane.b32.xlu0 %v2692_v51, %s2551_s12 }
0x1518   :  { %v1075_v31 = vpop.permute.xlu0 %1074 }
0x1519   :  { %1077 = vst.msk [vmem:[#allocation5] sm:$0xf] %vm256_vm0, %v1075_v31 }
0x1520   :  { %v1138_v32 = vld [vmem:[#allocation5] sm:$0xf] }
0x1521   :  { %2128 = vmatmul.msk.bf16.vlgmr.msrb.gmra.mxu2 %vm254_vm1, %v1138_v32 }
0x1522   :  { %1648 = vmatpush.bf16.msrb.mxu2 %v2775_v54 }
0x1526   :  { %1649 = vmatpush.bf16.msrb.mxu2 %v2781_v55 }
0x152d   :  { %v1179_v16 = vpop.permute.xlu0 %1178 }
0x1535   :  { %v501_v33 = vpop.permute.xlu0 %500 }
0x1536   :  { %504 = vst.msk [vmem:[#allocation3 + $0x10] sm:$0xff] %vm254_vm1, %v501_v33 }
0x153d   :  { %v909_v0 = vld [vmem:[#allocation3 + $0x10] sm:$0xff] }
0x15a4   :  { %v1151_v37 = vpop.f32.mrf.mxu2 }
0x15a5   :  { %v1155_v38 = vadd.f32 %v1151_v37, %v962_v36 }
0x15a7   :  { %2270 = vtanh.f32 %v1155_v38  ;;  %v2129_v40 = vmul.f32 -1.442695, %v1155_v38 }
0x15a9   :  { %2272 = vpow2.f32 %v2129_v40 }
0x15ac   :  { %v1153_v51 = vpop.f32.mrf.mxu2 }
0x15ad   :  { %v2271_v39 = vpop.eup %2270 }
0x15ae   :  { %1183 = vrot.lane.b32.xlu2 %v2271_v39, %s2543_s17 }
0x15af   :  { %v2273_v41 = vpop.eup %2272 }
0x15b0   :  { %v1159_v42 = vadd.f32 1.0, %v2273_v41 }
0x15b2   :  { %2274 = vrcp.f32 %v1159_v42  ;;  %v1171_v49 = vand.u32 2147483648, %v1159_v42  ;;  %vm1165_vm11 = vweird.f32 %v1159_v42  ;;  %v1169_v15 = vand.u32 2147483647, %v1159_v42 }
0x15b4   :  { %v1172_v53 = vor.u32 1.1754944e-38, %v1171_v49  ;;  %vm1170_vm13 = vcmp.eq.f32.partialorder %v1169_v15, 8.507059e+37 }
0x15b8   :  { %v2275_v44 = vpop.eup %2274 }
0x15b9   :  { %v1161_v45 = vmul.f32 %v2275_v44, %v1159_v42  ;;  %vm1166_vm10 = vweird.f32 %v2275_v44 }
0x15ba   :  { %vm1167_vm12 = vmor %vm1165_vm11, %vm1166_vm10 }
0x15bb   :  { %v1162_v46 = vsub.f32 1.0, %v1161_v45 }
0x15bd   :  { %v1163_v47 = vmul.f32 %v2275_v44, %v1162_v46 }
0x15bf   :  { %v1164_v48 = vadd.f32 %v2275_v44, %v1163_v47 }
0x15c1   :  { %v1168_v50 = vsel %vm1167_vm12, %v2275_v44, %v1164_v48 }
0x15c2   :  { %v1173_v56 = vsel %vm1170_vm13, %v1172_v53, %v1168_v50 }
0x15c3   :  { %v1181_v59 = vmul.f32 %v1179_v16, %v1173_v56 }
0x1608   :  { %v1184_v14 = vpop.permute.xlu2 %1183 }
0x1609   :  { %v1186_v57 = vmul.f32 %v1184_v14, %v1173_v56 }
0x160b   :  { %1188 = vrot.lane.b32.xlu1 %v1186_v57, %s2551_s12 }
0x1613   :  { %579 = vrot.lane.b32.xlu1 %v2706_v24, %s2551_s12 }
0x167d   :  { %v1189_v61 = vpop.permute.xlu1 %1188 }
0x167e   :  { %v1191_v62 = vadd.f32 %v1189_v61, %v1181_v59 }
0x1680   :  { %2276 = vtanh.f32 %v1191_v62  ;;  %1199 = vrot.lane.b32.xlu0 %v1191_v62, %s2552_s13 }
0x1685   :  { %v580_v63 = vpop.permute.xlu1 %579 }
0x1686   :  { %v2277_v1 = vpop.eup %2276  ;;  %583 = vst.msk [vmem:[#allocation3 + $0x18] sm:$0xff] %vm254_vm1, %v580_v63 }
0x1687   :  { %1194 = vrot.lane.b32.xlu2 %v2277_v1, %s2543_s17 }
0x168d   :  { %v910_v2 = vld [vmem:[#allocation3 + $0x18] sm:$0xff] }
0x168e   :  { %v916_v3 = vpack.c.bf16 %v910_v2, %v909_v0 }
0x1690   :  { %2113 = vmatmul.msk.bf16.gmra.mxu3 %vm254_vm1, %v916_v3 }
0x16e1   :  { %v1195_v4 = vpop.permute.xlu2 %1194 }
0x16e2   :  { %v2830_v5 = vmul.f32 %v1195_v4, %v1173_v56 }
0x16e4   :  { %v1203_v24 = vpack.c.bf16 %v2830_v5, %v2830_v5 }
0x16e6   :  { %1205 = vrot.lane.b32.xlu2 %v1203_v24, %s2551_s12 }
0x16f2   :  { %v1200_v6 = vpop.permute.xlu0 %1199 }
0x16f3   :  { %1202 = vst.msk [vmem:[#allocation4] sm:$0xff] %vm254_vm1, %v1200_v6 }
0x16fa   :  { %v1301_v7 = vld [vmem:[#allocation4] sm:$0xff] }
0x16fb   :  { %1303 = vrot.lane.b32.xlu2 %v1301_v7, %s2551_s12 }
0x1713   :  { %v964_v11 = vpop.f32.mrf.mxu3 }
0x1714   :  { %v965_v12 = vadd.f32 %v2800_v58, %v964_v11 }
0x171b   :  { %v966_v48 = vpop.f32.mrf.mxu3 }
0x171c   :  { %v967_v49 = vadd.f32 %v2800_v58, %v966_v48 }
0x1740   :  { %v1206_v9 = vpop.permute.xlu2 %1205 }
0x1741   :  { %1208 = vst.msk [vmem:[#allocation5] sm:$0xf] %vm256_vm0, %v1206_v9 }
0x1748   :  { %v1263_v10 = vld [vmem:[#allocation5] sm:$0xf] }
0x1749   :  { %2132 = vmatmul.msk.bf16.vlgmr.msra.gmra.mxu1 %vm254_vm1, %v1263_v10 }
0x174a   :  { %1898 = vmatpush.bf16.msra.mxu1 %v2775_v54 }
0x174e   :  { %1899 = vmatpush.bf16.msra.mxu1 %v2781_v55 }
0x1755   :  { %v1304_v33 = vpop.permute.xlu2 %1303 }
0x17c6   :  { %v1276_v13 = vpop.f32.mrf.mxu1 }
0x17c7   :  { %v1280_v17 = vadd.f32 %v1276_v13, %v965_v12 }
0x17c9   :  { %2278 = vtanh.f32 %v1280_v17  ;;  %v2133_v20 = vmul.f32 -1.442695, %v1280_v17 }
0x17cb   :  { %2280 = vpow2.f32 %v2133_v20 }
0x17ce   :  { %v1278_v18 = vpop.f32.mrf.mxu1 }
0x17cf   :  { %v2279_v19 = vpop.eup %2278 }
0x17d0   :  { %1308 = vrot.lane.b32.xlu1 %v2279_v19, %s2543_s17 }
0x17d1   :  { %v2281_v21 = vpop.eup %2280 }
0x17d2   :  { %v1284_v22 = vadd.f32 1.0, %v2281_v21 }
0x17d4   :  { %2282 = vrcp.f32 %v1284_v22  ;;  %v1296_v26 = vand.u32 2147483648, %v1284_v22  ;;  %vm1290_vm15 = vweird.f32 %v1284_v22  ;;  %v1294_v28 = vand.u32 2147483647, %v1284_v22 }
0x17d6   :  { %v1297_v30 = vor.u32 1.1754944e-38, %v1296_v26  ;;  %vm1295_vm3 = vcmp.eq.f32.partialorder %v1294_v28, 8.507059e+37 }
0x17da   :  { %v2283_v23 = vpop.eup %2282 }
0x17db   :  { %v1286_v43 = vmul.f32 %v2283_v23, %v1284_v22  ;;  %vm1291_vm14 = vweird.f32 %v2283_v23 }
0x17dc   :  { %vm1292_vm2 = vmor %vm1290_vm15, %vm1291_vm14 }
0x17dd   :  { %v1287_v54 = vsub.f32 1.0, %v1286_v43 }
0x17df   :  { %v1288_v25 = vmul.f32 %v2283_v23, %v1287_v54 }
0x17e1   :  { %v1289_v55 = vadd.f32 %v2283_v23, %v1288_v25 }
0x17e3   :  { %v1293_v29 = vsel %vm1292_vm2, %v2283_v23, %v1289_v55 }
0x17e4   :  { %v1298_v32 = vsel %vm1295_vm3, %v1297_v30, %v1293_v29 }
0x17e5   :  { %v1306_v34 = vmul.f32 %v1304_v33, %v1298_v32 }
0x1842   :  { %v1309_v31 = vpop.permute.xlu1 %1308 }
0x1843   :  { %v1311_v16 = vmul.f32 %v1309_v31, %v1298_v32 }
0x1845   :  { %1313 = vrot.lane.b32.xlu0 %v1311_v16, %s2551_s12 }
0x18b7   :  { %v1314_v36 = vpop.permute.xlu0 %1313 }
0x18b8   :  { %v1316_v37 = vadd.f32 %v1314_v36, %v1306_v34 }
0x18ba   :  { %2284 = vtanh.f32 %v1316_v37  ;;  %1324 = vrot.lane.b32.xlu0 %v1316_v37, %s2552_s13 }
0x18c0   :  { %v2285_v38 = vpop.eup %2284 }
0x18c1   :  { %1319 = vrot.lane.b32.xlu1 %v2285_v38, %s2543_s17 }
0x192c   :  { %v1325_v51 = vpop.permute.xlu0 %1324 }
0x192d   :  { %1327 = vst.msk [vmem:[#allocation4] sm:$0xff] %vm254_vm1, %v1325_v51 }
0x1933   :  { %v1320_v39 = vpop.permute.xlu1 %1319 }
0x1934   :  { %v2847_v40 = vmul.f32 %v1320_v39, %v1298_v32  ;;  %v1426_v42 = vld [vmem:[#allocation4] sm:$0xff] }
0x1936   :  { %v1328_v41 = vpack.c.bf16 %v2847_v40, %v2847_v40 }
0x1938   :  { %1330 = vrot.lane.b32.xlu2 %v1328_v41, %s2551_s12 }
0x1940   :  { %1428 = vrot.lane.b32.xlu2 %v1426_v42, %s2551_s12 }
0x1948   :  { %658 = vrot.lane.b32.xlu2 %v2720_v60, %s2551_s12 }
0x1992   :  { %v1331_v44 = vpop.permute.xlu2 %1330 }
0x1993   :  { %1333 = vst.msk [vmem:[#allocation5] sm:$0xf] %vm256_vm0, %v1331_v44 }
0x199a   :  { %v1429_v45 = vpop.permute.xlu2 %1428  ;;  %v1388_v46 = vld [vmem:[#allocation5] sm:$0xf] }
0x199b   :  { %2136 = vmatmul.msk.bf16.vlgmr.msra.gmra.mxu2 %vm254_vm1, %v1388_v46 }
0x19a2   :  { %v659_v47 = vpop.permute.xlu2 %658 }
0x19a3   :  { %662 = vst.msk [vmem:[#allocation3 + $0x20] sm:$0xff] %vm254_vm1, %v659_v47 }
0x19aa   :  { %v911_v17 = vld [vmem:[#allocation3 + $0x20] sm:$0xff] }
0x1a1e   :  { %v1401_v15 = vpop.f32.mrf.mxu2 }
0x1a1f   :  { %v1405_v50 = vadd.f32 %v1401_v15, %v967_v49 }
0x1a21   :  { %2286 = vtanh.f32 %v1405_v50  ;;  %v2137_v60 = vmul.f32 -1.442695, %v1405_v50 }
0x1a23   :  { %2288 = vpow2.f32 %v2137_v60 }
0x1a26   :  { %v1403_v53 = vpop.f32.mrf.mxu2 }
0x1a27   :  { %v2287_v14 = vpop.eup %2286 }
0x1a28   :  { %1433 = vrot.lane.b32.xlu1 %v2287_v14, %s2543_s17 }
0x1a29   :  { %v2289_v56 = vpop.eup %2288 }
0x1a2a   :  { %v1409_v57 = vadd.f32 1.0, %v2289_v56 }
0x1a2c   :  { %2290 = vrcp.f32 %v1409_v57  ;;  %v1421_v0 = vand.u32 2147483648, %v1409_v57  ;;  %vm1415_vm5 = vweird.f32 %v1409_v57  ;;  %v1419_v2 = vand.u32 2147483647, %v1409_v57 }
0x1a2e   :  { %v1422_v4 = vor.u32 1.1754944e-38, %v1421_v0  ;;  %vm1420_vm7 = vcmp.eq.f32.partialorder %v1419_v2, 8.507059e+37 }
0x1a32   :  { %v2291_v59 = vpop.eup %2290 }
0x1a33   :  { %v1411_v61 = vmul.f32 %v2291_v59, %v1409_v57  ;;  %vm1416_vm4 = vweird.f32 %v2291_v59 }
0x1a34   :  { %vm1417_vm6 = vmor %vm1415_vm5, %vm1416_vm4 }
0x1a35   :  { %v1412_v62 = vsub.f32 1.0, %v1411_v61 }
0x1a37   :  { %v1413_v63 = vmul.f32 %v2291_v59, %v1412_v62 }
0x1a39   :  { %v1414_v1 = vadd.f32 %v2291_v59, %v1413_v63 }
0x1a3b   :  { %v1418_v3 = vsel %vm1417_vm6, %v2291_v59, %v1414_v1 }
0x1a3c   :  { %v1423_v6 = vsel %vm1420_vm7, %v1422_v4, %v1418_v3 }
0x1a3d   :  { %v1431_v9 = vmul.f32 %v1429_v45, %v1423_v6 }
0x1a9a   :  { %v1434_v24 = vpop.permute.xlu1 %1433 }
0x1a9b   :  { %v1436_v7 = vmul.f32 %v1434_v24, %v1423_v6 }
0x1a9d   :  { %1438 = vrot.lane.b32.xlu0 %v1436_v7, %s2551_s12 }
0x1aa5   :  { %737 = vrot.lane.b32.xlu0 %v2734_v35, %s2551_s12 }
0x1b0f   :  { %v1439_v10 = vpop.permute.xlu0 %1438 }
0x1b10   :  { %v1441_v11 = vadd.f32 %v1439_v10, %v1431_v9 }
0x1b12   :  { %2292 = vtanh.f32 %v1441_v11  ;;  %1449 = vrot.lane.b32.xlu2 %v1441_v11, %s2552_s13 }
0x1b17   :  { %v738_v12 = vpop.permute.xlu0 %737 }
0x1b18   :  { %v2293_v13 = vpop.eup %2292  ;;  %741 = vst.msk [vmem:[#allocation3 + $0x28] sm:$0xff] %vm254_vm1, %v738_v12 }
0x1b19   :  { %1444 = vrot.lane.b32.xlu1 %v2293_v13, %s2543_s17 }
0x1b1f   :  { %v912_v18 = vld [vmem:[#allocation3 + $0x28] sm:$0xff] }
0x1b20   :  { %v917_v19 = vpack.c.bf16 %v912_v18, %v911_v17 }
0x1b22   :  { %2114 = vmatmul.msk.bf16.gmra.mxu3 %vm254_vm1, %v917_v19 }
0x1b6c   :  { %v1450_v20 = vpop.permute.xlu2 %1449 }
0x1b6d   :  { %1452 = vst.msk [vmem:[#allocation4] sm:$0xff] %vm254_vm1, %v1450_v20 }
0x1b74   :  { %v1551_v23 = vld [vmem:[#allocation4] sm:$0xff] }
0x1b8b   :  { %v1445_v35 = vpop.permute.xlu1 %1444 }
0x1b8c   :  { %v2868_v21 = vmul.f32 %v1445_v35, %v1423_v6 }
0x1b8e   :  { %v1453_v22 = vpack.c.bf16 %v2868_v21, %v2868_v21 }
0x1b90   :  { %1455 = vrot.lane.b32.xlu1 %v1453_v22, %s2551_s12 }
0x1b98   :  { %1553 = vrot.lane.b32.xlu1 %v1551_v23, %s2551_s12 }
0x1ba5   :  { %v969_v25 = vpop.f32.mrf.mxu3 }
0x1ba6   :  { %v970_v55 = vadd.f32 %v2800_v58, %v969_v25 }
0x1bad   :  { %v971_v1 = vpop.f32.mrf.mxu3 }
0x1bae   :  { %v972_v0 = vadd.f32 %v2800_v58, %v971_v1 }
0x1c02   :  { %v1456_v43 = vpop.permute.xlu1 %1455 }
0x1c03   :  { %1458 = vst.msk [vmem:[#allocation5] sm:$0xf] %vm256_vm0, %v1456_v43 }
0x1c0a   :  { %v1513_v54 = vld [vmem:[#allocation5] sm:$0xf]  ;;  %v1554_v47 = vpop.permute.xlu1 %1553 }
0x1c0b   :  { %2140 = vmatmul.msk.bf16.vlgmr.msrb.gmra.mxu1 %vm254_vm1, %v1513_v54 }
0x1c88   :  { %v1526_v26 = vpop.f32.mrf.mxu1 }
0x1c89   :  { %v1530_v28 = vadd.f32 %v1526_v26, %v970_v55 }
0x1c8b   :  { %2294 = vtanh.f32 %v1530_v28  ;;  %v2141_v31 = vmul.f32 -1.442695, %v1530_v28 }
0x1c8d   :  { %2296 = vpow2.f32 %v2141_v31 }
0x1c90   :  { %v1528_v29 = vpop.f32.mrf.mxu1 }
0x1c91   :  { %v2295_v30 = vpop.eup %2294 }
0x1c92   :  { %1558 = vrot.lane.b32.xlu0 %v2295_v30, %s2543_s17 }
0x1c93   :  { %v2297_v32 = vpop.eup %2296 }
0x1c94   :  { %v1534_v16 = vadd.f32 1.0, %v2297_v32 }
0x1c96   :  { %2298 = vrcp.f32 %v1534_v16  ;;  %v1546_v51 = vand.u32 2147483648, %v1534_v16  ;;  %vm1540_vm9 = vweird.f32 %v1534_v16  ;;  %v1544_v39 = vand.u32 2147483647, %v1534_v16 }
0x1c98   :  { %v1547_v42 = vor.u32 1.1754944e-38, %v1546_v51  ;;  %vm1545_vm11 = vcmp.eq.f32.partialorder %v1544_v39, 8.507059e+37 }
0x1c9c   :  { %v2299_v33 = vpop.eup %2298 }
0x1c9d   :  { %v1536_v34 = vmul.f32 %v2299_v33, %v1534_v16  ;;  %vm1541_vm8 = vweird.f32 %v2299_v33 }
0x1c9e   :  { %vm1542_vm10 = vmor %vm1540_vm9, %vm1541_vm8 }
0x1c9f   :  { %v1537_v36 = vsub.f32 1.0, %v1536_v34 }
0x1ca1   :  { %v1538_v37 = vmul.f32 %v2299_v33, %v1537_v36 }
0x1ca3   :  { %v1539_v38 = vadd.f32 %v2299_v33, %v1538_v37 }
0x1ca5   :  { %v1543_v41 = vsel %vm1542_vm10, %v2299_v33, %v1539_v38 }
0x1ca6   :  { %v1548_v45 = vsel %vm1545_vm11, %v1547_v42, %v1543_v41 }
0x1ca7   :  { %v1556_v48 = vmul.f32 %v1554_v47, %v1548_v45 }
0x1d04   :  { %v1559_v44 = vpop.permute.xlu0 %1558 }
0x1d05   :  { %v1561_v46 = vmul.f32 %v1559_v44, %v1548_v45 }
0x1d07   :  { %1563 = vrot.lane.b32.xlu2 %v1561_v46, %s2551_s12 }
0x1d61   :  { %v1564_v49 = vpop.permute.xlu2 %1563 }
0x1d62   :  { %v1566_v15 = vadd.f32 %v1564_v49, %v1556_v48 }
0x1d64   :  { %2300 = vtanh.f32 %v1566_v15  ;;  %1574 = vrot.lane.b32.xlu2 %v1566_v15, %s2552_s13 }
0x1d6a   :  { %v2301_v50 = vpop.eup %2300 }
0x1d6b   :  { %1569 = vrot.lane.b32.xlu0 %v2301_v50, %s2543_s17 }
0x1dbe   :  { %v1575_v53 = vpop.permute.xlu2 %1574 }
0x1dbf   :  { %1577 = vst.msk [vmem:[#allocation4] sm:$0xff] %vm254_vm1, %v1575_v53 }
0x1dc6   :  { %v1676_v57 = vld [vmem:[#allocation4] sm:$0xff] }
0x1ddd   :  { %v1570_v14 = vpop.permute.xlu0 %1569 }
0x1dde   :  { %v2882_v60 = vmul.f32 %v1570_v14, %v1548_v45 }
0x1de0   :  { %v1578_v56 = vpack.c.bf16 %v2882_v60, %v2882_v60 }
0x1de2   :  { %1580 = vrot.lane.b32.xlu1 %v1578_v56, %s2551_s12 }
0x1dea   :  { %1678 = vrot.lane.b32.xlu1 %v1676_v57, %s2551_s12 }
0x1df2   :  { %816 = vrot.lane.b32.xlu1 %v2748_v8, %s2551_s12 }
0x1e54   :  { %v1581_v59 = vpop.permute.xlu1 %1580 }
0x1e55   :  { %1583 = vst.msk [vmem:[#allocation5] sm:$0xf] %vm256_vm0, %v1581_v59 }
0x1e5c   :  { %v1679_v61 = vpop.permute.xlu1 %1678  ;;  %v1638_v62 = vld [vmem:[#allocation5] sm:$0xf] }
0x1e5d   :  { %2144 = vmatmul.msk.bf16.vlgmr.msrb.gmra.mxu2 %vm254_vm1, %v1638_v62 }
0x1e64   :  { %v817_v63 = vpop.permute.xlu1 %816 }
0x1e65   :  { %820 = vst.msk [vmem:[#allocation3 + $0x30] sm:$0xff] %vm254_vm1, %v817_v63 }
0x1e6c   :  { %v913_v28 = vld [vmem:[#allocation3 + $0x30] sm:$0xff] }
0x1ee0   :  { %v1651_v2 = vpop.f32.mrf.mxu2 }
0x1ee1   :  { %v1655_v3 = vadd.f32 %v1651_v2, %v972_v0 }
0x1ee3   :  { %2302 = vtanh.f32 %v1655_v3  ;;  %v2145_v8 = vmul.f32 -1.442695, %v1655_v3 }
0x1ee5   :  { %2304 = vpow2.f32 %v2145_v8 }
0x1ee8   :  { %v1653_v4 = vpop.f32.mrf.mxu2 }
0x1ee9   :  { %v2303_v24 = vpop.eup %2302 }
0x1eea   :  { %1683 = vrot.lane.b32.xlu0 %v2303_v24, %s2543_s17 }
0x1eeb   :  { %v2305_v6 = vpop.eup %2304 }
0x1eec   :  { %v1659_v7 = vadd.f32 1.0, %v2305_v6 }
0x1eee   :  { %2306 = vrcp.f32 %v1659_v7  ;;  %v1671_v17 = vand.u32 2147483648, %v1659_v7  ;;  %vm1665_vm13 = vweird.f32 %v1659_v7  ;;  %v1669_v18 = vand.u32 2147483647, %v1659_v7 }
0x1ef0   :  { %v1672_v20 = vor.u32 1.1754944e-38, %v1671_v17  ;;  %vm1670_vm15 = vcmp.eq.f32.partialorder %v1669_v18, 8.507059e+37 }
0x1ef4   :  { %v2307_v9 = vpop.eup %2306 }
0x1ef5   :  { %v1661_v10 = vmul.f32 %v2307_v9, %v1659_v7  ;;  %vm1666_vm12 = vweird.f32 %v2307_v9 }
0x1ef6   :  { %vm1667_vm14 = vmor %vm1665_vm13, %vm1666_vm12 }
0x1ef7   :  { %v1662_v11 = vsub.f32 1.0, %v1661_v10 }
0x1ef9   :  { %v1663_v12 = vmul.f32 %v2307_v9, %v1662_v11 }
0x1efb   :  { %v1664_v13 = vadd.f32 %v2307_v9, %v1663_v12 }
0x1efd   :  { %v1668_v19 = vsel %vm1667_vm14, %v2307_v9, %v1664_v13 }
0x1efe   :  { %v1673_v22 = vsel %vm1670_vm15, %v1672_v20, %v1668_v19  ;;  %v2188_v20 = vld [vmem:[%s3049_s5] ss:$0 sm:$0xff] }
0x1eff   :  { %v1681_v43 = vmul.f32 %v1679_v61, %v1673_v22 }
0x1f5c   :  { %v1684_v35 = vpop.permute.xlu0 %1683 }
0x1f5d   :  { %v1686_v23 = vmul.f32 %v1684_v35, %v1673_v22 }
0x1f5f   :  { %1688 = vrot.lane.b32.xlu2 %v1686_v23, %s2551_s12  ;;  %v2130_v23 = vmul.f32 -1.442695, %v2830_v5 }
0x1f67   :  { %895 = vrot.lane.b32.xlu2 %v2771_v52, %s2551_s12 }
0x1fb9   :  { %v1689_v54 = vpop.permute.xlu2 %1688 }
0x1fba   :  { %v1691_v25 = vadd.f32 %v1689_v54, %v1681_v43  ;;  %v2138_v54 = vmul.f32 -1.442695, %v2868_v21 }
0x1fbc   :  { %2308 = vtanh.f32 %v1691_v25  ;;  %1699 = vrot.lane.b32.xlu1 %v1691_v25, %s2552_s13 }
0x1fc1   :  { %v896_v55 = vpop.permute.xlu2 %895 }
0x1fc2   :  { %v2309_v26 = vpop.eup %2308  ;;  %899 = vst.msk [vmem:[#allocation3 + $0x38] sm:$0xff] %vm254_vm1, %v896_v55 }
0x1fc3   :  { %1694 = vrot.lane.b32.xlu0 %v2309_v26, %s2543_s17 }
0x1fc9   :  { %v914_v29 = vld [vmem:[#allocation3 + $0x38] sm:$0xff] }
0x1fca   :  { %v918_v30 = vpack.c.bf16 %v914_v29, %v913_v28 }
0x1fcc   :  { %2115 = vmatmul.msk.bf16.gmra.mxu3 %vm254_vm1, %v918_v30 }
0x202e   :  { %v1700_v31 = vpop.permute.xlu1 %1699 }
0x202f   :  { %1702 = vst.msk [vmem:[#allocation4] sm:$0xff] %vm254_vm1, %v1700_v31 }
0x2035   :  { %v1695_v52 = vpop.permute.xlu0 %1694 }
0x2036   :  { %v2903_v32 = vmul.f32 %v1695_v52, %v1673_v22  ;;  %v1801_v33 = vld [vmem:[#allocation4] sm:$0xff]  ;;  %v2126_v22 = vmul.f32 -1.442695, %v2807_v27 }
0x2038   :  { %v1703_v16 = vpack.c.bf16 %v2903_v32, %v2903_v32 }
0x203a   :  { %1705 = vrot.lane.b32.xlu0 %v1703_v16, %s2551_s12 }
0x2042   :  { %1803 = vrot.lane.b32.xlu0 %v1801_v33, %s2551_s12 }
0x204f   :  { %v974_v37 = vpop.f32.mrf.mxu3 }
0x2050   :  { %v975_v38 = vadd.f32 %v2800_v58, %v974_v37 }
0x2057   :  { %v976_v11 = vpop.f32.mrf.mxu3 }
0x2058   :  { %v977_v12 = vadd.f32 %v2800_v58, %v976_v11 }
0x20ac   :  { %v1706_v34 = vpop.permute.xlu0 %1705 }
0x20ad   :  { %1708 = vst.msk [vmem:[#allocation5] sm:$0xf] %vm256_vm0, %v1706_v34 }
0x20b4   :  { %v1763_v36 = vld [vmem:[#allocation5] sm:$0xf]  ;;  %v1804_v63 = vpop.permute.xlu0 %1803 }
0x20b5   :  { %2148 = vmatmul.msk.bf16.vlgmr.msrb.gmra.mxu0 %vm254_vm1, %v1763_v36 }
0x2132   :  { %v1776_v51 = vpop.f32.mrf.mxu0 }
0x2133   :  { %v1780_v39 = vadd.f32 %v1776_v51, %v975_v38 }
0x2135   :  { %2310 = vtanh.f32 %v1780_v39  ;;  %v2149_v44 = vmul.f32 -1.442695, %v1780_v39 }
0x2137   :  { %2312 = vpow2.f32 %v2149_v44 }
0x213a   :  { %v1778_v41 = vpop.f32.mrf.mxu0 }
0x213b   :  { %v2311_v42 = vpop.eup %2310 }
0x213c   :  { %1808 = vrot.lane.b32.xlu2 %v2311_v42, %s2543_s17 }
0x213d   :  { %v2313_v45 = vpop.eup %2312 }
0x213e   :  { %v1784_v46 = vadd.f32 1.0, %v2313_v45 }
0x2140   :  { %2314 = vrcp.f32 %v1784_v46  ;;  %v1796_v53 = vand.u32 2147483648, %v1784_v46  ;;  %vm1790_vm3 = vweird.f32 %v1784_v46  ;;  %v1794_v14 = vand.u32 2147483647, %v1784_v46 }
0x2142   :  { %v1797_v57 = vor.u32 1.1754944e-38, %v1796_v53  ;;  %vm1795_vm5 = vcmp.eq.f32.partialorder %v1794_v14, 8.507059e+37 }
0x2146   :  { %v2315_v47 = vpop.eup %2314 }
0x2147   :  { %v1786_v48 = vmul.f32 %v2315_v47, %v1784_v46  ;;  %vm1791_vm2 = vweird.f32 %v2315_v47 }
0x2148   :  { %vm1792_vm4 = vmor %vm1790_vm3, %vm1791_vm2 }
0x2149   :  { %v1787_v49 = vsub.f32 1.0, %v1786_v48 }
0x214b   :  { %v1788_v15 = vmul.f32 %v2315_v47, %v1787_v49 }
0x214d   :  { %v1789_v50 = vadd.f32 %v2315_v47, %v1788_v15 }
0x214f   :  { %v1793_v56 = vsel %vm1792_vm4, %v2315_v47, %v1789_v50 }
0x2150   :  { %v1798_v61 = vsel %vm1795_vm5, %v1797_v57, %v1793_v56 }
0x2151   :  { %v1806_v1 = vmul.f32 %v1804_v63, %v1798_v61 }
0x2196   :  { %v1809_v59 = vpop.permute.xlu2 %1808 }
0x2197   :  { %v1811_v62 = vmul.f32 %v1809_v59, %v1798_v61 }
0x2199   :  { %1813 = vrot.lane.b32.xlu1 %v1811_v62, %s2551_s12 }
0x220b   :  { %v1814_v0 = vpop.permute.xlu1 %1813 }
0x220c   :  { %v1816_v2 = vadd.f32 %v1814_v0, %v1806_v1 }
0x220e   :  { %2316 = vtanh.f32 %v1816_v2  ;;  %1824 = vrot.lane.b32.xlu1 %v1816_v2, %s2552_s13 }
0x2214   :  { %v2317_v3 = vpop.eup %2316 }
0x2215   :  { %1819 = vrot.lane.b32.xlu2 %v2317_v3, %s2543_s17 }
0x226f   :  { %v1820_v4 = vpop.permute.xlu2 %1819 }
0x2270   :  { %v2916_v24 = vmul.f32 %v1820_v4, %v1798_v61 }
0x2272   :  { %v1828_v8 = vpack.c.bf16 %v2916_v24, %v2916_v24 }
0x2274   :  { %1830 = vrot.lane.b32.xlu0 %v1828_v8, %s2551_s12 }
0x2280   :  { %v1825_v6 = vpop.permute.xlu1 %1824 }
0x2281   :  { %1827 = vst.msk [vmem:[#allocation4] sm:$0xff] %vm254_vm1, %v1825_v6 }
0x2288   :  { %v1926_v7 = vld [vmem:[#allocation4] sm:$0xff] }
0x2289   :  { %1928 = vrot.lane.b32.xlu0 %v1926_v7, %s2551_s12 }
0x22e6   :  { %v1831_v9 = vpop.permute.xlu0 %1830 }
0x22e7   :  { %1833 = vst.msk [vmem:[#allocation5] sm:$0xf] %vm256_vm0, %v1831_v9 }
0x22ee   :  { %v1888_v10 = vld [vmem:[#allocation5] sm:$0xf] }
0x22ef   :  { %2152 = vmatmul.msk.bf16.vlgmr.msra.gmra.mxu1 %vm254_vm1, %v1888_v10 }
0x236c   :  { %v1901_v13 = vpop.f32.mrf.mxu1 }
0x236d   :  { %v1905_v17 = vadd.f32 %v1901_v13, %v977_v12 }
0x236f   :  { %2318 = vtanh.f32 %v1905_v17  ;;  %v2153_v35 = vmul.f32 -1.442695, %v1905_v17 }
0x2371   :  { %2320 = vpow2.f32 %v2153_v35 }
0x2372   :  { %2322 = vpow2.f32 %v2126_v22 }
0x2373   :  { %2324 = vpow2.f32 %v2130_v23 }
0x2374   :  { %v1903_v18 = vpop.f32.mrf.mxu1 }
0x2375   :  { %v2319_v19 = vpop.eup %2318 }
0x2376   :  { %1933 = vrot.lane.b32.xlu2 %v2319_v19, %s2543_s17  ;;  %v2134_v19 = vmul.f32 -1.442695, %v2847_v40 }
0x2377   :  { %v2321_v58 = vpop.eup %2320 }
0x2378   :  { %v1909_v43 = vadd.f32 1.0, %v2321_v58  ;;  %v2323_v25 = vpop.eup %2322  ;;  %v2146_v58 = vmul.f32 -1.442695, %v2903_v32 }
0x2379   :  { %v2325_v55 = vpop.eup %2324  ;;  %v1081_v26 = vadd.f32 1.0, %v2323_v25 }
0x237a   :  { %2326 = vrcp.f32 %v1909_v43  ;;  %v1212_v28 = vadd.f32 1.0, %v2325_v55  ;;  %v1921_v39 = vand.u32 2147483648, %v1909_v43  ;;  %vm1915_vm7 = vweird.f32 %v1909_v43 }
0x237b   :  { %2328 = vpow2.f32 %v2138_v54  ;;  %v1919_v41 = vand.u32 2147483647, %v1909_v43  ;;  %vm1087_vm12 = vweird.f32 %v1081_v26  ;;  %v1093_v56 = vand.u32 2147483648, %v1081_v26 }
0x237c   :  { %2330 = vrcp.f32 %v1081_v26  ;;  %v1922_v47 = vor.u32 1.1754944e-38, %v1921_v39  ;;  %v1224_v57 = vand.u32 2147483648, %v1212_v28  ;;  %v1091_v59 = vand.u32 2147483647, %v1081_v26 }
0x237d   :  { %2332 = vrcp.f32 %v1212_v28  ;;  %vm1920_vm9 = vcmp.eq.f32.partialorder %v1919_v41, 8.507059e+37  ;;  %vm1218_vm14 = vweird.f32 %v1212_v28  ;;  %v1222_v61 = vand.u32 2147483647, %v1212_v28 }
0x237e   :  { %1099 = vrot.lane.b32.xlu2 %v2188_v20, %s2552_s13  ;;  %v1094_v0 = vor.u32 1.1754944e-38, %v1093_v56  ;;  %v1225_v2 = vor.u32 1.1754944e-38, %v1224_v57  ;;  %vm1092_vm2 = vcmp.eq.f32.partialorder %v1091_v59, 8.507059e+37  ;;  %v2142_v20 = vmul.f32 -1.442695, %v2882_v60 }
0x237f   :  { %vm1223_vm3 = vcmp.eq.f32.partialorder %v1222_v61, 8.507059e+37  ;;  %v2150_v54 = vmul.f32 -1.442695, %v2916_v24 }
0x2380   :  { %v2327_v29 = vpop.eup %2326 }
0x2381   :  { %v2329_v30 = vpop.eup %2328  ;;  %v1911_v31 = vmul.f32 %v2327_v29, %v1909_v43  ;;  %vm1916_vm6 = vweird.f32 %v2327_v29 }
0x2382   :  { %v1462_v27 = vadd.f32 1.0, %v2329_v30  ;;  %v2331_v52 = vpop.eup %2330  ;;  %vm1917_vm8 = vmor %vm1915_vm7, %vm1916_vm6 }
0x2383   :  { %v1912_v5 = vsub.f32 1.0, %v1911_v31  ;;  %v2333_v16 = vpop.eup %2332  ;;  %v1083_v33 = vmul.f32 %v2331_v52, %v1081_v26  ;;  %vm1088_vm10 = vweird.f32 %v2331_v52  ;;  %v1929_v31 = vpop.permute.xlu0 %1928 }
0x2384   :  { %2334 = vrcp.f32 %v1462_v27  ;;  %v1214_v36 = vmul.f32 %v2333_v16, %v1212_v28  ;;  %vm1219_vm11 = vweird.f32 %v2333_v16  ;;  %vm1089_vm13 = vmor %vm1087_vm12, %vm1088_vm10  ;;  %v1474_v10 = vand.u32 2147483648, %v1462_v27 }
0x2385   :  { %v1913_v34 = vmul.f32 %v2327_v29, %v1912_v5  ;;  %v1084_v21 = vsub.f32 1.0, %v1083_v33  ;;  %vm1220_vm15 = vmor %vm1218_vm14, %vm1219_vm11  ;;  %vm1468_vm5 = vweird.f32 %v1462_v27  ;;  %v1472_v11 = vand.u32 2147483647, %v1462_v27 }
0x2386   :  { %v1215_v38 = vsub.f32 1.0, %v1214_v36  ;;  %v1475_v13 = vor.u32 1.1754944e-38, %v1474_v10  ;;  %2336 = vpow2.f32 %v2134_v19 }
0x2387   :  { %v1914_v37 = vadd.f32 %v2327_v29, %v1913_v34  ;;  %v1085_v42 = vmul.f32 %v2331_v52, %v1084_v21  ;;  %vm1473_vm7 = vcmp.eq.f32.partialorder %v1472_v11, 8.507059e+37  ;;  %2338 = vpow2.f32 %v2142_v20 }
0x2388   :  { %v1216_v45 = vmul.f32 %v2333_v16, %v1215_v38 }
0x2389   :  { %v1918_v44 = vsel %vm1917_vm8, %v2327_v29, %v1914_v37  ;;  %v1086_v15 = vadd.f32 %v2331_v52, %v1085_v42 }
0x238a   :  { %v2335_v51 = vpop.eup %2334  ;;  %v2934_v49 = vsel %vm1920_vm9, %v1922_v47, %v1918_v44  ;;  %v1217_v53 = vadd.f32 %v2333_v16, %v1216_v45 }
0x238b   :  { %v1464_v46 = vmul.f32 %v2335_v51, %v1462_v27  ;;  %v1090_v62 = vsel %vm1089_vm13, %v2331_v52, %v1086_v15  ;;  %vm1469_vm4 = vweird.f32 %v2335_v51  ;;  %v1931_v27 = vmul.f32 %v1929_v31, %v2934_v49 }
0x238c   :  { %v1221_v63 = vsel %vm1220_vm15, %v2333_v16, %v1217_v53  ;;  %v1095_v4 = vsel %vm1092_vm2, %v1094_v0, %v1090_v62  ;;  %vm1470_vm6 = vmor %vm1468_vm5, %vm1469_vm4  ;;  %v2337_v35 = vpop.eup %2336 }
0x238d   :  { %v1465_v14 = vsub.f32 1.0, %v1464_v46  ;;  %v1226_v8 = vsel %vm1223_vm3, %v1225_v2, %v1221_v63  ;;  %v1337_v22 = vadd.f32 1.0, %v2337_v35  ;;  %v2339_v25 = vpop.eup %2338 }
0x238e   :  { %v1587_v55 = vadd.f32 1.0, %v2339_v25 }
0x238f   :  { %v1466_v1 = vmul.f32 %v2335_v51, %v1465_v14  ;;  %2340 = vrcp.f32 %v1337_v22  ;;  %v1349_v42 = vand.u32 2147483648, %v1337_v22  ;;  %vm1343_vm9 = vweird.f32 %v1337_v22 }
0x2390   :  { %2342 = vpow2.f32 %v2146_v58  ;;  %v1347_v45 = vand.u32 2147483647, %v1337_v22  ;;  %v1599_v59 = vand.u32 2147483648, %v1587_v55  ;;  %vm1593_vm13 = vweird.f32 %v1587_v55 }
0x2391   :  { %v1467_v9 = vadd.f32 %v2335_v51, %v1466_v1  ;;  %2344 = vpow2.f32 %v2150_v54  ;;  %v1350_v15 = vor.u32 1.1754944e-38, %v1349_v42  ;;  %v1597_v62 = vand.u32 2147483647, %v1587_v55 }
0x2392   :  { %2346 = vrcp.f32 %v1587_v55  ;;  %vm1348_vm11 = vcmp.eq.f32.partialorder %v1347_v45, 8.507059e+37  ;;  %v1600_v0 = vor.u32 1.1754944e-38, %v1599_v59  ;;  %v2983_v58 = vstv %s3050_s6 }
0x2393   :  { %v1471_v12 = vsel %vm1470_vm6, %v2335_v51, %v1467_v9  ;;  %vm1598_vm15 = vcmp.eq.f32.partialorder %v1597_v62, 8.507059e+37 }
0x2394   :  { %v1476_v17 = vsel %vm1473_vm7, %v1475_v13, %v1471_v12 }
0x2395   :  { %v2341_v26 = vpop.eup %2340 }
0x2396   :  { %v2343_v28 = vpop.eup %2342  ;;  %v1339_v29 = vmul.f32 %v2341_v26, %v1337_v22  ;;  %vm1344_vm8 = vweird.f32 %v2341_v26 }
0x2397   :  { %v2345_v30 = vpop.eup %2344  ;;  %v2952_v32 = vadd.f32 1.0, %v2343_v28  ;;  %vm1345_vm10 = vmor %vm1343_vm9, %vm1344_vm8 }
0x2398   :  { %v2955_v52 = vadd.f32 1.0, %v2345_v30  ;;  %v1340_v5 = vsub.f32 1.0, %v1339_v29  ;;  %v2347_v16 = vpop.eup %2346 }
0x2399   :  { %2348 = vrcp.f32 %v2952_v32  ;;  %v1589_v36 = vmul.f32 %v2347_v16, %v1587_v55  ;;  %vm1594_vm12 = vweird.f32 %v2347_v16  ;;  %vm1718_vm4 = vweird.f32 %v2952_v32 }
0x239a   :  { %v1341_v34 = vmul.f32 %v2341_v26, %v1340_v5  ;;  %vm1595_vm14 = vmor %vm1593_vm13, %vm1594_vm12  ;;  %v1722_v10 = vand.u32 2147483647, %v2952_v32  ;;  %v1849_v11 = vand.u32 2147483648, %v2955_v52  ;;  %vm1843_vm6 = vweird.f32 %v2955_v52 }
0x239b   :  { %v1590_v51 = vsub.f32 1.0, %v1589_v36  ;;  %v1847_v12 = vand.u32 2147483647, %v2955_v52 }
0x239c   :  { %v1342_v38 = vadd.f32 %v2341_v26, %v1341_v34  ;;  %vm1723_vm8 = vcmp.eq.f32.partialorder %v1722_v10, 8.507059e+37  ;;  %v1850_v19 = vor.u32 1.1754944e-38, %v1849_v11  ;;  %v2189_v11 = vld [vmem:[#allocation15 + $0x1] ss:$0 sm:$0xff] }
0x239d   :  { %v1591_v47 = vmul.f32 %v2347_v16, %v1590_v51  ;;  %vm1848_vm9 = vcmp.eq.f32.partialorder %v1847_v12, 8.507059e+37  ;;  %v2191_v12 = vld [vmem:[%s3052_s8] ss:$0 sm:$0xff]  ;;  %s2553_s8 = smov [#allocation16]  }
0x239e   :  { %v1346_v46 = vsel %vm1345_vm10, %v2341_v26, %v1342_v38  ;;  %s2017_s19 = sshll.u32 %s2553_s8, 4  ;;  %s2018_s19 = int_to_ptr.vmem [resolvable:$true] %s2017_s19 }
0x239f   :  { %v2349_v21 = vpop.eup %2348  ;;  %v1351_v53 = vsel %vm1348_vm11, %v1350_v15, %v1346_v46  ;;  %v1592_v56 = vadd.f32 %v2347_v16, %v1591_v47 }
0x23a0   :  { %vm1719_vm2 = vweird.f32 %v2349_v21 }
0x23a1   :  { %v1596_v63 = vsel %vm1595_vm14, %v2347_v16, %v1592_v56  ;;  %vm1720_vm5 = vmor %vm1718_vm4, %vm1719_vm2 }
0x23d0   :  { %v1934_v48 = vpop.permute.xlu2 %1933 }
0x23d1   :  { %v1936_v50 = vmul.f32 %v1934_v48, %v2934_v49  ;;  %v1714_v48 = vmul.f32 %v2349_v21, %v2952_v32 }
0x23d3   :  { %1938 = vrot.lane.b32.xlu1 %v1936_v50, %s2551_s12  ;;  %v1715_v57 = vsub.f32 1.0, %v1714_v48 }
0x23d5   :  { %v1716_v1 = vmul.f32 %v2349_v21, %v1715_v57 }
0x23d8   :  { %v2938_v3 = vpop.permute.xlu2 %1099 }
0x23d9   :  { %v1102_v6 = vmul.f32 %v2938_v3, %v1095_v4  ;;  %v1228_v7 = vmul.f32 %v1226_v8, %v2938_v3  ;;  %v1478_v18 = vmul.f32 %v1476_v17, %v2938_v3  ;;  %v1353_v14 = vmul.f32 %v1351_v53, %v2938_v3 }
0x23da   :  { %v1601_v4 = vsel %vm1598_vm15, %v1600_v0, %v1596_v63 }
0x23db   :  { %1104 = vrot.lane.b32.xlu1 %v1102_v6, %s2551_s12  ;;  %1230 = vrot.lane.b32.xlu2 %v1228_v7, %s2551_s12  ;;  %v1603_v8 = vmul.f32 %v1601_v4, %v2938_v3  ;;  %v1717_v6 = vadd.f32 %v2349_v21, %v1716_v1  ;;  %v1724_v7 = vand.u32 2147483648, %v2952_v32  ;;  %v2192_v4 = vld [vmem:[#allocation15] ss:$0 sm:$0xff] }
0x23dd   :  { %v1721_v13 = vsel %vm1720_vm5, %v2349_v21, %v1717_v6  ;;  %v1725_v17 = vor.u32 1.1754944e-38, %v1724_v7 }
0x23df   :  { %v1726_v20 = vsel %vm1723_vm8, %v1725_v17, %v1721_v13 }
0x23e0   :  { %v1728_v35 = vmul.f32 %v1726_v20, %v2938_v3 }
0x23e3   :  { %1480 = vrot.lane.b32.xlu2 %v1478_v18, %s2551_s12 }
0x2435   :  { %v1231_v23 = vpop.permute.xlu2 %1230 }
0x2436   :  { %v1233_v43 = vsel %vm254_vm1, %v1231_v23, 0.0 }
0x2437   :  { %1234 = vadd.xlane.f32.xlu2 %v1233_v43 }
0x243d   :  { %v1481_v40 = vpop.permute.xlu2 %1480 }
0x243e   :  { %v1483_v60 = vsel %vm254_vm1, %v1481_v40, 0.0 }
0x243f   :  { %1484 = vadd.xlane.f32.xlu2 %v1483_v60 }
0x2445   :  { %v1939_v24 = vpop.permute.xlu1 %1938 }
0x2446   :  { %v2957_v33 = vadd.f32 %v1939_v24, %v1931_v27 }
0x2448   :  { %2350 = vtanh.f32 %v2957_v33 }
0x2449   :  { %2352 = vrcp.f32 %v2955_v52 }
0x244d   :  { %v1105_v37 = vpop.permute.xlu1 %1104 }
0x244e   :  { %v2351_v39 = vpop.eup %2350  ;;  %v1107_v41 = vsel %vm254_vm1, %v1105_v37, 0.0 }
0x244f   :  { %v2353_v44 = vpop.eup %2352  ;;  %1944 = vrot.lane.b32.xlu0 %v2351_v39, %s2543_s17  ;;  %1108 = vadd.xlane.f32.xlu1 %v1107_v41 }
0x2450   :  { %v1839_v50 = vmul.f32 %v2353_v44, %v2955_v52  ;;  %vm1844_vm3 = vweird.f32 %v2353_v44 }
0x2451   :  { %vm1845_vm7 = vmor %vm1843_vm6, %vm1844_vm3 }
0x2452   :  { %v1840_v61 = vsub.f32 1.0, %v1839_v50 }
0x2454   :  { %v1841_v2 = vmul.f32 %v2353_v44, %v1840_v61 }
0x2456   :  { %v1842_v9 = vadd.f32 %v2353_v44, %v1841_v2 }
0x2457   :  { %1355 = vrot.lane.b32.xlu0 %v1353_v14, %s2551_s12 }
0x2458   :  { %v1846_v18 = vsel %vm1845_vm7, %v2353_v44, %v1842_v9 }
0x2459   :  { %v1851_v22 = vsel %vm1848_vm9, %v1850_v19, %v1846_v18 }
0x245a   :  { %v1853_v23 = vmul.f32 %v1851_v22, %v2938_v3 }
0x245f   :  { %1605 = vrot.lane.b32.xlu0 %v1603_v8, %s2551_s12 }
0x2467   :  { %1730 = vrot.lane.b32.xlu0 %v1728_v35, %s2551_s12 }
0x2468   :  { %1855 = vrot.lane.b32.xlu1 %v1853_v23, %s2551_s12 }
0x24aa   :  { %v1235_v43 = vpop.xlane.xlu2 %1234 }
0x24ab   :  { %v1236_v54 = vadd.f32 %v1235_v43, %v2983_v58 }
0x24ad   :  { %v2131_v25 = vmul.f32 -1.442695, %v1236_v54 }
0x24af   :  { %2354 = vpow2.f32 %v2131_v25 }
0x24b2   :  { %v1485_v25 = vpop.xlane.xlu2 %1484 }
0x24b5   :  { %v2355_v55 = vpop.eup %2354 }
0x24b6   :  { %v2986_v40 = vadd.f32 1.0, %v2355_v55  ;;  %v1486_v55 = vadd.f32 %v1485_v25, %v2983_v58 }
0x24b8   :  { %2356 = vrcp.f32 %v2986_v40  ;;  %vm1246_vm10 = vweird.f32 %v2986_v40  ;;  %v1250_v44 = vand.u32 2147483647, %v2986_v40  ;;  %v1252_v45 = vand.u32 2147483648, %v2986_v40 }
0x24ba   :  { %v1253_v7 = vor.u32 1.1754944e-38, %v1252_v45  ;;  %vm1251_vm6 = vcmp.eq.f32.partialorder %v1250_v44, 8.507059e+37 }
0x24be   :  { %v2357_v27 = vpop.eup %2356 }
0x24bf   :  { %vm1247_vm11 = vweird.f32 %v2357_v27 }
0x24c0   :  { %vm3005_vm14 = vmor %vm1246_vm10, %vm1247_vm11 }
0x24c1   :  { %v1945_v26 = vpop.permute.xlu0 %1944 }
0x24c2   :  { %v2989_v60 = vmul.f32 %v1945_v26, %v2934_v49  ;;  %v1109_v28 = vpop.xlane.xlu1 %1108  ;;  %v1242_v49 = vmul.f32 %v2357_v27, %v2986_v40  ;;  %v2139_v40 = vmul.f32 -1.442695, %v1486_v55 }
0x24c3   :  { %v1111_v29 = vadd.f32 %v2983_v58, %v1109_v28 }
0x24c4   :  { %v2154_v30 = vmul.f32 -1.442695, %v2989_v60  ;;  %v1243_v36 = vsub.f32 1.0, %v1242_v49  ;;  %v1953_v54 = vpack.c.bf16 %v2989_v60, %v2989_v60 }
0x24c5   :  { %v2127_v32 = vmul.f32 -1.442695, %v1111_v29 }
0x24c6   :  { %2358 = vpow2.f32 %v2154_v30  ;;  %v1244_v51 = vmul.f32 %v2357_v27, %v1243_v36 }
0x24c7   :  { %2360 = vpow2.f32 %v2127_v32 }
0x24c8   :  { %v1245_v47 = vadd.f32 %v2357_v27, %v1244_v51 }
0x24c9   :  { %v1356_v31 = vpop.permute.xlu0 %1355 }
0x24ca   :  { %v1358_v52 = vsel %vm254_vm1, %v1356_v31, 0.0  ;;  %v1249_v2 = vsel %vm3005_vm14, %v2357_v27, %v1245_v47 }
0x24cb   :  { %1359 = vadd.xlane.f32.xlu0 %v1358_v52  ;;  %v1254_v18 = vsel %vm1251_vm6, %v1253_v7, %v1249_v2 }
0x24cc   :  { %v2359_v24 = vpop.eup %2358  ;;  %v1259_v22 = vmul.f32 %v2189_v11, %v1254_v18 }
0x24cd   :  { %v2361_v5 = vpop.eup %2360  ;;  %v1962_v16 = vadd.f32 1.0, %v2359_v24 }
0x24ce   :  { %v1115_v34 = vadd.f32 1.0, %v2361_v5 }
0x24cf   :  { %2362 = vrcp.f32 %v1962_v16  ;;  %v1972_v50 = vand.u32 2147483647, %v1962_v16  ;;  %v1974_v53 = vand.u32 2147483648, %v1962_v16  ;;  %vm1968_vm15 = vweird.f32 %v1962_v16 }
0x24d0   :  { %2364 = vrcp.f32 %v1115_v34  ;;  %v1127_v14 = vand.u32 2147483648, %v1115_v34  ;;  %v1125_v62 = vand.u32 2147483647, %v1115_v34  ;;  %vm1121_vm2 = vweird.f32 %v1115_v34 }
0x24d1   :  { %v1606_v21 = vpop.permute.xlu0 %1605  ;;  %v1975_v6 = vor.u32 1.1754944e-38, %v1974_v53  ;;  %vm1973_vm5 = vcmp.eq.f32.partialorder %v1972_v50, 8.507059e+37  ;;  %2366 = vpow2.f32 %v2139_v40 }
0x24d2   :  { %v1608_v37 = vsel %vm254_vm1, %v1606_v21, 0.0  ;;  %v1128_v9 = vor.u32 1.1754944e-38, %v1127_v14  ;;  %vm1126_vm7 = vcmp.eq.f32.partialorder %v1125_v62, 8.507059e+37  ;;  %v2193_v14 = vld [vmem:[#allocation15 + $0x2] ss:$0 sm:$0xff] }
0x24d3   :  { %1609 = vadd.xlane.f32.xlu0 %v1608_v37 }
0x24d5   :  { %v2363_v38 = vpop.eup %2362 }
0x24d6   :  { %v2365_v39 = vpop.eup %2364  ;;  %v1964_v41 = vmul.f32 %v2363_v38, %v1962_v16  ;;  %vm1969_vm12 = vweird.f32 %v2363_v38 }
0x24d7   :  { %v1117_v42 = vmul.f32 %v2365_v39, %v1115_v34  ;;  %vm1122_vm13 = vweird.f32 %v2365_v39  ;;  %vm1970_vm3 = vmor %vm1968_vm15, %vm1969_vm12  ;;  %v2367_v26 = vpop.eup %2366 }
0x24d8   :  { %v1965_v46 = vsub.f32 1.0, %v1964_v41  ;;  %vm1123_vm4 = vmor %vm1121_vm2, %vm1122_vm13  ;;  %v1490_v32 = vadd.f32 1.0, %v2367_v26 }
0x24d9   :  { %v1118_v48 = vsub.f32 1.0, %v1117_v42  ;;  %v1731_v15 = vpop.permute.xlu0 %1730 }
0x24da   :  { %v1856_v56 = vpop.permute.xlu1 %1855  ;;  %v1733_v57 = vsel %vm254_vm1, %v1731_v15, 0.0  ;;  %v1966_v59 = vmul.f32 %v2363_v38, %v1965_v46  ;;  %vm1496_vm12 = vweird.f32 %v1490_v32 }
0x24db   :  { %v1119_v61 = vmul.f32 %v2365_v39, %v1118_v48  ;;  %1734 = vadd.xlane.f32.xlu1 %v1733_v57  ;;  %v1858_v63 = vsel %vm254_vm1, %v1856_v56, 0.0 }
0x24dc   :  { %1859 = vadd.xlane.f32.xlu0 %v1858_v63  ;;  %v1967_v0 = vadd.f32 %v2363_v38, %v1966_v59  ;;  %v1500_v59 = vand.u32 2147483647, %v1490_v32 }
0x24dd   :  { %v1120_v8 = vadd.f32 %v2365_v39, %v1119_v61  ;;  %v1502_v61 = vand.u32 2147483648, %v1490_v32 }
0x24de   :  { %v1971_v10 = vsel %vm1970_vm3, %v2363_v38, %v1967_v0  ;;  %vm1501_vm15 = vcmp.eq.f32.partialorder %v1500_v59, 8.507059e+37 }
0x24df   :  { %v1124_v13 = vsel %vm1123_vm4, %v2365_v39, %v1120_v8  ;;  %v1976_v17 = vsel %vm1973_vm5, %v1975_v6, %v1971_v10  ;;  %v1503_v11 = vor.u32 1.1754944e-38, %v1502_v61 }
0x24e0   :  { %v1129_v19 = vsel %vm1126_vm7, %v1128_v9, %v1124_v13  ;;  %v1978_v20 = vmul.f32 %v1976_v17, %v2938_v3  ;;  %v2190_v17 = vld [vmem:[#allocation15 + $0x3] ss:$0 sm:$0xff] }
0x24e1   :  { %v1134_v35 = vmul.f32 %v2192_v4, %v1129_v19 }
0x24e2   :  { %1980 = vrot.lane.b32.xlu2 %v1978_v20, %s2551_s12 }
0x24e3   :  { %v1135_v23 = vadd.f32 %v2191_v12, %v1134_v35  ;;  %v2194_v35 = vld [vmem:[#allocation15 + $0x4] ss:$0 sm:$0xff] }
0x24e5   :  { %v3017_v43 = vadd.f32 %v1259_v22, %v1135_v23 }
0x24f0   :  { %1949 = vrot.lane.b32.xlu0 %v2957_v33, %s2552_s13 }
0x24f8   :  { %1955 = vrot.lane.b32.xlu0 %v1953_v54, %s2551_s12 }
0x253c   :  { %v1981_v3 = vpop.permute.xlu2 %1980 }
0x253d   :  { %v1983_v28 = vsel %vm254_vm1, %v1981_v3, 0.0 }
0x253e   :  { %v1360_v29 = vpop.xlane.xlu0 %1359  ;;  %1984 = vadd.xlane.f32.xlu2 %v1983_v28 }
0x253f   :  { %v1361_v30 = vadd.f32 %v1360_v29, %v2983_v58 }
0x2541   :  { %v2135_v33 = vmul.f32 -1.442695, %v1361_v30 }
0x2543   :  { %2368 = vpow2.f32 %v2135_v33 }
0x2544   :  { %2370 = vrcp.f32 %v1490_v32 }
0x2546   :  { %v1610_v60 = vpop.xlane.xlu0 %1609 }
0x2547   :  { %v1611_v31 = vadd.f32 %v1610_v60, %v2983_v58 }
0x2549   :  { %v2369_v27 = vpop.eup %2368  ;;  %v2143_v52 = vmul.f32 -1.442695, %v1611_v31 }
0x254a   :  { %v2371_v24 = vpop.eup %2370  ;;  %v1365_v5 = vadd.f32 1.0, %v2369_v27 }
0x254b   :  { %2372 = vpow2.f32 %v2143_v52  ;;  %v1492_v49 = vmul.f32 %v2371_v24, %v1490_v32  ;;  %vm1497_vm9 = vweird.f32 %v2371_v24 }
0x254c   :  { %2374 = vrcp.f32 %v1365_v5  ;;  %v1377_v47 = vand.u32 2147483648, %v1365_v5  ;;  %v1375_v15 = vand.u32 2147483647, %v1365_v5  ;;  %vm1371_vm10 = vweird.f32 %v1365_v5  ;;  %vm3031_vm14 = vmor %vm1496_vm12, %vm1497_vm9 }
0x254d   :  { %v1493_v38 = vsub.f32 1.0, %v1492_v49  ;;  %v2195_v49 = vld [vmem:[#allocation15 + $0x5] ss:$0 sm:$0xff] }
0x254e   :  { %v1735_v16 = vpop.xlane.xlu1 %1734  ;;  %v1378_v62 = vor.u32 1.1754944e-38, %v1377_v47  ;;  %vm1376_vm13 = vcmp.eq.f32.partialorder %v1375_v15, 8.507059e+37 }
0x254f   :  { %v1736_v34 = vadd.f32 %v1735_v16, %v2983_v58  ;;  %v1860_v36 = vpop.xlane.xlu0 %1859  ;;  %v1494_v45 = vmul.f32 %v2371_v24, %v1493_v38 }
0x2550   :  { %v1861_v21 = vadd.f32 %v1860_v36, %v2983_v58 }
0x2551   :  { %v2373_v37 = vpop.eup %2372  ;;  %v2147_v51 = vmul.f32 -1.442695, %v1736_v34  ;;  %v1495_v53 = vadd.f32 %v2371_v24, %v1494_v45 }
0x2552   :  { %v2375_v39 = vpop.eup %2374  ;;  %v1615_v41 = vadd.f32 1.0, %v2373_v37  ;;  %v2151_v42 = vmul.f32 -1.442695, %v1861_v21 }
0x2553   :  { %v1367_v44 = vmul.f32 %v2375_v39, %v1365_v5  ;;  %2376 = vpow2.f32 %v2147_v51  ;;  %vm1372_vm8 = vweird.f32 %v2375_v39  ;;  %v1499_v6 = vsel %vm3031_vm14, %v2371_v24, %v1495_v53 }
0x2554   :  { %2378 = vrcp.f32 %v1615_v41  ;;  %vm1373_vm11 = vmor %vm1371_vm10, %vm1372_vm8  ;;  %v1625_v12 = vand.u32 2147483647, %v1615_v41  ;;  %v1627_v13 = vand.u32 2147483648, %v1615_v41  ;;  %v1504_v20 = vsel %vm1501_vm15, %v1503_v11, %v1499_v6 }
0x2555   :  { %v1368_v46 = vsub.f32 1.0, %v1367_v44  ;;  %2380 = vpow2.f32 %v2151_v42  ;;  %vm1621_vm3 = vweird.f32 %v1615_v41  ;;  %v1509_v55 = vmul.f32 %v2190_v17, %v1504_v20 }
0x2556   :  { %v1628_v54 = vor.u32 1.1754944e-38, %v1627_v13  ;;  %vm1626_vm5 = vcmp.eq.f32.partialorder %v1625_v12, 8.507059e+37 }
0x2557   :  { %v1369_v48 = vmul.f32 %v2375_v39, %v1368_v46 }
0x2559   :  { %v2377_v50 = vpop.eup %2376  ;;  %v1370_v56 = vadd.f32 %v2375_v39, %v1369_v48 }
0x255a   :  { %v2379_v57 = vpop.eup %2378  ;;  %v1740_v63 = vadd.f32 1.0, %v2377_v50 }
0x255b   :  { %v2381_v1 = vpop.eup %2380  ;;  %v1374_v0 = vsel %vm1373_vm11, %v2375_v39, %v1370_v56  ;;  %v1617_v2 = vmul.f32 %v2379_v57, %v1615_v41  ;;  %vm1622_vm2 = vweird.f32 %v2379_v57  ;;  %v2196_v39 = vld [vmem:[#allocation15 + $0x6] ss:$0 sm:$0xff] }
0x255c   :  { %v1379_v8 = vsel %vm1376_vm13, %v1378_v62, %v1374_v0  ;;  %2382 = vrcp.f32 %v1740_v63  ;;  %v1865_v10 = vadd.f32 1.0, %v2381_v1  ;;  %vm1623_vm4 = vmor %vm1621_vm3, %vm1622_vm2  ;;  %v1752_v32 = vand.u32 2147483648, %v1740_v63 }
0x255d   :  { %v1384_v7 = vmul.f32 %v2193_v14, %v1379_v8  ;;  %v1618_v9 = vsub.f32 1.0, %v1617_v2  ;;  %v1750_v31 = vand.u32 2147483647, %v1740_v63  ;;  %vm1746_vm7 = vweird.f32 %v1740_v63  ;;  %v2197_v2 = vld [vmem:[#allocation15 + $0x7] ss:$0 sm:$0xff] }
0x255e   :  { %2384 = vrcp.f32 %v1865_v10  ;;  %v1877_v5 = vand.u32 2147483648, %v1865_v10  ;;  %v1753_v16 = vor.u32 1.1754944e-38, %v1752_v32  ;;  %v1875_v36 = vand.u32 2147483647, %v1865_v10 }
0x255f   :  { %v1385_v18 = vadd.f32 %v1384_v7, %v3017_v43  ;;  %v1619_v19 = vmul.f32 %v2379_v57, %v1618_v9  ;;  %vm1751_vm9 = vcmp.eq.f32.partialorder %v1750_v31, 8.507059e+37  ;;  %vm1871_vm10 = vweird.f32 %v1865_v10 }
0x2560   :  { %v1878_v41 = vor.u32 1.1754944e-38, %v1877_v5  ;;  %vm1876_vm12 = vcmp.eq.f32.partialorder %v1875_v36, 8.507059e+37 }
0x2561   :  { %v1620_v22 = vadd.f32 %v2379_v57, %v1619_v19  ;;  %v1510_v30 = vadd.f32 %v1509_v55, %v1385_v18 }
0x2562   :  { %v2383_v23 = vpop.eup %2382  ;;  %v1950_v25 = vpop.permute.xlu0 %1949 }
0x2563   :  { %v1624_v40 = vsel %vm1623_vm4, %v2379_v57, %v1620_v22  ;;  %v1742_v3 = vmul.f32 %v2383_v23, %v1740_v63  ;;  %1952 = vst.msk [vmem:[#allocation4] sm:$0xff] %vm254_vm1, %v1950_v25  ;;  %vm1747_vm6 = vweird.f32 %v2383_v23 }
0x2564   :  { %v1629_v26 = vsel %vm1626_vm5, %v1628_v54, %v1624_v40  ;;  %v2385_v28 = vpop.eup %2384  ;;  %vm1748_vm8 = vmor %vm1746_vm7, %vm1747_vm6 }
0x2565   :  { %v1634_v43 = vmul.f32 %v2194_v35, %v1629_v26  ;;  %v1743_v29 = vsub.f32 1.0, %v1742_v3  ;;  %v1867_v33 = vmul.f32 %v2385_v28, %v1865_v10  ;;  %vm1872_vm1 = vweird.f32 %v2385_v28 }
0x2566   :  { %vm1873_vm11 = vmor %vm1871_vm10, %vm1872_vm1 }
0x2567   :  { %v1744_v60 = vmul.f32 %v2383_v23, %v1743_v29  ;;  %v1635_v27 = vadd.f32 %v1634_v43, %v1510_v30  ;;  %v1868_v52 = vsub.f32 1.0, %v1867_v33 }
0x2569   :  { %v1745_v24 = vadd.f32 %v2383_v23, %v1744_v60  ;;  %v1869_v34 = vmul.f32 %v2385_v28, %v1868_v52 }
0x256a   :  { %v1956_v21 = vpop.permute.xlu0 %1955 }
0x256b   :  { %v1749_v37 = vsel %vm1748_vm8, %v2383_v23, %v1745_v24  ;;  %1958 = vst.msk [vmem:[#allocation5] sm:$0xf] %vm256_vm0, %v1956_v21  ;;  %v1870_v51 = vadd.f32 %v2385_v28, %v1869_v34 }
0x256c   :  { %v1754_v38 = vsel %vm1751_vm9, %v1753_v16, %v1749_v37 }
0x256d   :  { %v1759_v42 = vmul.f32 %v2195_v49, %v1754_v38  ;;  %v1874_v44 = vsel %vm1873_vm11, %v2385_v28, %v1870_v51 }
0x256e   :  { %v1879_v46 = vsel %vm1876_vm12, %v1878_v41, %v1874_v44 }
0x256f   :  { %v1760_v45 = vadd.f32 %v1759_v42, %v1635_v27  ;;  %v1884_v47 = vmul.f32 %v2196_v39, %v1879_v46 }
0x2571   :  { %v1885_v48 = vadd.f32 %v1884_v47, %v1760_v45 }
0x25b1   :  { %v1985_v15 = vpop.xlane.xlu2 %1984 }
0x25b2   :  { %v1986_v50 = vadd.f32 %v1985_v15, %v2983_v58 }
0x25b4   :  { %v2155_v53 = vmul.f32 -1.442695, %v1986_v50 }
0x25b6   :  { %2386 = vpow2.f32 %v2155_v53 }
0x25bc   :  { %v2387_v14 = vpop.eup %2386 }
0x25bd   :  { %v1990_v56 = vadd.f32 1.0, %v2387_v14 }
0x25bf   :  { %2388 = vrcp.f32 %v1990_v56  ;;  %v2002_v62 = vand.u32 2147483648, %v1990_v56  ;;  %v2000_v1 = vand.u32 2147483647, %v1990_v56  ;;  %vm1996_vm13 = vweird.f32 %v1990_v56 }
0x25c1   :  { %v2003_v4 = vor.u32 1.1754944e-38, %v2002_v62  ;;  %vm2001_vm15 = vcmp.eq.f32.partialorder %v2000_v1, 8.507059e+37 }
0x25c5   :  { %v2389_v57 = vpop.eup %2388 }
0x25c6   :  { %v1992_v59 = vmul.f32 %v2389_v57, %v1990_v56  ;;  %vm1997_vm0 = vweird.f32 %v2389_v57 }
0x25c7   :  { %vm1998_vm14 = vmor %vm1996_vm13, %vm1997_vm0 }
0x25c8   :  { %v1993_v61 = vsub.f32 1.0, %v1992_v59 }
0x25ca   :  { %v1994_v63 = vmul.f32 %v2389_v57, %v1993_v61 }
0x25cc   :  { %v1995_v0 = vadd.f32 %v2389_v57, %v1994_v63 }
0x25ce   :  { %v1999_v8 = vsel %vm1998_vm14, %v2389_v57, %v1995_v0 }
0x25cf   :  { %v2004_v58 = vsel %vm2001_vm15, %v2003_v4, %v1999_v8 }
0x25d0   :  { %v2009_v6 = vmul.f32 %v2197_v2, %v2004_v58 }
0x25d2   :  { %v2010_v7 = vadd.f32 %v2009_v6, %v1885_v48 }
0x25d4   :  { %2011 = vst [vmem:[#allocation16] sm:$0xff] %v2010_v7 }
0x25d5   :  { %2022 = dma.vmem_to_hbm [thread:$0]  %s2018_s19, 128, %s2020_s22, [#allocation9]  }
0x25d6   :  { %2540 = dma.done.wait [#allocation9], 128  }
0x25d7   :  { %2541 = vsyncadd [#allocation9], 4294967168 }
0x25d8   :  { %2027 = vsyncpa [#allocation8], 1 }
0x25d9   :  { %2028 = vsyncpa [#allocation11], 1 }
0x25da   :  { %2029 = vsyncpa [#allocation14], 1 }
0x25db   :  { %2030 = vsyncpa [#allocation9], 1 }

</bundles_post_ra>
